<compile_context>
chip_gen: v7x
topology: tpu7x:2x2x1
jax: 0.10.0
libtpu: 0.0.40
codegen_flags: <defaults>
</compile_context>

<pallas_src>
import functools

import jax
import jax.numpy as jnp
from jax import lax
from jax.experimental import pallas as pl
from jax.experimental.pallas import tpu as pltpu

EPS = 1e-5
NEG_SLOPE = 0.1


def _round_up(x, m):
    return ((x + m - 1) // m) * m


def _vmem_limit_bytes():
    # ~3/4 of physical VMEM, capped at 100 MiB.
    # v5e/v6e: 128 MiB -> 96 MiB;  v7x: 64 MiB -> 48 MiB.
    try:
        cap = pltpu.get_tpu_info().vmem_capacity_bytes
    except Exception:
        cap = 128 << 20
    return int(min((cap * 3) // 4, 100 << 20))


def _pick_row_tile(m, cap=2048):
    """Largest row tile <= cap that divides m and respects the (8,128) layout rule."""
    if m <= cap:
        return m
    for t in range(cap, 7, -1):
        if m % t == 0 and t % 8 == 0:
            return t
    return m  # full extent is always a legal block dim


@functools.partial(jax.jit, static_argnames=("stride", "padding"))
def cnn_block_forward(x_nchw, weight, gamma, beta, *, stride=1, padding=1):
    """x_nchw: [N, C_in, H, W]; weight: [C_out, C_in, KH, KW] (Conv2d bias=False)."""
    # TODO(synk): stride != 1 needs strided window slicing in phase 1; not implemented.
    assert stride == 1, "only stride=1 is supported by this kernel"

    n, c_in, h, w = x_nchw.shape
    c_out, c_in_w, kh, kw = weight.shape
    assert c_in == c_in_w
    hp, wp = h + 2 * padding, w + 2 * padding
    oh, ow = hp - kh + 1, wp - kw + 1
    c_pad = _round_up(c_out, 128)      # lane-dense output channels
    mrows = oh * wp                    # conv rows incl. (wp - ow) wrap columns per row group
    r_in = hp * wp + (kw - 1)          # flattened padded-input rows per image
    cnt = oh * ow                      # valid spatial positions per image

    # ---------------- XLA-side layout prep (no im2col materialization) ----------------
    x_nhwc = jnp.transpose(x_nchw, (0, 2, 3, 1))
    xp = jnp.pad(x_nhwc, ((0, 0), (padding, padding), (padding, padding), (0, 0)))
    x2 = xp.reshape(n, hp * wp, c_in)
    x2 = jnp.pad(x2, ((0, 0), (0, kw - 1), (0, 0))).astype(jnp.bfloat16)

    # weight [C_out, C_in, KH, KW] -> [KH*KW, C_in, C_out_pad], bf16
    w_r = jnp.transpose(weight, (2, 3, 1, 0)).reshape(kh * kw, c_in, c_out)
    w_r = jnp.pad(w_r, ((0, 0), (0, 0), (0, c_pad - c_out))).astype(jnp.bfloat16)

    vmem = _vmem_limit_bytes()

    # ---------------- Phase 1: conv + per-image BN partial moments ----------------
    def conv_kernel(x_ref, w_ref, y_ref, mom_ref, acc_ref):
        acc_ref[...] = jnp.zeros_like(acc_ref)
        for i in range(kh):                              # static unroll over taps
            for j in range(kw):
                start = i * wp + j
                win = x_ref[0, start:start + mrows, :]   # (mrows, c_in) bf16
                acc_ref[...] += jnp.dot(win, w_ref[i * kw + j],
                                        preferred_element_type=jnp.float32)
        acc = acc_ref[...]
        y_ref[0] = acc
        # Per-image moments over valid (col < ow) positions only; f32, centered (Welford-style).
        col = lax.broadcasted_iota(jnp.int32, (mrows, 1), 0) % wp
        valid = (col < ow).astype(jnp.float32)
        mu = jnp.sum(acc * valid, axis=0, keepdims=True) * (1.0 / cnt)
        d = (acc - mu) * valid
        m2 = jnp.sum(d * d, axis=0, keepdims=True)
        mom_ref[0, 0:1, :] = mu
        mom_ref[0, 1:2, :] = m2

    y_pad, moments = pl.pallas_call(
        conv_kernel,
        grid=(n,),
        in_specs=[
            pl.BlockSpec((1, r_in, c_in), lambda b: (b, 0, 0)),
            pl.BlockSpec((kh * kw, c_in, c_pad), lambda b: (0, 0, 0)),
        ],
        out_specs=(
            pl.BlockSpec((1, mrows, c_pad), lambda b: (b, 0, 0)),
            pl.BlockSpec((1, 2, c_pad), lambda b: (b, 0, 0)),
        ),
        out_shape=(
            jax.ShapeDtypeStruct((n, mrows, c_pad), jnp.float32),
            jax.ShapeDtypeStruct((n, 2, c_pad), jnp.float32),
        ),
        scratch_shapes=[pltpu.VMEM((mrows, c_pad), jnp.float32)],
        compiler_params=pltpu.CompilerParams(
            dimension_semantics=("parallel",), vmem_limit_bytes=vmem),
        cost_estimate=pl.CostEstimate(
            flops=2 * n * mrows * c_in * c_pad * kh * kw,
            transcendentals=0,
            bytes_accessed=(x2.size * 2 + w_r.size * 2
                            + n * mrows * c_pad * 4 + n * 2 * c_pad * 4)),
    )(x2, w_r)

    # ------- Phase 2: combine moments (Chan), fold BN + affine into scale/bias -------
    mu_i = moments[:, 0, :]                               # (n, c_pad)
    m2_i = moments[:, 1, :]                               # (n, c_pad)
    mean = jnp.mean(mu_i, axis=0)
    m2 = jnp.sum(m2_i, axis=0) + cnt * jnp.sum((mu_i - mean[None, :]) ** 2, axis=0)
    var = m2 / (n * cnt)                                  # biased (training-mode) variance
    gamma_p = jnp.pad(gamma.astype(jnp.float32), (0, c_pad - c_out))
    beta_p = jnp.pad(beta.astype(jnp.float32), (0, c_pad - c_out))
    scale = gamma_p * lax.rsqrt(var + EPS)
    bias = beta_p - mean * scale
    sb = jnp.stack([scale, bias], axis=0)                 # (2, c_pad) combined operand

    # ---------------- Phase 3: normalize + LeakyReLU (elementwise) ----------------
    tr = _pick_row_tile(mrows)

    def norm_kernel(y_ref, sb_ref, o_ref):
        y = y_ref[...]                                    # (1, tr, c_pad) f32
        z = y * sb_ref[0:1, :] + sb_ref[1:2, :]
        o_ref[...] = jnp.where(z > 0, z, NEG_SLOPE * z)

    out_pad = pl.pallas_call(
        norm_kernel,
        grid=(n, mrows // tr),
        in_specs=[
            pl.BlockSpec((1, tr, c_pad), lambda b, r: (b, r, 0)),
            pl.BlockSpec((2, c_pad), lambda b, r: (0, 0)),
        ],
        out_specs=pl.BlockSpec((1, tr, c_pad), lambda b, r: (b, r, 0)),
        out_shape=jax.ShapeDtypeStruct((n, mrows, c_pad), jnp.float32),
        compiler_params=pltpu.CompilerParams(
            dimension_semantics=("parallel", "parallel"), vmem_limit_bytes=vmem),
        cost_estimate=pl.CostEstimate(
            flops=4 * n * mrows * c_pad, transcendentals=0,
            bytes_accessed=2 * n * mrows * c_pad * 4 + 2 * c_pad * 4),
    )(y_pad, sb)

    # Strip wrap columns / channel padding, back to NCHW.
    out = out_pad.reshape(n, oh, wp, c_pad)[:, :, :ow, :c_out]
    return jnp.transpose(out, (0, 3, 1, 2))


def _reference(x_nchw, weight, gamma, beta, *, stride=1, padding=1):
    # Same bf16-rounded inputs as the kernel (f32 accumulation), for apples-to-apples check.
    xr = x_nchw.astype(jnp.bfloat16).astype(jnp.float32)
    wr = weight.astype(jnp.bfloat16).astype(jnp.float32)
    y = lax.conv_general_dilated(
        xr, wr, window_strides=(stride, stride),
        padding=((padding, padding), (padding, padding)),
        dimension_numbers=("NCHW", "OIHW", "NCHW"))
    mean = jnp.mean(y, axis=(0, 2, 3), keepdims=True)
    var = jnp.mean((y - mean) ** 2, axis=(0, 2, 3), keepdims=True)
    y = (y - mean) * lax.rsqrt(var + EPS)
    y = y * gamma.reshape(1, -1, 1, 1) + beta.reshape(1, -1, 1, 1)
    return jnp.where(y > 0, y, NEG_SLOPE * y)


if __name__ == "__main__":
    # Small VGG-like config: kernel_size=3, stride=1, padding=1.
    N, C_IN, H, W = 2, 4, 16, 16
    C_OUT, KH, KW = 8, 3, 3

    key = jax.random.PRNGKey(0)
    kx, kwt = jax.random.split(key)
    x = jax.random.normal(kx, (N, C_IN, H, W), dtype=jnp.float32)
    weight = jax.random.normal(kwt, (C_OUT, C_IN, KH, KW), dtype=jnp.float32) * 0.1
    gamma = jnp.ones((C_OUT,), dtype=jnp.float32)   # BatchNorm2d default weight
    beta = jnp.zeros((C_OUT,), dtype=jnp.float32)   # BatchNorm2d default bias

    out = cnn_block_forward(x, weight, gamma, beta, stride=1, padding=1)
    out = jax.block_until_ready(out)

    ref = _reference(x, weight, gamma, beta, stride=1, padding=1)
    assert out.shape == (N, C_OUT, H, W), out.shape
    err = float(jnp.max(jnp.abs(out - ref)))
    assert jnp.allclose(out, ref, atol=2e-3, rtol=2e-3), err

    print("KERNEL_OK")
</pallas_src>

<mosaic_0001>
module attributes {stable_mosaic.version = 11 : i64} {
  func.func @conv_kernel(%arg0: i32, %arg1: memref<1x326x4xbf16, #tpu.memory_space<vmem>>, %arg2: memref<9x4x128xbf16, #tpu.memory_space<vmem>>, %arg3: memref<1x288x128xf32, #tpu.memory_space<vmem>>, %arg4: memref<1x2x128xf32, #tpu.memory_space<vmem>>, %arg5: memref<288x128xf32, #tpu.memory_space<vmem>>) attributes {dimension_semantics = [#tpu.dimension_semantics<parallel>], iteration_bounds = array<i64: 2>, scalar_prefetch = 0 : i64, scratch_operands = 1 : i64, tpu.core_type = #tpu.core_type<tc>, window_params = [{transform_indices = @transform_0, window_bounds = array<i64: 1, 326, 4>}, {pipeline_mode = #tpu.pipeline_mode<synchronous>, transform_indices = @transform_1, window_bounds = array<i64: 9, 4, 128>}, {transform_indices = @transform_2, window_bounds = array<i64: 1, 288, 128>}, {transform_indices = @transform_3, window_bounds = array<i64: 1, 2, 128>}]} {
    %cst = arith.constant 0.000000e+00 : f32
    %0 = vector.broadcast %cst : f32 to vector<288x128xf32>
    %c0 = arith.constant 0 : index
    %c0_0 = arith.constant 0 : index
    %1 = vector.load %arg5[%c0, %c0_0] : memref<288x128xf32, #tpu.memory_space<vmem>>, vector<288x128xf32>
    tpu.vector_store %arg5[%c0, %c0_0], %0 {strides = array<i32>} : memref<288x128xf32, #tpu.memory_space<vmem>>, vector<288x128xf32>,
    %c0_1 = arith.constant 0 : index
    %c0_2 = arith.constant 0 : index
    %c0_3 = arith.constant 0 : index
    %2 = vector.load %arg1[%c0_1, %c0_2, %c0_3] : memref<1x326x4xbf16, #tpu.memory_space<vmem>>, vector<1x288x4xbf16>
    %3 = vector.shape_cast %2 : vector<1x288x4xbf16> to vector<288x4xbf16>
    %c0_4 = arith.constant 0 : index
    %c0_5 = arith.constant 0 : index
    %4 = vector.load %arg5[%c0_4, %c0_5] : memref<288x128xf32, #tpu.memory_space<vmem>>, vector<288x128xf32>
    %c0_6 = arith.constant 0 : index
    %c0_7 = arith.constant 0 : index
    %c0_8 = arith.constant 0 : index
    %5 = vector.load %arg2[%c0_6, %c0_7, %c0_8] : memref<9x4x128xbf16, #tpu.memory_space<vmem>>, vector<1x4x128xbf16>
    %6 = vector.shape_cast %5 : vector<1x4x128xbf16> to vector<4x128xbf16>
    %cst_9 = arith.constant dense<0.000000e+00> : vector<288x128xf32>
    %7 = tpu.matmul %3, %6, %cst_9 {dimension_numbers = #tpu.dot_dimension_numbers<[1], [0], [0], [1], [0, 0, 1, 1], [], []>} : vector<288x4xbf16>, vector<4x128xbf16>, vector<288x128xf32> -> vector<288x128xf32>
    %8 = arith.addf %4, %7 : vector<288x128xf32>
    %c0_10 = arith.constant 0 : index
    %c0_11 = arith.constant 0 : index
    %9 = vector.load %arg5[%c0_10, %c0_11] : memref<288x128xf32, #tpu.memory_space<vmem>>, vector<288x128xf32>
    tpu.vector_store %arg5[%c0_10, %c0_11], %8 {strides = array<i32>} : memref<288x128xf32, #tpu.memory_space<vmem>>, vector<288x128xf32>,
    %c0_12 = arith.constant 0 : index
    %c1 = arith.constant 1 : index
    %c0_13 = arith.constant 0 : index
    %10 = vector.load %arg1[%c0_12, %c1, %c0_13] : memref<1x326x4xbf16, #tpu.memory_space<vmem>>, vector<1x288x4xbf16>
    %11 = vector.shape_cast %10 : vector<1x288x4xbf16> to vector<288x4xbf16>
    %c0_14 = arith.constant 0 : index
    %c0_15 = arith.constant 0 : index
    %12 = vector.load %arg5[%c0_14, %c0_15] : memref<288x128xf32, #tpu.memory_space<vmem>>, vector<288x128xf32>
    %c1_16 = arith.constant 1 : index
    %c0_17 = arith.constant 0 : index
    %c0_18 = arith.constant 0 : index
    %13 = vector.load %arg2[%c1_16, %c0_17, %c0_18] : memref<9x4x128xbf16, #tpu.memory_space<vmem>>, vector<1x4x128xbf16>
    %14 = vector.shape_cast %13 : vector<1x4x128xbf16> to vector<4x128xbf16>
    %cst_19 = arith.constant dense<0.000000e+00> : vector<288x128xf32>
    %15 = tpu.matmul %11, %14, %cst_19 {dimension_numbers = #tpu.dot_dimension_numbers<[1], [0], [0], [1], [0, 0, 1, 1], [], []>} : vector<288x4xbf16>, vector<4x128xbf16>, vector<288x128xf32> -> vector<288x128xf32>
    %16 = arith.addf %12, %15 : vector<288x128xf32>
    %c0_20 = arith.constant 0 : index
    %c0_21 = arith.constant 0 : index
    %17 = vector.load %arg5[%c0_20, %c0_21] : memref<288x128xf32, #tpu.memory_space<vmem>>, vector<288x128xf32>
    tpu.vector_store %arg5[%c0_20, %c0_21], %16 {strides = array<i32>} : memref<288x128xf32, #tpu.memory_space<vmem>>, vector<288x128xf32>,
    %c0_22 = arith.constant 0 : index
    %c2 = arith.constant 2 : index
    %c0_23 = arith.constant 0 : index
    %18 = vector.load %arg1[%c0_22, %c2, %c0_23] : memref<1x326x4xbf16, #tpu.memory_space<vmem>>, vector<1x288x4xbf16>
    %19 = vector.shape_cast %18 : vector<1x288x4xbf16> to vector<288x4xbf16>
    %c0_24 = arith.constant 0 : index
    %c0_25 = arith.constant 0 : index
    %20 = vector.load %arg5[%c0_24, %c0_25] : memref<288x128xf32, #tpu.memory_space<vmem>>, vector<288x128xf32>
    %c2_26 = arith.constant 2 : index
    %c0_27 = arith.constant 0 : index
    %c0_28 = arith.constant 0 : index
    %21 = vector.load %arg2[%c2_26, %c0_27, %c0_28] : memref<9x4x128xbf16, #tpu.memory_space<vmem>>, vector<1x4x128xbf16>
    %22 = vector.shape_cast %21 : vector<1x4x128xbf16> to vector<4x128xbf16>
    %cst_29 = arith.constant dense<0.000000e+00> : vector<288x128xf32>
    %23 = tpu.matmul %19, %22, %cst_29 {dimension_numbers = #tpu.dot_dimension_numbers<[1], [0], [0], [1], [0, 0, 1, 1], [], []>} : vector<288x4xbf16>, vector<4x128xbf16>, vector<288x128xf32> -> vector<288x128xf32>
    %24 = arith.addf %20, %23 : vector<288x128xf32>
    %c0_30 = arith.constant 0 : index
    %c0_31 = arith.constant 0 : index
    %25 = vector.load %arg5[%c0_30, %c0_31] : memref<288x128xf32, #tpu.memory_space<vmem>>, vector<288x128xf32>
    tpu.vector_store %arg5[%c0_30, %c0_31], %24 {strides = array<i32>} : memref<288x128xf32, #tpu.memory_space<vmem>>, vector<288x128xf32>,
    %c0_32 = arith.constant 0 : index
    %c18 = arith.constant 18 : index
    %c0_33 = arith.constant 0 : index
    %26 = vector.load %arg1[%c0_32, %c18, %c0_33] : memref<1x326x4xbf16, #tpu.memory_space<vmem>>, vector<1x288x4xbf16>
    %27 = vector.shape_cast %26 : vector<1x288x4xbf16> to vector<288x4xbf16>
    %c0_34 = arith.constant 0 : index
    %c0_35 = arith.constant 0 : index
    %28 = vector.load %arg5[%c0_34, %c0_35] : memref<288x128xf32, #tpu.memory_space<vmem>>, vector<288x128xf32>
    %c3 = arith.constant 3 : index
    %c0_36 = arith.constant 0 : index
    %c0_37 = arith.constant 0 : index
    %29 = vector.load %arg2[%c3, %c0_36, %c0_37] : memref<9x4x128xbf16, #tpu.memory_space<vmem>>, vector<1x4x128xbf16>
    %30 = vector.shape_cast %29 : vector<1x4x128xbf16> to vector<4x128xbf16>
    %cst_38 = arith.constant dense<0.000000e+00> : vector<288x128xf32>
    %31 = tpu.matmul %27, %30, %cst_38 {dimension_numbers = #tpu.dot_dimension_numbers<[1], [0], [0], [1], [0, 0, 1, 1], [], []>} : vector<288x4xbf16>, vector<4x128xbf16>, vector<288x128xf32> -> vector<288x128xf32>
    %32 = arith.addf %28, %31 : vector<288x128xf32>
    %c0_39 = arith.constant 0 : index
    %c0_40 = arith.constant 0 : index
    %33 = vector.load %arg5[%c0_39, %c0_40] : memref<288x128xf32, #tpu.memory_space<vmem>>, vector<288x128xf32>
    tpu.vector_store %arg5[%c0_39, %c0_40], %32 {strides = array<i32>} : memref<288x128xf32, #tpu.memory_space<vmem>>, vector<288x128xf32>,
    %c0_41 = arith.constant 0 : index
    %c19 = arith.constant 19 : index
    %c0_42 = arith.constant 0 : index
    %34 = vector.load %arg1[%c0_41, %c19, %c0_42] : memref<1x326x4xbf16, #tpu.memory_space<vmem>>, vector<1x288x4xbf16>
    %35 = vector.shape_cast %34 : vector<1x288x4xbf16> to vector<288x4xbf16>
    %c0_43 = arith.constant 0 : index
    %c0_44 = arith.constant 0 : index
    %36 = vector.load %arg5[%c0_43, %c0_44] : memref<288x128xf32, #tpu.memory_space<vmem>>, vector<288x128xf32>
    %c4 = arith.constant 4 : index
    %c0_45 = arith.constant 0 : index
    %c0_46 = arith.constant 0 : index
    %37 = vector.load %arg2[%c4, %c0_45, %c0_46] : memref<9x4x128xbf16, #tpu.memory_space<vmem>>, vector<1x4x128xbf16>
    %38 = vector.shape_cast %37 : vector<1x4x128xbf16> to vector<4x128xbf16>
    %cst_47 = arith.constant dense<0.000000e+00> : vector<288x128xf32>
    %39 = tpu.matmul %35, %38, %cst_47 {dimension_numbers = #tpu.dot_dimension_numbers<[1], [0], [0], [1], [0, 0, 1, 1], [], []>} : vector<288x4xbf16>, vector<4x128xbf16>, vector<288x128xf32> -> vector<288x128xf32>
    %40 = arith.addf %36, %39 : vector<288x128xf32>
    %c0_48 = arith.constant 0 : index
    %c0_49 = arith.constant 0 : index
    %41 = vector.load %arg5[%c0_48, %c0_49] : memref<288x128xf32, #tpu.memory_space<vmem>>, vector<288x128xf32>
    tpu.vector_store %arg5[%c0_48, %c0_49], %40 {strides = array<i32>} : memref<288x128xf32, #tpu.memory_space<vmem>>, vector<288x128xf32>,
    %c0_50 = arith.constant 0 : index
    %c20 = arith.constant 20 : index
    %c0_51 = arith.constant 0 : index
    %42 = vector.load %arg1[%c0_50, %c20, %c0_51] : memref<1x326x4xbf16, #tpu.memory_space<vmem>>, vector<1x288x4xbf16>
    %43 = vector.shape_cast %42 : vector<1x288x4xbf16> to vector<288x4xbf16>
    %c0_52 = arith.constant 0 : index
    %c0_53 = arith.constant 0 : index
    %44 = vector.load %arg5[%c0_52, %c0_53] : memref<288x128xf32, #tpu.memory_space<vmem>>, vector<288x128xf32>
    %c5 = arith.constant 5 : index
    %c0_54 = arith.constant 0 : index
    %c0_55 = arith.constant 0 : index
    %45 = vector.load %arg2[%c5, %c0_54, %c0_55] : memref<9x4x128xbf16, #tpu.memory_space<vmem>>, vector<1x4x128xbf16>
    %46 = vector.shape_cast %45 : vector<1x4x128xbf16> to vector<4x128xbf16>
    %cst_56 = arith.constant dense<0.000000e+00> : vector<288x128xf32>
    %47 = tpu.matmul %43, %46, %cst_56 {dimension_numbers = #tpu.dot_dimension_numbers<[1], [0], [0], [1], [0, 0, 1, 1], [], []>} : vector<288x4xbf16>, vector<4x128xbf16>, vector<288x128xf32> -> vector<288x128xf32>
    %48 = arith.addf %44, %47 : vector<288x128xf32>
    %c0_57 = arith.constant 0 : index
    %c0_58 = arith.constant 0 : index
    %49 = vector.load %arg5[%c0_57, %c0_58] : memref<288x128xf32, #tpu.memory_space<vmem>>, vector<288x128xf32>
    tpu.vector_store %arg5[%c0_57, %c0_58], %48 {strides = array<i32>} : memref<288x128xf32, #tpu.memory_space<vmem>>, vector<288x128xf32>,
    %c0_59 = arith.constant 0 : index
    %c36 = arith.constant 36 : index
    %c0_60 = arith.constant 0 : index
    %50 = vector.load %arg1[%c0_59, %c36, %c0_60] : memref<1x326x4xbf16, #tpu.memory_space<vmem>>, vector<1x288x4xbf16>
    %51 = vector.shape_cast %50 : vector<1x288x4xbf16> to vector<288x4xbf16>
    %c0_61 = arith.constant 0 : index
    %c0_62 = arith.constant 0 : index
    %52 = vector.load %arg5[%c0_61, %c0_62] : memref<288x128xf32, #tpu.memory_space<vmem>>, vector<288x128xf32>
    %c6 = arith.constant 6 : index
    %c0_63 = arith.constant 0 : index
    %c0_64 = arith.constant 0 : index
    %53 = vector.load %arg2[%c6, %c0_63, %c0_64] : memref<9x4x128xbf16, #tpu.memory_space<vmem>>, vector<1x4x128xbf16>
    %54 = vector.shape_cast %53 : vector<1x4x128xbf16> to vector<4x128xbf16>
    %cst_65 = arith.constant dense<0.000000e+00> : vector<288x128xf32>
    %55 = tpu.matmul %51, %54, %cst_65 {dimension_numbers = #tpu.dot_dimension_numbers<[1], [0], [0], [1], [0, 0, 1, 1], [], []>} : vector<288x4xbf16>, vector<4x128xbf16>, vector<288x128xf32> -> vector<288x128xf32>
    %56 = arith.addf %52, %55 : vector<288x128xf32>
    %c0_66 = arith.constant 0 : index
    %c0_67 = arith.constant 0 : index
    %57 = vector.load %arg5[%c0_66, %c0_67] : memref<288x128xf32, #tpu.memory_space<vmem>>, vector<288x128xf32>
    tpu.vector_store %arg5[%c0_66, %c0_67], %56 {strides = array<i32>} : memref<288x128xf32, #tpu.memory_space<vmem>>, vector<288x128xf32>,
    %c0_68 = arith.constant 0 : index
    %c37 = arith.constant 37 : index
    %c0_69 = arith.constant 0 : index
    %58 = vector.load %arg1[%c0_68, %c37, %c0_69] : memref<1x326x4xbf16, #tpu.memory_space<vmem>>, vector<1x288x4xbf16>
    %59 = vector.shape_cast %58 : vector<1x288x4xbf16> to vector<288x4xbf16>
    %c0_70 = arith.constant 0 : index
    %c0_71 = arith.constant 0 : index
    %60 = vector.load %arg5[%c0_70, %c0_71] : memref<288x128xf32, #tpu.memory_space<vmem>>, vector<288x128xf32>
    %c7 = arith.constant 7 : index
    %c0_72 = arith.constant 0 : index
    %c0_73 = arith.constant 0 : index
    %61 = vector.load %arg2[%c7, %c0_72, %c0_73] : memref<9x4x128xbf16, #tpu.memory_space<vmem>>, vector<1x4x128xbf16>
    %62 = vector.shape_cast %61 : vector<1x4x128xbf16> to vector<4x128xbf16>
    %cst_74 = arith.constant dense<0.000000e+00> : vector<288x128xf32>
    %63 = tpu.matmul %59, %62, %cst_74 {dimension_numbers = #tpu.dot_dimension_numbers<[1], [0], [0], [1], [0, 0, 1, 1], [], []>} : vector<288x4xbf16>, vector<4x128xbf16>, vector<288x128xf32> -> vector<288x128xf32>
    %64 = arith.addf %60, %63 : vector<288x128xf32>
    %c0_75 = arith.constant 0 : index
    %c0_76 = arith.constant 0 : index
    %65 = vector.load %arg5[%c0_75, %c0_76] : memref<288x128xf32, #tpu.memory_space<vmem>>, vector<288x128xf32>
    tpu.vector_store %arg5[%c0_75, %c0_76], %64 {strides = array<i32>} : memref<288x128xf32, #tpu.memory_space<vmem>>, vector<288x128xf32>,
    %c0_77 = arith.constant 0 : index
    %c38 = arith.constant 38 : index
    %c0_78 = arith.constant 0 : index
    %66 = vector.load %arg1[%c0_77, %c38, %c0_78] : memref<1x326x4xbf16, #tpu.memory_space<vmem>>, vector<1x288x4xbf16>
    %67 = vector.shape_cast %66 : vector<1x288x4xbf16> to vector<288x4xbf16>
    %c0_79 = arith.constant 0 : index
    %c0_80 = arith.constant 0 : index
    %68 = vector.load %arg5[%c0_79, %c0_80] : memref<288x128xf32, #tpu.memory_space<vmem>>, vector<288x128xf32>
    %c8 = arith.constant 8 : index
    %c0_81 = arith.constant 0 : index
    %c0_82 = arith.constant 0 : index
    %69 = vector.load %arg2[%c8, %c0_81, %c0_82] : memref<9x4x128xbf16, #tpu.memory_space<vmem>>, vector<1x4x128xbf16>
    %70 = vector.shape_cast %69 : vector<1x4x128xbf16> to vector<4x128xbf16>
    %cst_83 = arith.constant dense<0.000000e+00> : vector<288x128xf32>
    %71 = tpu.matmul %67, %70, %cst_83 {dimension_numbers = #tpu.dot_dimension_numbers<[1], [0], [0], [1], [0, 0, 1, 1], [], []>} : vector<288x4xbf16>, vector<4x128xbf16>, vector<288x128xf32> -> vector<288x128xf32>
    %72 = arith.addf %68, %71 : vector<288x128xf32>
    %c0_84 = arith.constant 0 : index
    %c0_85 = arith.constant 0 : index
    %73 = vector.load %arg5[%c0_84, %c0_85] : memref<288x128xf32, #tpu.memory_space<vmem>>, vector<288x128xf32>
    tpu.vector_store %arg5[%c0_84, %c0_85], %72 {strides = array<i32>} : memref<288x128xf32, #tpu.memory_space<vmem>>, vector<288x128xf32>,
    %c0_86 = arith.constant 0 : index
    %c0_87 = arith.constant 0 : index
    %74 = vector.load %arg5[%c0_86, %c0_87] : memref<288x128xf32, #tpu.memory_space<vmem>>, vector<288x128xf32>
    %c0_88 = arith.constant 0 : index
    %c0_89 = arith.constant 0 : index
    %c0_90 = arith.constant 0 : index
    %75 = vector.load %arg3[%c0_88, %c0_89, %c0_90] : memref<1x288x128xf32, #tpu.memory_space<vmem>>, vector<1x288x128xf32>
    %76 = vector.shape_cast %75 : vector<1x288x128xf32> to vector<288x128xf32>
    %77 = vector.shape_cast %74 : vector<288x128xf32> to vector<1x288x128xf32>
    tpu.vector_store %arg3[%c0_88, %c0_89, %c0_90], %77 {strides = array<i32>} : memref<1x288x128xf32, #tpu.memory_space<vmem>>, vector<1x288x128xf32>,
    %78 = tpu.iota {dimensions = array<i32: 0>} : vector<288x1xi32>
    %c18_i32 = arith.constant 18 : i32
    %c0_i32 = arith.constant 0 : i32
    %79 = arith.cmpi eq, %c18_i32, %c0_i32 : i32
    %c1_i32 = arith.constant 1 : i32
    %80 = arith.select %79, %c1_i32, %c18_i32 : i32
    %81 = vector.broadcast %80 : i32 to vector<288x1xi32>
    %82 = arith.remsi %78, %81 : vector<288x1xi32>
    %c0_i32_91 = arith.constant 0 : i32
    %83 = vector.broadcast %c0_i32_91 : i32 to vector<288x1xi32>
    %84 = arith.cmpi ne, %82, %83 : vector<288x1xi32>
    %c0_i32_92 = arith.constant 0 : i32
    %85 = vector.broadcast %c0_i32_92 : i32 to vector<288x1xi32>
    %86 = arith.cmpi slt, %82, %85 : vector<288x1xi32>
    %c0_i32_93 = arith.constant 0 : i32
    %87 = arith.cmpi slt, %80, %c0_i32_93 : i32
    %88 = vector.broadcast %87 : i1 to vector<288x1xi1>
    %89 = vector.broadcast %88 : vector<288x1xi1> to vector<288x1xi1>
    %90 = arith.xori %86, %89 : vector<288x1xi1>
    %91 = arith.andi %90, %84 : vector<288x1xi1>
    %92 = vector.broadcast %80 : i32 to vector<288x1xi32>
    %93 = arith.addi %82, %92 : vector<288x1xi32>
    %94 = arith.select %91, %93, %82 : vector<288x1xi1>, vector<288x1xi32>
    %c16_i32 = arith.constant 16 : i32
    %95 = vector.broadcast %c16_i32 : i32 to vector<288x1xi32>
    %96 = arith.cmpi slt, %94, %95 : vector<288x1xi32>
    %97 = arith.extui %96 : vector<288x1xi1> to vector<288x1xi32>
    %98 = arith.sitofp %97 : vector<288x1xi32> to vector<288x1xf32>
    %99 = vector.broadcast %98 : vector<288x1xf32> to vector<288x128xf32>
    %100 = arith.mulf %74, %99 : vector<288x128xf32>
    %cst_94 = arith.constant dense<0.000000e+00> : vector<128xf32>
    %101 = vector.multi_reduction <add>, %100, %cst_94 [0] : vector<288x128xf32> to vector<128xf32>
    %102 = vector.shape_cast %101 : vector<128xf32> to vector<1x128xf32>
    %cst_95 = arith.constant 3.906250e-03 : f32
    %103 = vector.broadcast %cst_95 : f32 to vector<1x128xf32>
    %104 = arith.mulf %102, %103 : vector<1x128xf32>
    %105 = vector.broadcast %104 : vector<1x128xf32> to vector<288x128xf32>
    %106 = arith.subf %74, %105 : vector<288x128xf32>
    %107 = vector.broadcast %98 : vector<288x1xf32> to vector<288x128xf32>
    %108 = arith.mulf %106, %107 : vector<288x128xf32>
    %109 = arith.mulf %108, %108 : vector<288x128xf32>
    %cst_96 = arith.constant dense<0.000000e+00> : vector<128xf32>
    %110 = vector.multi_reduction <add>, %109, %cst_96 [0] : vector<288x128xf32> to vector<128xf32>
    %111 = vector.shape_cast %110 : vector<128xf32> to vector<1x128xf32>
    %c0_97 = arith.constant 0 : index
    %c0_98 = arith.constant 0 : index
    %c0_99 = arith.constant 0 : index
    %112 = vector.load %arg4[%c0_97, %c0_98, %c0_99] : memref<1x2x128xf32, #tpu.memory_space<vmem>>, vector<1x1x128xf32>
    %113 = vector.shape_cast %112 : vector<1x1x128xf32> to vector<1x128xf32>
    %114 = vector.shape_cast %104 : vector<1x128xf32> to vector<1x1x128xf32>
    tpu.vector_store %arg4[%c0_97, %c0_98, %c0_99], %114 {strides = array<i32>} : memref<1x2x128xf32, #tpu.memory_space<vmem>>, vector<1x1x128xf32>,
    %c0_100 = arith.constant 0 : index
    %c1_101 = arith.constant 1 : index
    %c0_102 = arith.constant 0 : index
    %115 = vector.load %arg4[%c0_100, %c1_101, %c0_102] : memref<1x2x128xf32, #tpu.memory_space<vmem>>, vector<1x1x128xf32>
    %116 = vector.shape_cast %115 : vector<1x1x128xf32> to vector<1x128xf32>
    %117 = vector.shape_cast %111 : vector<1x128xf32> to vector<1x1x128xf32>
    tpu.vector_store %arg4[%c0_100, %c1_101, %c0_102], %117 {strides = array<i32>} : memref<1x2x128xf32, #tpu.memory_space<vmem>>, vector<1x1x128xf32>,
    return
  }
  func.func @transform_0(%arg0: i32) -> (i32, i32, i32) {
    %c0_i32 = arith.constant 0 : i32
    %c0_i32_0 = arith.constant 0 : i32
    %c0_i32_1 = arith.constant 0 : i32
    return %arg0, %c0_i32, %c0_i32_0 : i32, i32, i32
  }
  func.func @transform_1(%arg0: i32) -> (i32, i32, i32) {
    %c0_i32 = arith.constant 0 : i32
    %c0_i32_0 = arith.constant 0 : i32
    %c0_i32_1 = arith.constant 0 : i32
    %c0_i32_2 = arith.constant 0 : i32
    return %c0_i32, %c0_i32_0, %c0_i32_1 : i32, i32, i32
  }
  func.func @transform_2(%arg0: i32) -> (i32, i32, i32) {
    %c0_i32 = arith.constant 0 : i32
    %c0_i32_0 = arith.constant 0 : i32
    %c0_i32_1 = arith.constant 0 : i32
    return %arg0, %c0_i32, %c0_i32_0 : i32, i32, i32
  }
  func.func @transform_3(%arg0: i32) -> (i32, i32, i32) {
    %c0_i32 = arith.constant 0 : i32
    %c0_i32_0 = arith.constant 0 : i32
    %c0_i32_1 = arith.constant 0 : i32
    return %arg0, %c0_i32, %c0_i32_0 : i32, i32, i32
  }
}

module attributes {stable_mosaic.version = 11 : i64} {
  func.func @norm_kernel(%arg0: i32, %arg1: i32, %arg2: memref<1x288x128xf32, #tpu.memory_space<vmem>>, %arg3: memref<2x128xf32, #tpu.memory_space<vmem>>, %arg4: memref<1x288x128xf32, #tpu.memory_space<vmem>>) attributes {dimension_semantics = [#tpu.dimension_semantics<parallel>, #tpu.dimension_semantics<parallel>], iteration_bounds = array<i64: 2, 1>, scalar_prefetch = 0 : i64, scratch_operands = 0 : i64, tpu.core_type = #tpu.core_type<tc>, window_params = [{transform_indices = @transform_0, window_bounds = array<i64: 1, 288, 128>}, {pipeline_mode = #tpu.pipeline_mode<synchronous>, transform_indices = @transform_1, window_bounds = array<i64: 2, 128>}, {transform_indices = @transform_2, window_bounds = array<i64: 1, 288, 128>}]} {
    %c0 = arith.constant 0 : index
    %c0_0 = arith.constant 0 : index
    %c0_1 = arith.constant 0 : index
    %0 = vector.load %arg2[%c0, %c0_0, %c0_1] : memref<1x288x128xf32, #tpu.memory_space<vmem>>, vector<1x288x128xf32>
    %c0_2 = arith.constant 0 : index
    %c0_3 = arith.constant 0 : index
    %1 = vector.load %arg3[%c0_2, %c0_3] : memref<2x128xf32, #tpu.memory_space<vmem>>, vector<1x128xf32>
    %2 = vector.shape_cast %1 : vector<1x128xf32> to vector<1x1x128xf32>
    %3 = vector.broadcast %2 : vector<1x1x128xf32> to vector<1x288x128xf32>
    %4 = arith.mulf %0, %3 : vector<1x288x128xf32>
    %c1 = arith.constant 1 : index
    %c0_4 = arith.constant 0 : index
    %5 = vector.load %arg3[%c1, %c0_4] : memref<2x128xf32, #tpu.memory_space<vmem>>, vector<1x128xf32>
    %6 = vector.shape_cast %5 : vector<1x128xf32> to vector<1x1x128xf32>
    %7 = vector.broadcast %6 : vector<1x1x128xf32> to vector<1x288x128xf32>
    %8 = arith.addf %4, %7 : vector<1x288x128xf32>
    %cst = arith.constant 0.000000e+00 : f32
    %9 = vector.broadcast %cst : f32 to vector<1x288x128xf32>
    %10 = arith.cmpf ogt, %8, %9 : vector<1x288x128xf32>
    %cst_5 = arith.constant 1.000000e-01 : f32
    %11 = vector.broadcast %cst_5 : f32 to vector<1x288x128xf32>
    %12 = arith.mulf %11, %8 : vector<1x288x128xf32>
    %13 = arith.select %10, %8, %12 : vector<1x288x128xi1>, vector<1x288x128xf32>
    %c0_6 = arith.constant 0 : index
    %c0_7 = arith.constant 0 : index
    %c0_8 = arith.constant 0 : index
    %14 = vector.load %arg4[%c0_6, %c0_7, %c0_8] : memref<1x288x128xf32, #tpu.memory_space<vmem>>, vector<1x288x128xf32>
    tpu.vector_store %arg4[%c0_6, %c0_7, %c0_8], %13 {strides = array<i32>} : memref<1x288x128xf32, #tpu.memory_space<vmem>>, vector<1x288x128xf32>,
    return
  }
  func.func @transform_0(%arg0: i32, %arg1: i32) -> (i32, i32, i32) {
    %c0_i32 = arith.constant 0 : i32
    %c0_i32_0 = arith.constant 0 : i32
    return %arg0, %arg1, %c0_i32 : i32, i32, i32
  }
  func.func @transform_1(%arg0: i32, %arg1: i32) -> (i32, i32) {
    %c0_i32 = arith.constant 0 : i32
    %c0_i32_0 = arith.constant 0 : i32
    %c0_i32_1 = arith.constant 0 : i32
    return %c0_i32, %c0_i32_0 : i32, i32
  }
  func.func @transform_2(%arg0: i32, %arg1: i32) -> (i32, i32, i32) {
    %c0_i32 = arith.constant 0 : i32
    %c0_i32_0 = arith.constant 0 : i32
    return %arg0, %arg1, %c0_i32 : i32, i32, i32
  }
}

</mosaic_0001>

<bundles_post_ra>
// kernel: cnn_block_forward.3
= control target key start
LH: loop header
LB: loop body
LE: loop exit
PB: predicated region body
PF: predicated region fallthrough
CT: control target
= control target key end

     0   :  { %7 = vsyncpa [#allocation3], 0  ;;  %s1214_s0 = inlined_call_operand.hbm [shape: f32[2,288,128], index: 0, kind: input, shape index: {}]   ;;  %s1215_s1 = inlined_call_operand.hbm [shape: f32[2,128], index: 1, kind: input, shape index: {}]   ;;  %s1216_s2 = inlined_call_operand.hbm [shape: f32[2,288,128], index: 2, kind: output, shape index: {}]  }
   0x1   :  { %9 = vsyncpa [#allocation3 + $0x1], 0 }
   0x2   :  { %10 = vsyncpa [#allocation6], 0 }
   0x3   :  { %11 = vsyncpa [#allocation4], 0 }
   0x4   :  { %13 = vsyncpa [#allocation4 + $0x1], 0  ;;  %s832_s9 = smov 0   ;;  %s834_s10 = smov 0  }
   0x5   :  { %s836_s11 = smov 0   ;;  %s838_s12 = smov 0  }
   0x6   :  { %s840_s13 = smov 0   ;;  %s842_s14 = smov 0  }
   0x7 LB: > { %s570_s15 = sadd.s32 4294967295, %s808_s14   ;;  %s571_s16 = sadd.s32 4294967294, %s808_s14   ;;  %s808_s14 = sphi %s842_s14, %s19_s14   ;;  %s804_s13 = sphi %s840_s13, %s1244_s13   ;;  %s800_s12 = sphi %s838_s12, %s1243_s12   ;;  %s796_s11 = sphi %s836_s11, %s1242_s11   ;;  %s792_s10 = sphi %s834_s10, %s1241_s10   ;;  %s788_s9 = sphi %s832_s9, %s1240_s9  }
   0x8   : > { %s40_s17 = sadd.s32 1, %s796_s11  ;;  %p47_p0 = scmp.ne.s32.totalorder %s796_s11, %s792_s10 }
   0x9   : > { %p48_p1 = scmp.eq.s32.totalorder %s808_s14, 0  ;;  %p53_p2 = scmp.ne.s32.totalorder %s792_s10, %s788_s9 }
   0xa   : > { %p870_p3 = scmp.eq.s32.totalorder %s570_s15, 0  ;;  %p100_p4 = scmp.eq.s32.totalorder %s570_s15, 1 }
   0xb   : > { %p874_p5 = por %p48_p1, %p47_p0  ;;  %p106_p6 = scmp.eq.s32.totalorder %s571_s16, 1 }
   0xc   : > { %s1223_s18 = scalar_select %p870_p3, 1, 0 }
   0xd   : > { %p880_p7 = por %p870_p3, %p53_p2  ;;  %p884_p8 = por %p100_p4, %p47_p0 }
   0xe   : > { %p888_p9 = por %p106_p6, %p53_p2  ;;  %p572_p10 = scmp.ge.s32.totalorder %s808_s14, 1 }
   0xf   : > { %s1225_s20 = scalar_select %p880_p7, 1, 0 }
  0x10   : > { %s1226_s21 = scalar_select %p884_p8, 1, 0 }
  0x11   : > { %s1227_s22 = scalar_select %p888_p9, 1, 0 }
  0x12   : > { %p113_p11 = scmp.lt.s32.totalorder %s808_s14, 3  ;;  %s810_s24 = smov [#allocation5]  }
  0x13   : > { %s126_s25 = sshll.u32 %s810_s24, 4  ;;  %p608_p1 = scmp.lt.s32.totalorder %s808_s14, 2  ;;  %s127_s25 = int_to_ptr.vmem [resolvable:$true] %s126_s25 }
  0x14   : > { %p895_p13 = pnand %p572_p10, %p113_p11  ;;  %s31_s28 = sadd.s32 1, %s804_s13 }
  0x15   : > { %p904_p4 = pnand %p608_p1, %p874_p5  ;;  %p915_p6 = scmp.ge.s32.totalorder %s31_s28, 2 }
  0x16   : > { %s1228_s23 = scalar_select %p895_p13, 1, 0 }
  0x17   : > { %p595_p0 = pneg %p895_p13  ;;  %s137_s30 = sand.u32 1, %s796_s11  }
  0x18   : > { %s1229_s26 = scalar_select %p904_p4, 1, 0 }
  0x19   : > { %p910_p2 = pnand %p595_p0, %p870_p3  ;;  %s664_s5 = scalar_lea.hbm %s1215_s1, 32 }
  0x1a   : > { %s1231_s29 = scalar_select %p915_p6, 1, 0 }
  0x1b   : > { %p665_p5 = scmp.ne.s32.totalorder %s1215_s1, %s664_s5  ;;  %p666_p10 = pneg %p910_p2 }
  0x1c   : > { %p671_p0 = scmp.lt.u32.totalorder %s664_s5, %s1215_s1 }
  0x1d   : > { %p667_p11 = pnand %p666_p10, %p665_p5 }
  0x1f   : > { %p668_p1 = pneg %p667_p11 }
  0x21   : > { %p673_p12 = pnand %p671_p0, %p668_p1 }
  0x23   : > { %676 = shalt.err (!%p673_p12)
}
  0x24   : > { %s677_s16 = scalar_lea.vmem %s127_s25, 32  ;;  %p685_p7 = scmp.lt.s32.totalorder %s127_s25, %s127_s25 }
  0x25   : > { %p678_p9 = scmp.ne.s32.totalorder %s127_s25, %s677_s16  ;;  %p686_p13 = scmp.lt.s32.totalorder %s677_s16, %s677_s16 }
  0x27   : > { %p680_p8 = pnand %p678_p9, %p666_p10  ;;  %p687_p4 = por %p686_p13, %p685_p7 }
  0x29   : > { %p681_p3 = pneg %p680_p8 }
  0x2b   : > { %p688_p6 = pnand %p687_p4, %p681_p3 }
  0x2d   : > { %691 = shalt.err (!%p688_p6)
}
  0x2e   : > { %598 = dma.hbm_to_vmem [thread:$0]  (!%p910_p2), %s1215_s1, 32, %s127_s25, [#allocation6]  }
  0x2f   : > { %p1232_p9 = scmp.ne.s32.totalorder %s1231_s29, 0  ;;  %s583_s3 = smul.u32 288, %s137_s30 }
  0x30   : > { %s584_s5 = smul.u32 4608, %s804_s13  ;;  %s955_s29 = scalar_lea.sflag [#allocation3], %s137_s30 }
  0x31   : > { %s1246_s28 = smov (%p1232_p9, %s31_s28), 0  ;;  %s141_s8 = scalar_lea.vmem [#allocation2], %s583_s3 }
  0x32   : > { %s35_s4 = ssub.s32 %s804_s13, %s1246_s28  ;;  %s946_s7 = scalar_lea.hbm %s1214_s0, %s584_s5 }
  0x33   : > { %p38_p3 = scmp.eq.s32.totalorder %s35_s4, 0  ;;  %s150_s15 = sshll.u32 %s141_s8, 4  ;;  %s953_s15 = int_to_ptr.vmem [resolvable:$true] %s150_s15 }
  0x34   : > { %s692_s16 = scalar_lea.hbm %s946_s7, 4608  ;;  %p1233_p8 = scmp.ne.s32.totalorder %s1229_s26, 0 }
  0x35   : > { %s951_s25 = scalar_select %p38_p3, %s796_s11, %s40_s17  }
  0x36   : > { %p693_p7 = scmp.ne.s32.totalorder %s946_s7, %s692_s16  ;;  %p694_p12 = pneg %p1233_p8 }
  0x37   : > { %s697_s3 = scalar_lea.hbm %s1214_s0, 9216  ;;  %p698_p2 = scmp.lt.u32.totalorder %s946_s7, %s1214_s0 }
  0x38   : > { %p695_p13 = pnand %p694_p12, %p693_p7  ;;  %p699_p6 = scmp.lt.u32.totalorder %s697_s3, %s692_s16 }
  0x39   : > { %p701_p10 = scmp.lt.u32.totalorder %s692_s16, %s946_s7 }
  0x3a   : > { %p696_p4 = pneg %p695_p13  ;;  %p700_p5 = por %p699_p6, %p698_p2 }
  0x3c   : > { %p702_p11 = por %p701_p10, %p700_p5 }
  0x3e   : > { %p703_p1 = pnand %p702_p11, %p696_p4 }
  0x40   : > { %706 = shalt.err (!%p703_p1)
}
  0x41   : > { %s707_s17 = scalar_lea.vmem %s953_s15, 4608  ;;  %s811_s30 = smov [#allocation2]  }
  0x42   : > { %p708_p0 = scmp.ne.s32.totalorder %s953_s15, %s707_s17  ;;  %s712_s27 = sshll.u32 %s811_s30, 4  ;;  %s713_s27 = int_to_ptr.vmem [resolvable:$false] %s712_s27 }
  0x43   : > { %s714_s6 = scalar_lea.vmem %s713_s27, 9216  ;;  %p715_p7 = scmp.lt.s32.totalorder %s953_s15, %s713_s27 }
  0x44   : > { %p710_p9 = pnand %p708_p0, %p694_p12  ;;  %p716_p13 = scmp.lt.s32.totalorder %s714_s6, %s707_s17 }
  0x46   : > { %p711_p3 = pneg %p710_p9  ;;  %p717_p2 = por %p716_p13, %p715_p7 }
  0x48   : > { %p718_p6 = pnand %p717_p2, %p711_p3 }
  0x4a   : > { %721 = shalt.err (!%p718_p6)
}
  0x4b   : > { %s812_s8 = smov 128   ;;  %s813_s16 = smov 8  }
  0x4c   : > { %602 = dma.hbm_to_vmem [thread:$0]  (!%p1233_p8), %s946_s7, 4608, %s953_s15, %s955_s29, %s812_s8, %s812_s8, %s813_s16  }
  0x4d   : > { %p1234_p12 = scmp.ne.s32.totalorder %s1228_s23, 0 }
  0x4e   : > { %s986_s19 = sand.u32 (!%p1234_p12), 1, %s792_s10   ;;  %p1235_p4 = scmp.ne.s32.totalorder (!%p1234_p12), %s1225_s20, 0 }
  0x4f   : > { %162 = sbr.rel (%p1234_p12) target bundleno = 156 (0x9c), region = 28  ;;  %s165_s3 = scalar_lea.sflag (!%p1234_p12), [#allocation3], %s986_s19 }
  0x50   : > { %s585_s24 = smul.u32 (!%p1234_p12), 288, %s986_s19 }
  0x52   : > { %s992_s4 = scalar_lea.vmem (!%p1234_p12), [#allocation2], %s585_s24 }
  0x56   : > { %775 = dma.done.wait (%p1235_p4), %s165_s3, 4608  }
  0x57   : > { %777 = vsyncadd (%p1235_p4), %s165_s3, 4294962688  ;;  %p1236_p8 = scmp.ne.s32.totalorder %s1223_s18, 0 }
  0x59   : > { %779 = dma.done.wait (%p1236_p8), [#allocation6], 32  }
  0x5a   : > { %781 = vsyncadd (%p1236_p8), [#allocation6], 4294967264  ;;  %v195_v0 = vld [vmem:[%s992_s4] sm:$0xff]  ;;  %v196_v4 = vld [vmem:[%s992_s4 + $0x8] sm:$0xff]  ;;  %s1033_s18 = scalar_lea.vmem [#allocation7], %s585_s24  ;;  %s586_s20 = smul.u32 4608, %s800_s12 }
  0x5b   : > { %v1003_v1 = vld [vmem:[#allocation5] ss:$0 sm:$0xff]  ;;  %v1005_v2 = vld [vmem:[#allocation5 + $0x1] ss:$0 sm:$0xff]  ;;  %v197_v5 = vld [vmem:[%s992_s4 + $0x10] sm:$0xff]  ;;  %s473_s23 = sshll.u32 %s1033_s18, 4  ;;  %s1158_s23 = int_to_ptr.vmem [resolvable:$true] %s473_s23 }
  0x5c   : > { %v236_v3 = vmul.f32 %v1003_v1, %v195_v0  ;;  %v198_v6 = vld [vmem:[%s992_s4 + $0x18] sm:$0xff]  ;;  %v237_v7 = vmul.f32 %v1003_v1, %v196_v4  ;;  %v238_v8 = vmul.f32 %v1003_v1, %v197_v5  ;;  %v199_v10 = vld [vmem:[%s992_s4 + $0x20] sm:$0xff]  ;;  %v200_v11 = vld [vmem:[%s992_s4 + $0x28] sm:$0xff]  ;;  %s1164_s7 = scalar_lea.hbm %s1216_s2, %s586_s20  ;;  %s458_s15 = scalar_lea.sflag [#allocation4], %s986_s19 }
  0x5d   : > { %v239_v9 = vmul.f32 %v1003_v1, %v198_v6  ;;  %v201_v12 = vld [vmem:[%s992_s4 + $0x30] sm:$0xff]  ;;  %v240_v14 = vmul.f32 %v1003_v1, %v199_v10  ;;  %v241_v15 = vmul.f32 %v1003_v1, %v200_v11  ;;  %v202_v17 = vld [vmem:[%s992_s4 + $0x38] sm:$0xff]  ;;  %v203_v25 = vld [vmem:[%s992_s4 + $0x40] sm:$0xff]  ;;  %s722_s29 = scalar_lea.vmem %s1158_s23, 4608  ;;  %p1237_p10 = scmp.ne.s32.totalorder %s1226_s21, 0 }
  0x5e   : > { %v277_v13 = vadd.f32 %v1005_v2, %v236_v3  ;;  %v242_v16 = vmul.f32 %v1003_v1, %v201_v12  ;;  %v278_v18 = vadd.f32 %v1005_v2, %v237_v7  ;;  %v279_v19 = vadd.f32 %v1005_v2, %v238_v8  ;;  %v204_v30 = vld [vmem:[%s992_s4 + $0x48] sm:$0xff]  ;;  %v205_v31 = vld [vmem:[%s992_s4 + $0x50] sm:$0xff]  ;;  %v206_v43 = vld [vmem:[%s992_s4 + $0x58] sm:$0xff]  ;;  %p723_p5 = scmp.ne.s32.totalorder %s1158_s23, %s722_s29  ;;  %s814_s5 = smov [#allocation7]  }
  0x5f   : > { %v280_v20 = vadd.f32 %v1005_v2, %v239_v9  ;;  %v243_v21 = vmul.f32 %v1003_v1, %v202_v17  ;;  %v281_v23 = vadd.f32 %v1005_v2, %v240_v14  ;;  %v282_v24 = vadd.f32 %v1005_v2, %v241_v15  ;;  %v207_v44 = vld [vmem:[%s992_s4 + $0x60] sm:$0xff]  ;;  %v208_v45 = vld [vmem:[%s992_s4 + $0x68] sm:$0xff]  ;;  %v209_v56 = vld [vmem:[%s992_s4 + $0x70] sm:$0xff]  ;;  %s726_s17 = sshll.u32 %s814_s5, 4  ;;  %s727_s17 = int_to_ptr.vmem [resolvable:$false] %s726_s17 }
  0x60   : > { %vm313_vm0 = vcmp.gt.f32.partialorder %v277_v13, 0.0  ;;  %v349_v22 = vmul.f32 0.1, %v277_v13  ;;  %vm314_vm1 = vcmp.gt.f32.partialorder %v278_v18, 0.0  ;;  %v350_v26 = vmul.f32 0.1, %v278_v18  ;;  %p724_p11 = pnand %p723_p5, %p1237_p10  ;;  %p729_p0 = scmp.lt.s32.totalorder %s1158_s23, %s727_s17 }
  0x61   : > { %vm315_vm2 = vcmp.gt.f32.partialorder %v279_v19, 0.0  ;;  %v351_v27 = vmul.f32 0.1, %v279_v19  ;;  %vm316_vm3 = vcmp.gt.f32.partialorder %v280_v20, 0.0  ;;  %v352_v29 = vmul.f32 0.1, %v280_v20 }
  0x62   : > { %v385_v28 = vsel %vm313_vm0, %v277_v13, %v349_v22  ;;  %vm317_vm4 = vcmp.gt.f32.partialorder %v281_v23, 0.0  ;;  %v386_v32 = vsel %vm314_vm1, %v278_v18, %v350_v26  ;;  %v353_v34 = vmul.f32 0.1, %v281_v23  ;;  %v210_v4 = vld [vmem:[%s992_s4 + $0x78] sm:$0xff]  ;;  %v211_v5 = vld [vmem:[%s992_s4 + $0x80] sm:$0xff]  ;;  %v212_v9 = vld [vmem:[%s992_s4 + $0x88] sm:$0xff]  ;;  %p725_p1 = pneg %p724_p11 }
  0x63   : > { %421 = vst [vmem:[%s1033_s18] sm:$0xff] %v385_v28  ;;  %v387_v33 = vsel %vm315_vm2, %v279_v19, %v351_v27  ;;  %vm318_vm5 = vcmp.gt.f32.partialorder %v282_v24, 0.0  ;;  %422 = vst [vmem:[%s1033_s18 + $0x8] sm:$0xff] %v386_v32  ;;  %v388_v35 = vsel %vm316_vm3, %v280_v20, %v352_v29  ;;  %v354_v36 = vmul.f32 0.1, %v282_v24  ;;  %v213_v10 = vld [vmem:[%s992_s4 + $0x90] sm:$0xff]  ;;  %v214_v17 = vld [vmem:[%s992_s4 + $0x98] sm:$0xff] }
  0x64   : > { %423 = vst [vmem:[%s1033_s18 + $0x10] sm:$0xff] %v387_v33  ;;  %v283_v37 = vadd.f32 %v1005_v2, %v242_v16  ;;  %v284_v38 = vadd.f32 %v1005_v2, %v243_v21  ;;  %424 = vst [vmem:[%s1033_s18 + $0x18] sm:$0xff] %v388_v35  ;;  %v389_v39 = vsel %vm317_vm4, %v281_v23, %v353_v34  ;;  %v215_v18 = vld [vmem:[%s992_s4 + $0xa0] sm:$0xff]  ;;  %v216_v32 = vld [vmem:[%s992_s4 + $0xa8] sm:$0xff]  ;;  %s728_s30 = scalar_lea.vmem %s727_s17, 9216 }
  0x65   : > { %v244_v40 = vmul.f32 %v1003_v1, %v203_v25  ;;  %v245_v41 = vmul.f32 %v1003_v1, %v204_v30  ;;  %v246_v42 = vmul.f32 %v1003_v1, %v205_v31  ;;  %425 = vst [vmem:[%s1033_s18 + $0x20] sm:$0xff] %v389_v39  ;;  %v390_v46 = vsel %vm318_vm5, %v282_v24, %v354_v36  ;;  %v217_v33 = vld [vmem:[%s992_s4 + $0xb0] sm:$0xff]  ;;  %p730_p9 = scmp.lt.s32.totalorder %s728_s30, %s722_s29 }
  0x66   : > { %vm319_vm6 = vcmp.gt.f32.partialorder %v283_v37, 0.0  ;;  %v355_v47 = vmul.f32 0.1, %v283_v37  ;;  %vm320_vm7 = vcmp.gt.f32.partialorder %v284_v38, 0.0  ;;  %426 = vst [vmem:[%s1033_s18 + $0x28] sm:$0xff] %v390_v46  ;;  %v247_v53 = vmul.f32 %v1003_v1, %v206_v43  ;;  %v220_v46 = vld [vmem:[%s992_s4 + $0xc8] sm:$0xff] }
  0x67   : > { %v356_v48 = vmul.f32 0.1, %v284_v38  ;;  %v285_v49 = vadd.f32 %v1005_v2, %v244_v40  ;;  %v286_v50 = vadd.f32 %v1005_v2, %v245_v41  ;;  %v287_v51 = vadd.f32 %v1005_v2, %v246_v42  ;;  %v218_v40 = vld [vmem:[%s992_s4 + $0xb8] sm:$0xff]  ;;  %p731_p3 = por %p730_p9, %p729_p0 }
  0x68   : > { %v391_v52 = vsel %vm319_vm6, %v283_v37, %v355_v47  ;;  %v248_v54 = vmul.f32 %v1003_v1, %v207_v44  ;;  %v249_v55 = vmul.f32 %v1003_v1, %v208_v45  ;;  %v288_v61 = vadd.f32 %v1005_v2, %v247_v53  ;;  %v219_v45 = vld [vmem:[%s992_s4 + $0xc0] sm:$0xff]  ;;  %v221_v47 = vld [vmem:[%s992_s4 + $0xd0] sm:$0xff] }
  0x69   : > { %427 = vst [vmem:[%s1033_s18 + $0x30] sm:$0xff] %v391_v52  ;;  %v392_v57 = vsel %vm320_vm7, %v284_v38, %v356_v48  ;;  %vm321_vm8 = vcmp.gt.f32.partialorder %v285_v49, 0.0  ;;  %v357_v58 = vmul.f32 0.1, %v285_v49  ;;  %vm322_vm9 = vcmp.gt.f32.partialorder %v286_v50, 0.0  ;;  %p732_p7 = pnand %p731_p3, %p725_p1 }
  0x6a   : > { %428 = vst [vmem:[%s1033_s18 + $0x38] sm:$0xff] %v392_v57  ;;  %v358_v59 = vmul.f32 0.1, %v286_v50  ;;  %vm323_vm10 = vcmp.gt.f32.partialorder %v287_v51, 0.0  ;;  %v359_v60 = vmul.f32 0.1, %v287_v51  ;;  %v289_v63 = vadd.f32 %v1005_v2, %v248_v54 }
  0x6b   : > { %v393_v62 = vsel %vm321_vm8, %v285_v49, %v357_v58  ;;  %v290_v0 = vadd.f32 %v1005_v2, %v249_v55  ;;  %v250_v3 = vmul.f32 %v1003_v1, %v209_v56  ;;  %vm324_vm11 = vcmp.gt.f32.partialorder %v288_v61, 0.0  ;;  %v222_v58 = vld [vmem:[%s992_s4 + $0xd8] sm:$0xff] }
  0x6c   : > { %429 = vst [vmem:[%s1033_s18 + $0x40] sm:$0xff] %v393_v62  ;;  %v394_v6 = vsel %vm322_vm9, %v286_v50, %v358_v59  ;;  %v395_v7 = vsel %vm323_vm10, %v287_v51, %v359_v60  ;;  %v360_v8 = vmul.f32 0.1, %v288_v61  ;;  %vm325_vm12 = vcmp.gt.f32.partialorder %v289_v63, 0.0  ;;  %v223_v59 = vld [vmem:[%s992_s4 + $0xe0] sm:$0xff] }
  0x6d   : > { %430 = vst [vmem:[%s1033_s18 + $0x48] sm:$0xff] %v394_v6  ;;  %431 = vst [vmem:[%s1033_s18 + $0x50] sm:$0xff] %v395_v7  ;;  %v361_v11 = vmul.f32 0.1, %v289_v63  ;;  %vm326_vm13 = vcmp.gt.f32.partialorder %v290_v0, 0.0  ;;  %v291_v14 = vadd.f32 %v1005_v2, %v250_v3  ;;  %v251_v15 = vmul.f32 %v1003_v1, %v210_v4 }
  0x6e   : > { %v362_v12 = vmul.f32 0.1, %v290_v0  ;;  %v396_v13 = vsel %vm324_vm11, %v288_v61, %v360_v8  ;;  %v252_v16 = vmul.f32 %v1003_v1, %v211_v5  ;;  %v253_v21 = vmul.f32 %v1003_v1, %v212_v9 }
  0x6f   : > { %432 = vst [vmem:[%s1033_s18 + $0x58] sm:$0xff] %v396_v13  ;;  %v397_v19 = vsel %vm325_vm12, %v289_v63, %v361_v11  ;;  %v254_v22 = vmul.f32 %v1003_v1, %v213_v10  ;;  %vm327_vm14 = vcmp.gt.f32.partialorder %v291_v14, 0.0  ;;  %v363_v23 = vmul.f32 0.1, %v291_v14  ;;  %v224_v10 = vld [vmem:[%s992_s4 + $0xe8] sm:$0xff]  ;;  %v225_v11 = vld [vmem:[%s992_s4 + $0xf0] sm:$0xff] }
  0x70   : > { %v398_v20 = vsel %vm326_vm13, %v290_v0, %v362_v12  ;;  %433 = vst [vmem:[%s1033_s18 + $0x60] sm:$0xff] %v397_v19  ;;  %v292_v24 = vadd.f32 %v1005_v2, %v251_v15  ;;  %v293_v25 = vadd.f32 %v1005_v2, %v252_v16  ;;  %v294_v26 = vadd.f32 %v1005_v2, %v253_v21 }
  0x71   : > { %434 = vst [vmem:[%s1033_s18 + $0x68] sm:$0xff] %v398_v20  ;;  %v295_v27 = vadd.f32 %v1005_v2, %v254_v22  ;;  %v255_v28 = vmul.f32 %v1003_v1, %v214_v17  ;;  %v256_v29 = vmul.f32 %v1003_v1, %v215_v18  ;;  %v399_v30 = vsel %vm327_vm14, %v291_v14, %v363_v23  ;;  %v226_v18 = vld [vmem:[%s992_s4 + $0xf8] sm:$0xff]  ;;  %v227_v23 = vld [vmem:[%s992_s4 + $0x100] sm:$0xff] }
  0x72   : > { %vm328_vm15 = vcmp.gt.f32.partialorder %v292_v24, 0.0  ;;  %v364_v31 = vmul.f32 0.1, %v292_v24  ;;  %vm329_vm0 = vcmp.gt.f32.partialorder %v293_v25, 0.0  ;;  %435 = vst [vmem:[%s1033_s18 + $0x70] sm:$0xff] %v399_v30  ;;  %vm330_vm1 = vcmp.gt.f32.partialorder %v294_v26, 0.0 }
  0x73   : > { %v365_v34 = vmul.f32 0.1, %v293_v25  ;;  %v366_v35 = vmul.f32 0.1, %v294_v26  ;;  %vm331_vm2 = vcmp.gt.f32.partialorder %v295_v27, 0.0  ;;  %v296_v38 = vadd.f32 %v1005_v2, %v255_v28 }
  0x74   : > { %v400_v36 = vsel %vm328_vm15, %v292_v24, %v364_v31  ;;  %v367_v37 = vmul.f32 0.1, %v295_v27  ;;  %v297_v39 = vadd.f32 %v1005_v2, %v256_v29  ;;  %v257_v43 = vmul.f32 %v1003_v1, %v216_v32  ;;  %v228_v24 = vld [vmem:[%s992_s4 + $0x108] sm:$0xff] }
  0x75   : > { %436 = vst [vmem:[%s1033_s18 + $0x78] sm:$0xff] %v400_v36  ;;  %v401_v41 = vsel %vm329_vm0, %v293_v25, %v365_v34  ;;  %v402_v42 = vsel %vm330_vm1, %v294_v26, %v366_v35  ;;  %v258_v44 = vmul.f32 %v1003_v1, %v217_v33  ;;  %vm332_vm3 = vcmp.gt.f32.partialorder %v296_v38, 0.0  ;;  %v229_v25 = vld [vmem:[%s992_s4 + $0x110] sm:$0xff]  ;;  %v230_v36 = vld [vmem:[%s992_s4 + $0x118] sm:$0xff] }
  0x76   : > { %437 = vst [vmem:[%s1033_s18 + $0x80] sm:$0xff] %v401_v41  ;;  %438 = vst [vmem:[%s1033_s18 + $0x88] sm:$0xff] %v402_v42  ;;  %v403_v48 = vsel %vm331_vm2, %v295_v27, %v367_v37  ;;  %v368_v49 = vmul.f32 0.1, %v296_v38  ;;  %vm333_vm4 = vcmp.gt.f32.partialorder %v297_v39, 0.0  ;;  %v298_v51 = vadd.f32 %v1005_v2, %v257_v43 }
  0x77   : > { %439 = vst [vmem:[%s1033_s18 + $0x90] sm:$0xff] %v403_v48  ;;  %v369_v50 = vmul.f32 0.1, %v297_v39  ;;  %v299_v52 = vadd.f32 %v1005_v2, %v258_v44  ;;  %v259_v53 = vmul.f32 %v1003_v1, %v218_v40  ;;  %v260_v55 = vmul.f32 %v1003_v1, %v219_v45 }
  0x78   : > { %v404_v54 = vsel %vm332_vm3, %v296_v38, %v368_v49  ;;  %v261_v56 = vmul.f32 %v1003_v1, %v220_v46  ;;  %v262_v57 = vmul.f32 %v1003_v1, %v221_v47  ;;  %vm334_vm5 = vcmp.gt.f32.partialorder %v298_v51, 0.0 }
  0x79   : > { %440 = vst [vmem:[%s1033_s18 + $0x98] sm:$0xff] %v404_v54  ;;  %v405_v60 = vsel %vm333_vm4, %v297_v39, %v369_v50  ;;  %v370_v61 = vmul.f32 0.1, %v298_v51  ;;  %vm335_vm6 = vcmp.gt.f32.partialorder %v299_v52, 0.0  ;;  %v371_v62 = vmul.f32 0.1, %v299_v52 }
  0x7a   : > { %441 = vst [vmem:[%s1033_s18 + $0xa0] sm:$0xff] %v405_v60  ;;  %v300_v63 = vadd.f32 %v1005_v2, %v259_v53  ;;  %v301_v0 = vadd.f32 %v1005_v2, %v260_v55  ;;  %v302_v3 = vadd.f32 %v1005_v2, %v261_v56  ;;  %v303_v5 = vadd.f32 %v1005_v2, %v262_v57 }
  0x7b   : > { %v406_v4 = vsel %vm334_vm5, %v298_v51, %v370_v61  ;;  %v263_v6 = vmul.f32 %v1003_v1, %v222_v58  ;;  %v264_v7 = vmul.f32 %v1003_v1, %v223_v59  ;;  %v407_v8 = vsel %vm335_vm6, %v299_v52, %v371_v62 }
  0x7c   : > { %442 = vst [vmem:[%s1033_s18 + $0xa8] sm:$0xff] %v406_v4  ;;  %vm336_vm7 = vcmp.gt.f32.partialorder %v300_v63, 0.0  ;;  %v372_v9 = vmul.f32 0.1, %v300_v63  ;;  %vm337_vm8 = vcmp.gt.f32.partialorder %v301_v0, 0.0  ;;  %443 = vst [vmem:[%s1033_s18 + $0xb0] sm:$0xff] %v407_v8  ;;  %v265_v21 = vmul.f32 %v1003_v1, %v224_v10 }
  0x7d   : > { %v373_v12 = vmul.f32 0.1, %v301_v0  ;;  %vm338_vm9 = vcmp.gt.f32.partialorder %v302_v3, 0.0  ;;  %v374_v13 = vmul.f32 0.1, %v302_v3  ;;  %vm339_vm10 = vcmp.gt.f32.partialorder %v303_v5, 0.0 }
  0x7e   : > { %v408_v14 = vsel %vm336_vm7, %v300_v63, %v372_v9  ;;  %v375_v15 = vmul.f32 0.1, %v303_v5  ;;  %v304_v16 = vadd.f32 %v1005_v2, %v263_v6  ;;  %v305_v17 = vadd.f32 %v1005_v2, %v264_v7 }
  0x7f   : > { %444 = vst [vmem:[%s1033_s18 + $0xb8] sm:$0xff] %v408_v14  ;;  %v409_v19 = vsel %vm337_vm8, %v301_v0, %v373_v12  ;;  %v410_v20 = vsel %vm338_vm9, %v302_v3, %v374_v13  ;;  %v266_v22 = vmul.f32 %v1003_v1, %v225_v11  ;;  %v306_v29 = vadd.f32 %v1005_v2, %v265_v21 }
  0x80   : > { %445 = vst [vmem:[%s1033_s18 + $0xc0] sm:$0xff] %v409_v19  ;;  %446 = vst [vmem:[%s1033_s18 + $0xc8] sm:$0xff] %v410_v20  ;;  %v411_v26 = vsel %vm339_vm10, %v303_v5, %v375_v15  ;;  %vm340_vm11 = vcmp.gt.f32.partialorder %v304_v16, 0.0  ;;  %v376_v27 = vmul.f32 0.1, %v304_v16  ;;  %vm341_vm12 = vcmp.gt.f32.partialorder %v305_v17, 0.0 }
  0x81   : > { %447 = vst [vmem:[%s1033_s18 + $0xd0] sm:$0xff] %v411_v26  ;;  %v377_v28 = vmul.f32 0.1, %v305_v17  ;;  %v307_v30 = vadd.f32 %v1005_v2, %v266_v22  ;;  %v267_v31 = vmul.f32 %v1003_v1, %v226_v18  ;;  %v268_v33 = vmul.f32 %v1003_v1, %v227_v23 }
  0x82   : > { %v412_v32 = vsel %vm340_vm11, %v304_v16, %v376_v27  ;;  %v269_v34 = vmul.f32 %v1003_v1, %v228_v24  ;;  %v270_v35 = vmul.f32 %v1003_v1, %v229_v25  ;;  %vm342_vm13 = vcmp.gt.f32.partialorder %v306_v29, 0.0 }
  0x83   : > { %448 = vst [vmem:[%s1033_s18 + $0xd8] sm:$0xff] %v412_v32  ;;  %v413_v37 = vsel %vm341_vm12, %v305_v17, %v377_v28  ;;  %v378_v38 = vmul.f32 0.1, %v306_v29  ;;  %vm343_vm14 = vcmp.gt.f32.partialorder %v307_v30, 0.0  ;;  %v379_v39 = vmul.f32 0.1, %v307_v30 }
  0x84   : > { %449 = vst [vmem:[%s1033_s18 + $0xe0] sm:$0xff] %v413_v37  ;;  %v308_v40 = vadd.f32 %v1005_v2, %v267_v31  ;;  %v309_v41 = vadd.f32 %v1005_v2, %v268_v33  ;;  %v310_v42 = vadd.f32 %v1005_v2, %v269_v34  ;;  %v311_v44 = vadd.f32 %v1005_v2, %v270_v35 }
  0x85   : > { %v414_v43 = vsel %vm342_vm13, %v306_v29, %v378_v38  ;;  %v271_v45 = vmul.f32 %v1003_v1, %v230_v36  ;;  %v415_v46 = vsel %vm343_vm14, %v307_v30, %v379_v39 }
  0x86   : > { %450 = vst [vmem:[%s1033_s18 + $0xe8] sm:$0xff] %v414_v43  ;;  %vm344_vm15 = vcmp.gt.f32.partialorder %v308_v40, 0.0  ;;  %v380_v47 = vmul.f32 0.1, %v308_v40  ;;  %vm345_vm0 = vcmp.gt.f32.partialorder %v309_v41, 0.0  ;;  %451 = vst [vmem:[%s1033_s18 + $0xf0] sm:$0xff] %v415_v46 }
  0x87   : > { %v381_v48 = vmul.f32 0.1, %v309_v41  ;;  %vm346_vm1 = vcmp.gt.f32.partialorder %v310_v42, 0.0  ;;  %v382_v49 = vmul.f32 0.1, %v310_v42  ;;  %vm347_vm2 = vcmp.gt.f32.partialorder %v311_v44, 0.0 }
  0x88   : > { %v416_v50 = vsel %vm344_vm15, %v308_v40, %v380_v47  ;;  %v383_v1 = vmul.f32 0.1, %v311_v44  ;;  %v312_v51 = vadd.f32 %v1005_v2, %v271_v45 }
  0x89   : > { %452 = vst [vmem:[%s1033_s18 + $0xf8] sm:$0xff] %v416_v50  ;;  %v417_v52 = vsel %vm345_vm0, %v309_v41, %v381_v48  ;;  %v418_v53 = vsel %vm346_vm1, %v310_v42, %v382_v49 }
  0x8a   : > { %453 = vst [vmem:[%s1033_s18 + $0x100] sm:$0xff] %v417_v52  ;;  %454 = vst [vmem:[%s1033_s18 + $0x108] sm:$0xff] %v418_v53  ;;  %v419_v54 = vsel %vm347_vm2, %v311_v44, %v383_v1  ;;  %vm348_vm3 = vcmp.gt.f32.partialorder %v312_v51, 0.0  ;;  %v384_v55 = vmul.f32 0.1, %v312_v51 }
  0x8b   : > { %455 = vst [vmem:[%s1033_s18 + $0x110] sm:$0xff] %v419_v54 }
  0x8c   : > { %v420_v2 = vsel %vm348_vm3, %v312_v51, %v384_v55 }
  0x8d   : > { %456 = vst [vmem:[%s1033_s18 + $0x118] sm:$0xff] %v420_v2 }
  0x8e   : > { %735 = shalt.err (!%p732_p7)
}
  0x8f   : > { %s736_s27 = scalar_lea.hbm %s1164_s7, 4608  ;;  %s740_s16 = scalar_lea.hbm %s1216_s2, 9216 }
  0x90   : > { %p737_p13 = scmp.ne.s32.totalorder %s1164_s7, %s736_s27  ;;  %p741_p12 = scmp.lt.u32.totalorder %s1164_s7, %s1216_s2 }
  0x91   : > { %p742_p4 = scmp.lt.u32.totalorder %s740_s16, %s736_s27  ;;  %p744_p5 = scmp.lt.u32.totalorder %s736_s27, %s1164_s7 }
  0x92   : > { %p738_p2 = pnand %p737_p13, %p1237_p10 }
  0x93   : > { %p743_p8 = por %p742_p4, %p741_p12 }
  0x94   : > { %p739_p6 = pneg %p738_p2 }
  0x95   : > { %p745_p11 = por %p744_p5, %p743_p8 }
  0x97   : > { %p746_p1 = pnand %p745_p11, %p739_p6 }
  0x99   : > { %749 = shalt.err (!%p746_p1)
}
  0x9a   : > { %s815_s4 = smov 128   ;;  %s816_s18 = smov 8  }
  0x9b   : > { %593 = dma.vmem_to_hbm [thread:$0]  (%p1237_p10), %s1158_s23, 4608, %s1164_s7, %s458_s15, %s815_s4, %s815_s4, %s816_s18  }
  0x9c PF: > { %s488_s20 = sand.u32 1, %s788_s9   ;;  %p1238_p0 = scmp.ne.s32.totalorder %s1227_s22, 0 }
  0x9d   : > { %p1239_p9 = scmp.ge.s32.totalorder %s808_s14, 2  ;;  %s489_s12 = scalar_lea.sflag [#allocation4], %s488_s20 }
  0x9f   : > { %p604_p3 = pnand %p1239_p9, %p1238_p0 }
  0xa1   : > { %783 = dma.done.wait (!%p604_p3), %s489_s12, 4608  }
  0xa2   : > { %785 = vsyncadd (!%p604_p3), %s489_s12, 4294962688  ;;  %s19_s14 = sadd.s32 1, %s808_s14   ;;  %s1240_s9 = smov %s792_s10 }
  0xa3   : > { %p16_p7 = scmp.ge.s32.totalorder %s19_s14, 4   ;;  %s1241_s10 = smov %s796_s11 }
  0xa4   : > { %s1242_s11 = smov %s951_s25  ;;  %s1243_s12 = smov %s804_s13 }
  0xa5   : > { %s1244_s13 = smov %s1246_s28  ;;  %18 = sbr.rel (!%p16_p7) target bundleno = 7 (0x7), region = 77 }
  0xac   :  { %494 = vsyncpa [#allocation3], 1 }
  0xad   :  { %496 = vsyncpa [#allocation3 + $0x1], 1 }
  0xae   :  { %497 = vsyncpa [#allocation6], 1 }
  0xaf   :  { %498 = vsyncpa [#allocation4], 1 }
  0xb0   :  { %500 = vsyncpa [#allocation4 + $0x1], 1 }

// kernel: cnn_block_forward.2
= control target key start
LH: loop header
LB: loop body
LE: loop exit
PB: predicated region body
PF: predicated region fallthrough
CT: control target
= control target key end

     0   :  { %9 = vsyncpa [#allocation4], 0  ;;  %s10435_s0 = inlined_call_operand.hbm [shape: bf16[2,326,4], index: 0, kind: input, shape index: {}]   ;;  %s10436_s1 = inlined_call_operand.hbm [shape: bf16[9,4,128], index: 1, kind: input, shape index: {}]   ;;  %s10437_s2 = inlined_call_operand.hbm [shape: f32[2,288,128], index: 2, kind: output, shape index: {0}]   ;;  %s10438_s3 = inlined_call_operand.hbm [shape: f32[2,2,128], index: 3, kind: output, shape index: {1}]  }
   0x1   :  { %11 = vsyncpa [#allocation4 + $0x1], 0 }
   0x2   :  { %12 = vsyncpa [#allocation7], 0 }
   0x3   :  { %13 = vsyncpa [#allocation5], 0 }
   0x4   :  { %15 = vsyncpa [#allocation5 + $0x1], 0 }
   0x5   :  { %16 = vsyncpa [#allocation10], 0 }
   0x6   :  { %18 = vsyncpa [#allocation10 + $0x1], 0  ;;  %s8067_s12 = smov 0   ;;  %s8069_s13 = smov 0  }
   0x7   :  { %s8071_s14 = smov 0   ;;  %s8073_s15 = smov 0  }
   0x8 LB: > { %s8088_s16 = sadd.s32 4294967295, %s8034_s15   ;;  %s6363_s17 = sadd.s32 4294967294, %s8034_s15   ;;  %s8034_s15 = sphi %s8073_s15, %s10663_s15   ;;  %s8030_s14 = sphi %s8071_s14, %s10662_s14   ;;  %s8026_s13 = sphi %s8069_s13, %s10661_s13   ;;  %s8022_s12 = sphi %s8067_s12, %s10660_s12  }
   0x9   : > { %p44_p0 = scmp.ne.s32.totalorder %s8026_s13, %s8022_s12  ;;  %p10439_p1 = scmp.eq.s32.totalorder %s8088_s16, 0 }
   0xa   : > { %p95_p3 = scmp.eq.s32.totalorder %s6363_s17, 1  ;;  %p6364_p5 = scmp.ge.s32.totalorder %s8034_s15, 1 }
   0xb   : > { %p8097_p4 = por %p10439_p1, %p44_p0  ;;  %p128_p7 = scmp.lt.s32.totalorder %s8034_s15, 3 }
   0xc   : > { %p8102_p6 = por %p95_p3, %p44_p0  ;;  %s8036_s21 = smov [#allocation6]  }
   0xd   : > { %s10470_s18 = scalar_select %p8097_p4, 1, 0 }
   0xe   : > { %s10471_s19 = scalar_select %p8102_p6, 1, 0 }
   0xf   : > { %p8107_p8 = pnand %p6364_p5, %p128_p7  ;;  %s140_s22 = sshll.u32 %s8036_s21, 4  ;;  %s8111_s22 = int_to_ptr.vmem [resolvable:$true] %s140_s22 }
  0x10   : > { %s8123_s24 = sadd.s32 1, %s8034_s15   ;;  %s31_s25 = sadd.s32 1, %s8030_s14 }
  0x11   : > { %s10472_s20 = scalar_select %p8107_p8, 1, 0 }
  0x12   : > { %p7644_p9 = pneg %p8107_p8  ;;  %s28_s26 = ssub.s32 %s8034_s15, %s8123_s24 }
  0x13   : > { %s7874_s29 = scalar_lea.hbm %s10436_s1, 288 }
  0x14   : > { %p8118_p11 = pnand %p7644_p9, %p10439_p1  ;;  %p7875_p12 = scmp.ne.s32.totalorder %s10436_s1, %s7874_s29 }
  0x15   : > { %p7881_p5 = scmp.lt.u32.totalorder %s7874_s29, %s10436_s1 }
  0x16   : > { %p7876_p13 = pneg %p8118_p11 }
  0x18   : > { %p7877_p0 = pnand %p7876_p13, %p7875_p12 }
  0x1a   : > { %p7878_p3 = pneg %p7877_p0 }
  0x1c   : > { %p7883_p7 = pnand %p7881_p5, %p7878_p3 }
  0x1e   : > { %7886 = shalt.err (!%p7883_p7)
}
  0x1f   : > { %s7887_s7 = scalar_lea.vmem %s8111_s22, 288  ;;  %p7895_p2 = scmp.lt.s32.totalorder %s8111_s22, %s8111_s22 }
  0x20   : > { %p7888_p9 = scmp.ne.s32.totalorder %s8111_s22, %s7887_s7  ;;  %p7896_p6 = scmp.lt.s32.totalorder %s7887_s7, %s7887_s7 }
  0x22   : > { %p7890_p10 = pnand %p7888_p9, %p7876_p13  ;;  %p7897_p4 = por %p7896_p6, %p7895_p2 }
  0x24   : > { %p7891_p1 = pneg %p7890_p10 }
  0x26   : > { %p7898_p8 = pnand %p7897_p4, %p7891_p1 }
  0x28   : > { %7901 = shalt.err (!%p7898_p8)
}
  0x29   : > { %s8037_s8 = smov 32   ;;  %s8038_s9 = smov 2  }
  0x2a   : > { %7647 = dma.hbm_to_vmem [thread:$0]  (!%p8118_p11), %s10436_s1, 288, %s8111_s22, [#allocation7], %s8037_s8, %s8037_s8, %s8038_s9  }
  0x2b   : > { %p29_p2 = scmp.eq.s32.totalorder %s28_s26, 0  ;;  %p38_p1 = scmp.ne.s32.totalorder %s8030_s14, %s8026_s13 }
  0x2c   : > { %p39_p4 = scmp.eq.s32.totalorder %s8034_s15, 0  ;;  %p7660_p6 = scmp.lt.s32.totalorder %s8034_s15, 2 }
  0x2d   : > { %s8154_s17 = scalar_select %p29_p2, %s8030_s14, %s31_s25  }
  0x2e   : > { %p40_p8 = por %p39_p4, %p38_p1  ;;  %p10474_p10 = scmp.eq.s32.totalorder %s8088_s16, 1 }
  0x2f   : > { %s154_s27 = sand.u32 1, %s8030_s14   ;;  %s7558_s28 = smul.u32 2624, %s8034_s15 }
  0x30   : > { %p8158_p12 = por %p10474_p10, %p38_p1  ;;  %s7557_s29 = smul.u32 164, %s154_s27 }
  0x31   : > { %s8167_s4 = scalar_lea.hbm %s10435_s0, %s7558_s28  ;;  %p8169_p11 = pnand %p7660_p6, %p40_p8 }
  0x32   : > { %s158_s25 = scalar_lea.vmem [#allocation3], %s7557_s29  ;;  %s8175_s5 = scalar_lea.sflag [#allocation4], %s154_s27 }
  0x33   : > { %s165_s26 = sshll.u32 %s158_s25, 4  ;;  %s7902_s6 = scalar_lea.hbm %s8167_s4, 2624  ;;  %s8173_s26 = int_to_ptr.vmem [resolvable:$true] %s165_s26 }
  0x34   : > { %p7903_p13 = scmp.ne.s32.totalorder %s8167_s4, %s7902_s6  ;;  %p7904_p0 = pneg %p8169_p11 }
  0x35   : > { %s7907_s9 = scalar_lea.hbm %s10435_s0, 5248  ;;  %p7908_p7 = scmp.lt.u32.totalorder %s8167_s4, %s10435_s0 }
  0x36   : > { %p7905_p3 = pnand %p7904_p0, %p7903_p13  ;;  %p7909_p9 = scmp.lt.u32.totalorder %s7907_s9, %s7902_s6 }
  0x37   : > { %p7911_p1 = scmp.lt.u32.totalorder %s7902_s6, %s8167_s4 }
  0x38   : > { %p7906_p5 = pneg %p7905_p3  ;;  %p7910_p2 = por %p7909_p9, %p7908_p7 }
  0x3a   : > { %p7912_p4 = por %p7911_p1, %p7910_p2 }
  0x3c   : > { %p7913_p6 = pnand %p7912_p4, %p7906_p5 }
  0x3e   : > { %7916 = shalt.err (!%p7913_p6)
}
  0x3f   : > { %s7917_s27 = scalar_lea.vmem %s8173_s26, 2624  ;;  %s8039_s28 = smov [#allocation3]  }
  0x40   : > { %p7918_p8 = scmp.ne.s32.totalorder %s8173_s26, %s7917_s27  ;;  %s7922_s29 = sshll.u32 %s8039_s28, 4  ;;  %s7923_s29 = int_to_ptr.vmem [resolvable:$false] %s7922_s29 }
  0x41   : > { %s7924_s23 = scalar_lea.vmem %s7923_s29, 5248  ;;  %p7925_p3 = scmp.lt.s32.totalorder %s8173_s26, %s7923_s29 }
  0x42   : > { %p7920_p10 = pnand %p7918_p8, %p7904_p0  ;;  %p7926_p7 = scmp.lt.s32.totalorder %s7924_s23, %s7917_s27 }
  0x44   : > { %p7921_p13 = pneg %p7920_p10  ;;  %p7927_p9 = por %p7926_p7, %p7925_p3 }
  0x46   : > { %p7928_p2 = pnand %p7927_p9, %p7921_p13 }
  0x48   : > { %7931 = shalt.err (!%p7928_p2)
}
  0x49   : > { %s8040_s30 = smov 64   ;;  %s8041_s25 = smov 4  }
  0x4a   : > { %7651 = dma.hbm_to_vmem [thread:$0]  (!%p8169_p11), %s8167_s4, 2624, %s8173_s26, %s8175_s5, %s8040_s30, %s8040_s30, %s8041_s25  }
  0x4b   : > { %p10477_p0 = scmp.ne.s32.totalorder %s10472_s20, 0 }
  0x4d   : > { %177 = sbr.rel (%p10477_p0) target bundleno = 784 (0x310), region = 28 }
  0x54   : > { %s8206_s6 = sand.u32 1, %s8026_s13   ;;  %p10478_p5 = scmp.ne.s32.totalorder %s10470_s18, 0 }
  0x55   : > { %s7559_s7 = smul.u32 164, %s8206_s6  ;;  %s180_s8 = scalar_lea.sflag [#allocation4], %s8206_s6 }
  0x57   : > { %s8210_s9 = scalar_lea.vmem [#allocation3], %s7559_s7 }
  0x58   : > { %8005 = dma.done.wait (%p10478_p5), %s180_s8, 2624  }
  0x59   : > { %8007 = vsyncadd (%p10478_p5), %s180_s8, 4294964672  ;;  %p10479_p11 = scmp.eq.s32.totalorder %s8088_s16, 0 }
  0x5b   : > { %8009 = dma.done.wait (%p10479_p11), [#allocation7], 288   ;;  %p10480_p1 = pmov %p10479_p11 }
  0x5c   : > { %vm470_vm0 = vcmask 1041408   ;;  %vm415_vm1 = vcmask 31744   ;;  %v324_v0 = vld [vmem:[#allocation6] sm:$0x3]  ;;  %vm2537_vm2 = vsmask.f32 6400 }
  0x5d   : > { %8011 = vsyncadd (%p10480_p1), [#allocation7], 4294967008  ;;  %7547 = vmatprep.subr.msk.bf16.mxu1 %vm470_vm0, %v324_v0  ;;  %v472_v1 = vsel %vm470_vm0, %v324_v0, 0  ;;  %v7703_v2 = vld [vmem:[%s8210_s9] sm:$0xff]   ;;  %v7704_v3 = vld [vmem:[%s8210_s9 + $0x8] sm:$0xff]   ;;  %vm3182_vm3 = vcmask 1045504  }
  0x5e   : > { %6916 = vmatpush3.bf16.msra.mxu1 %v472_v1  ;;  %v2443_v4 = vld [vmem:[#allocation6 + $0x8] sm:$0x3]  ;;  %6917 = vmatprep.mubr.msk.bf16.mxu1 %vm415_vm1, %v7703_v2  ;;  %v3088_v8 = vld [vmem:[#allocation6 + $0xa] sm:$0x3]  ;;  %v7707_v13 = vld [vmem:[%s8210_s9 + $0x18] sm:$0xff]   ;;  %vm1514_vm5 = vcmask 1046528  }
  0x5f   : > { %7551 = vmatprep.subr.msk.bf16.mxu0 %vm470_vm0, %v2443_v4  ;;  %v8227_v5 = vsel %vm470_vm0, %v2443_v4, 0  ;;  %v7706_v6 = vld [vmem:[%s8210_s9 + $0x10] sm:$0xff]   ;;  %v7705_v7 = vld [vmem:[%s8210_s9 + $0x8] sm:$0xfe]   ;;  %v7709_v17 = vld [vmem:[%s8210_s9 + $0x18] sm:$0xff]   ;;  %v2556_v20 = vshrl.u32 %v7707_v13, 16 }
  0x60   : > { %7068 = vmatpush3.bf16.msra.mxu0 %v8227_v5  ;;  %v2547_v9 = vshrl.u32 %v7706_v6, 16  ;;  %v2550_v10 = vshll.u32 %v7706_v6, 16  ;;  %v2539_v11 = vshrl.u32 %v7705_v7, 16  ;;  %v2542_v12 = vshll.u32 %v7705_v7, 16  ;;  %v7708_v16 = vld [vmem:[%s8210_s9 + $0x10] sm:$0xff]   ;;  %v7710_v27 = vld [vmem:[%s8210_s9 + $0x20] sm:$0xff]  }
  0x61   : > { %6918 = vmatmul.mubr.msk.bf16.vlgmr.msra.gmra.mrb[0].mxu1 %vm415_vm1, %v7704_v3  ;;  %7553 = vmatprep.subr.msk.bf16.mxu0 %vm470_vm0, %v3088_v8  ;;  %v2559_v21 = vshll.u32 %v7707_v13, 16  ;;  %v797_v23 = vld [vmem:[#allocation6 + $0x2] sm:$0x3]  ;;  %v2558_v25 = vrot.slane %v2556_v20, 1  ;;  %v2565_v32 = vshrl.u32 %v7710_v27, 16  ;;  %v2568_v33 = vshll.u32 %v7710_v27, 16 }
  0x62   : > { %v2549_v14 = vrot.slane %v2547_v9, 1  ;;  %v2552_v15 = vrot.slane %v2550_v10, 2  ;;  %v2541_v18 = vrot.slane %v2539_v11, 1  ;;  %v2544_v19 = vrot.slane %v2542_v12, 2  ;;  %6921 = vmatprep.mubr.msk.bf16.mxu1 %vm415_vm1, %v7708_v16  ;;  %7548 = vmatprep.subr.msk.bf16.mxu1 %vm470_vm0, %v797_v23  ;;  %v7711_v29 = vld [vmem:[%s8210_s9 + $0x28] sm:$0xff]   ;;  %v7712_v37 = vld [vmem:[%s8210_s9 + $0x20] sm:$0xff]  }
  0x63   : > { %v2561_v26 = vrot.slane %v2559_v21, 2  ;;  %v1095_v28 = vsel %vm470_vm0, %v797_v23, 0  ;;  %v3275_v34 = vsel %vm470_vm0, %v3088_v8, 0  ;;  %v2574_v35 = vshrl.u32 %v7711_v29, 16  ;;  %v7714_v43 = vld [vmem:[%s8210_s9 + $0x30] sm:$0xff]   ;;  %v7715_v44 = vld [vmem:[%s8210_s9 + $0x38] sm:$0xff]  }
  0x64   : > { %v2553_v22 = vor.u32 %v2552_v15, %v2549_v14  ;;  %v2545_v24 = vor.u32 %v2544_v19, %v2541_v18  ;;  %6954 = vmatpush3.bf16.msra.mxu1 %v1095_v28  ;;  %v2577_v36 = vshll.u32 %v7711_v29, 16  ;;  %v2567_v39 = vrot.slane %v2565_v32, 1  ;;  %v7713_v47 = vld [vmem:[%s8210_s9 + $0x28] sm:$0xff]   ;;  %v7716_v53 = vld [vmem:[%s8210_s9 + $0x30] sm:$0xff]   ;;  %v7718_v57 = vld [vmem:[%s8210_s9 + $0x40] sm:$0xff]   ;;  %s7560_s18 = smul.u32 288, %s8206_s6 }
  0x65   : > { %v2562_v31 = vor.u32 %v2561_v26, %v2558_v25  ;;  %v2570_v40 = vrot.slane %v2568_v33, 2  ;;  %v2576_v41 = vrot.slane %v2574_v35, 1  ;;  %v2583_v48 = vshrl.u32 %v7714_v43, 16  ;;  %v7719_v60 = vld [vmem:[%s8210_s9 + $0x48] sm:$0xff]   ;;  %v7717_v2 = vld [vmem:[%s8210_s9 + $0x38] sm:$0xff]   ;;  %v7720_v8 = vld [vmem:[%s8210_s9 + $0x40] sm:$0xff]  }
  0x66   : > { %v2554_v30 = vsel %vm2537_vm2, %v2545_v24, %v2553_v22  ;;  %v2579_v42 = vrot.slane %v2577_v36, 2  ;;  %v2586_v49 = vshll.u32 %v7714_v43, 16  ;;  %v2592_v50 = vshrl.u32 %v7715_v44, 16  ;;  %v7722_v10 = vld [vmem:[%s8210_s9 + $0x50] sm:$0xff]   ;;  %v7723_v11 = vld [vmem:[%s8210_s9 + $0x58] sm:$0xff]   ;;  %v7721_v24 = vld [vmem:[%s8210_s9 + $0x48] sm:$0xff]  }
  0x67   : > { %7069 = vmatprep.mubr.msk.bf16.mxu0 %vm415_vm1, %v2554_v30  ;;  %v2563_v38 = vsel %vm2537_vm2, %v2553_v22, %v2562_v31  ;;  %v2571_v45 = vor.u32 %v2570_v40, %v2567_v39  ;;  %v2595_v52 = vshll.u32 %v7715_v44, 16  ;;  %v2585_v54 = vrot.slane %v2583_v48, 1  ;;  %v3600_v22 = vld [vmem:[#allocation6 + $0xc] sm:$0x3]  ;;  %v7726_v30 = vld [vmem:[%s8210_s9 + $0x8] sm:$0xfc]  }
  0x68   : > { %7070 = vmatmul.mubr.msk.bf16.vlgmr.msra.gmra.mrb[0].mxu0 %vm415_vm1, %v2563_v38  ;;  %v2580_v46 = vor.u32 %v2579_v42, %v2576_v41  ;;  %v2588_v55 = vrot.slane %v2586_v49, 2  ;;  %v2594_v56 = vrot.slane %v2592_v50, 1  ;;  %v2601_v62 = vshrl.u32 %v7718_v57, 16  ;;  %v7724_v26 = vld [vmem:[%s8210_s9 + $0x50] sm:$0xff]   ;;  %v7728_v39 = vld [vmem:[%s8210_s9 + $0x18] sm:$0xff]   ;;  %v7731_v41 = vld [vmem:[%s8210_s9 + $0x20] sm:$0xff]  }
  0x69   : > { %6922 = vmatmul.mubr.msk.bf16.gmra.mrb[4].mxu1 %vm415_vm1, %v7709_v17  ;;  %7106 = vmatpush3.bf16.msra.mxu0 %v3275_v34  ;;  %v2572_v51 = vsel %vm2537_vm2, %v2562_v31, %v2571_v45  ;;  %v2597_v59 = vrot.slane %v2595_v52, 2  ;;  %v2604_v63 = vshll.u32 %v7718_v57, 16  ;;  %v2610_v0 = vshrl.u32 %v7719_v60, 16  ;;  %v7727_v32 = vld [vmem:[%s8210_s9 + $0x10] sm:$0xff]   ;;  %v7725_v34 = vld [vmem:[%s8210_s9 + $0x58] sm:$0xff]   ;;  %v7730_v43 = vld [vmem:[%s8210_s9 + $0x68] sm:$0xff]  }
  0x6a   : > { %6925 = vmatprep.mubr.msk.bf16.mxu1 %vm415_vm1, %v7712_v37  ;;  %7073 = vmatprep.mubr.msk.bf16.mxu0 %vm415_vm1, %v2572_v51  ;;  %v2581_v58 = vsel %vm2537_vm2, %v2571_v45, %v2580_v46  ;;  %v2589_v61 = vor.u32 %v2588_v55, %v2585_v54  ;;  %v2603_v3 = vrot.slane %v2601_v62, 1  ;;  %v2613_v7 = vshll.u32 %v7719_v60, 16  ;;  %v7729_v37 = vld [vmem:[%s8210_s9 + $0x60] sm:$0xff]   ;;  %v7733_v45 = vld [vmem:[%s8210_s9 + $0x70] sm:$0xff]   ;;  %v7732_v49 = vld [vmem:[%s8210_s9 + $0x28] sm:$0xff]   ;;  %s9427_s20 = scalar_lea.vmem [#allocation8], %s7560_s18 }
  0x6b   : > { %v2606_v4 = vrot.slane %v2604_v63, 2  ;;  %v2598_v6 = vor.u32 %v2597_v59, %v2594_v56  ;;  %v2619_v12 = vshrl.u32 %v7722_v10, 16  ;;  %v2622_v13 = vshll.u32 %v7722_v10, 16  ;;  %7554 = vmatprep.subr.msk.bf16.mxu0 %vm470_vm0, %v3600_v22  ;;  %v7735_v50 = vld [vmem:[%s8210_s9 + $0x30] sm:$0xff]   ;;  %v1420_v52 = vld [vmem:[#allocation6 + $0x4] sm:$0x3] }
  0x6c   : > { %v2590_v1 = vsel %vm2537_vm2, %v2580_v46, %v2589_v61  ;;  %v2612_v15 = vrot.slane %v2610_v0, 1  ;;  %v2615_v16 = vrot.slane %v2613_v7, 2  ;;  %v2628_v20 = vshrl.u32 %v7723_v11, 16  ;;  %v7741_v46 = vld [vmem:[%s8210_s9] sm:$0xff]   ;;  %7549 = vmatprep.subr.msk.bf16.mxu1 %vm470_vm0, %v1420_v52  ;;  %v7734_v56 = vld [vmem:[%s8210_s9 + $0x78] sm:$0xff]   ;;  %s7633_s4 = smul.u32 4608, %s8088_s16 }
  0x6d   : > { %v2607_v9 = vor.u32 %v2606_v4, %v2603_v3  ;;  %v2599_v14 = vsel %vm2537_vm2, %v2589_v61, %v2598_v6  ;;  %v2621_v18 = vrot.slane %v2619_v12, 1  ;;  %v2624_v19 = vrot.slane %v2622_v13, 2  ;;  %v7736_v63 = vld [vmem:[%s8210_s9 + $0x38] sm:$0xff]   ;;  %s6235_s22 = sshll.u32 %s9427_s20, 4  ;;  %s6217_s11 = scalar_lea.sflag [#allocation5], %s8206_s6  ;;  %s10152_s22 = int_to_ptr.vmem [resolvable:$true] %s6235_s22 }
  0x6e   : > { %v2631_v21 = vshll.u32 %v7723_v11, 16  ;;  %v2616_v23 = vor.u32 %v2615_v16, %v2612_v15  ;;  %v2630_v27 = vrot.slane %v2628_v20, 1  ;;  %v3183_v35 = vrot.slane %v7726_v30, 2  ;;  %v7740_v16 = vld [vmem:[%s8210_s9 + $0x48] sm:$0xff]   ;;  %v7747_v20 = vld [vmem:[%s8210_s9 + $0x20] sm:$0xff]   ;;  %s10143_s10 = scalar_lea.hbm %s10437_s2, %s7633_s4  ;;  %s7932_s27 = scalar_lea.vmem %s10152_s22, 4608 }
  0x6f   : > { %v2608_v17 = vsel %vm2537_vm2, %v2598_v6, %v2607_v9  ;;  %v2625_v25 = vor.u32 %v2624_v19, %v2621_v18  ;;  %v3184_v36 = vrot.slane %v7727_v32, 2  ;;  %v3186_v42 = vrot.slane %v7728_v39, 2  ;;  %v7746_v6 = vld [vmem:[%s8210_s9 + $0x18] sm:$0xff]   ;;  %v7744_v19 = vld [vmem:[%s8210_s9 + $0x50] sm:$0xff]   ;;  %p7933_p4 = scmp.ne.s32.totalorder %s10152_s22, %s7932_s27  ;;  %s8043_s28 = smov [#allocation8]  }
  0x70   : > { %7074 = vmatmul.mubr.msk.bf16.gmra.mrb[4].mxu0 %vm415_vm1, %v2581_v58  ;;  %v2633_v28 = vrot.slane %v2631_v21, 2  ;;  %v2617_v29 = vsel %vm2537_vm2, %v2607_v9, %v2616_v23  ;;  %v3188_v44 = vrot.slane %v7731_v41, 2  ;;  %v3786_v48 = vsel %vm470_vm0, %v3600_v22, 0  ;;  %v7737_v58 = vld [vmem:[%s8210_s9 + $0x80] sm:$0xff]   ;;  %v8339_v32 = vld [vmem:[#allocation6 + $0xe] sm:$0x3] }
  0x71   : > { %6926 = vmatmul.mubr.msk.bf16.gmra.mrb[8].mxu1 %vm415_vm1, %v7713_v47  ;;  %7077 = vmatprep.mubr.msk.bf16.mxu0 %vm415_vm1, %v2590_v1  ;;  %v2626_v31 = vsel %vm2537_vm2, %v2616_v23, %v2625_v25  ;;  %v3185_v40 = vsel %vm3182_vm3, %v3183_v35, %v3184_v36  ;;  %v3187_v47 = vsel %vm3182_vm3, %v3184_v36, %v3186_v42  ;;  %v895_v54 = vshll.u32 %v7741_v46, 16  ;;  %v7739_v1 = vld [vmem:[%s8210_s9 + $0x40] sm:$0xff]   ;;  %v7751_v41 = vld [vmem:[%s8210_s9 + $0x30] sm:$0xff]   ;;  %p7934_p6 = pnand %p7933_p4, %p8158_p12  ;;  %s7936_s29 = sshll.u32 %s8043_s28, 4  ;;  %s7937_s29 = int_to_ptr.vmem [resolvable:$false] %s7936_s29 }
  0x72   : > { %6929 = vmatprep.mubr.msk.bf16.mxu1 %vm415_vm1, %v7716_v53  ;;  %v8285_v33 = vor.u32 %v2633_v28, %v2630_v27  ;;  %v3189_v51 = vsel %vm3182_vm3, %v3186_v42, %v3188_v44  ;;  %v7742_v53 = vld [vmem:[%s8210_s9 + $0x8] sm:$0xff]   ;;  %v3190_v55 = vrot.slane %v7732_v49, 2  ;;  %v3192_v57 = vrot.slane %v7735_v50, 2  ;;  %s7938_s23 = scalar_lea.vmem %s7937_s29, 9216  ;;  %p7939_p10 = scmp.lt.s32.totalorder %s10152_s22, %s7937_s29 }
  0x73   : > { %v893_v59 = vshrl.u32 %v7741_v46, 16  ;;  %v897_v60 = vrot.slane %v895_v54, 1  ;;  %v900_v61 = vshll.u32 %v7742_v53, 16  ;;  %v3194_v7 = vrot.slane %v7736_v63, 2  ;;  %v7758_v63 = vld [vmem:[%s8210_s9 + $0x48] sm:$0xff]   ;;  %p7935_p8 = pneg %p7934_p6  ;;  %p7940_p13 = scmp.lt.s32.totalorder %s7938_s23, %s7932_s27 }
  0x74   : > { %v2635_v38 = vsel %vm2537_vm2, %v2625_v25, %v8285_v33  ;;  %v3191_v62 = vsel %vm3182_vm3, %v3188_v44, %v3190_v55  ;;  %v3193_v0 = vsel %vm3182_vm3, %v3190_v55, %v3192_v57  ;;  %vm891_vm4 = vsmask.f32 7424  ;;  %v7749_v55 = vld [vmem:[%s8210_s9 + $0x68] sm:$0xff]  }
  0x75   : > { %v898_v3 = vor.u32 %v897_v60, %v893_v59  ;;  %v902_v4 = vrot.slane %v900_v61, 1  ;;  %v3196_v9 = vrot.slane %v7739_v1, 2  ;;  %v904_v11 = vshrl.u32 %v7742_v53, 16  ;;  %v7755_v59 = vld [vmem:[%s8210_s9 + $0x40] sm:$0xff]   ;;  %p7941_p3 = por %p7940_p13, %p7939_p10 }
  0x76   : > { %v3195_v15 = vsel %vm3182_vm3, %v3192_v57, %v3194_v7  ;;  %v3198_v25 = vrot.slane %v7740_v16, 2  ;;  %v924_v27 = vshll.u32 %v7747_v20, 16  ;;  %v920_v30 = vshrl.u32 %v7746_v6, 16 }
  0x77   : > { %v903_v12 = vsel %vm891_vm4, %v898_v3, %v902_v4  ;;  %v906_v21 = vor.u32 %v904_v11, %v902_v4  ;;  %v928_v35 = vshrl.u32 %v7747_v20, 16  ;;  %v7756_v11 = vld [vmem:[%s8210_s9 + $0x80] sm:$0xff]   ;;  %vm4205_vm6 = vsmask.f32 5376  ;;  %p7942_p7 = pnand %p7941_p3, %p7935_p8 }
  0x78   : > { %7078 = vmatmul.mubr.msk.bf16.gmra.mrb[8].mxu0 %vm415_vm1, %v2599_v14  ;;  %v916_v14 = vshll.u32 %v7746_v6, 16  ;;  %v3212_v20 = vrot.slane %v7756_v11, 2  ;;  %vm4850_vm7 = vcmask 1044480  }
  0x79   : > { %6930 = vmatmul.mubr.msk.bf16.gmra.mrb[12].mxu1 %vm415_vm1, %v7717_v2  ;;  %7081 = vmatprep.mubr.msk.bf16.mxu0 %vm415_vm1, %v2608_v17  ;;  %v7743_v2 = vld [vmem:[%s8210_s9 + $0x10] sm:$0xff]   ;;  %v3197_v17 = vsel %vm3182_vm3, %v3194_v7, %v3196_v9  ;;  %v960_v7 = vshrl.u32 %v7755_v59, 16 }
  0x7a   : > { %6933 = vmatprep.mubr.msk.bf16.mxu1 %vm415_vm1, %v7720_v8  ;;  %v7738_v8 = vld [vmem:[%s8210_s9 + $0x88] sm:$0xff]   ;;  %v908_v10 = vshll.u32 %v7743_v2, 16  ;;  %v912_v13 = vshrl.u32 %v7743_v2, 16  ;;  %v918_v23 = vrot.slane %v916_v14, 1  ;;  %v956_v2 = vshll.u32 %v7755_v59, 16  ;;  %v7759_v14 = vld [vmem:[%s8210_s9 + $0x50] sm:$0xff]  }
  0x7c   : > { %v910_v18 = vrot.slane %v908_v10, 1  ;;  %v922_v42 = vor.u32 %v920_v30, %v918_v23  ;;  %v7753_v10 = vld [vmem:[%s8210_s9 + $0x78] sm:$0xff]   ;;  %v7760_v30 = vld [vmem:[%s8210_s9 + $0x90] sm:$0xff]  }
  0x7e   : > { %v914_v22 = vor.u32 %v912_v13, %v910_v18  ;;  %v911_v28 = vsel %vm891_vm4, %v906_v21, %v910_v18  ;;  %v958_v13 = vrot.slane %v956_v2, 1  ;;  %v7762_v18 = vld [vmem:[%s8210_s9 + $0x58] sm:$0xff]   ;;  %v972_v21 = vshll.u32 %v7759_v14, 16 }
  0x80   : > { %7082 = vmatmul.mubr.msk.bf16.gmra.mrb[12].mxu0 %vm415_vm1, %v2617_v29  ;;  %v7745_v29 = vld [vmem:[%s8210_s9 + $0x58] sm:$0xff]   ;;  %v962_v16 = vor.u32 %v960_v7, %v958_v13 }
  0x81   : > { %6934 = vmatmul.mubr.msk.bf16.gmra.mrb[16].mxu1 %vm415_vm1, %v7721_v24  ;;  %7085 = vmatprep.mubr.msk.bf16.mxu0 %vm415_vm1, %v2626_v31  ;;  %v7750_v24 = vld [vmem:[%s8210_s9 + $0x28] sm:$0xff]   ;;  %v1607_v31 = vsel %vm470_vm0, %v1420_v52, 0  ;;  %v3202_v46 = vrot.slane %v7745_v29, 2  ;;  %v944_v52 = vshrl.u32 %v7751_v41, 16 }
  0x82   : > { %6937 = vmatprep.mubr.msk.bf16.mxu1 %vm415_vm1, %v7724_v26  ;;  %v3200_v26 = vrot.slane %v7744_v19, 2  ;;  %v932_v36 = vshll.u32 %v7750_v24, 16  ;;  %v936_v50 = vshrl.u32 %v7750_v24, 16  ;;  %v3210_v19 = vrot.slane %v7753_v10, 2  ;;  %v7757_v24 = vld [vmem:[%s8210_s9 + $0x88] sm:$0xff]   ;;  %v7772_v10 = vld [vmem:[%s8210_s9 + $0x80] sm:$0xff]  }
  0x84   : > { %v3201_v39 = vsel %vm3182_vm3, %v3198_v25, %v3200_v26  ;;  %v934_v44 = vrot.slane %v932_v36, 1  ;;  %v3203_v54 = vsel %vm3182_vm3, %v3200_v26, %v3202_v46 }
  0x86   : > { %v938_v60 = vor.u32 %v936_v50, %v934_v44 }
  0x88   : > { %7086 = vmatmul.mubr.msk.bf16.gmra.mrb[16].mxu0 %vm415_vm1, %v2635_v38  ;;  %v7748_v38 = vld [vmem:[%s8210_s9 + $0x60] sm:$0xff]  }
  0x89   : > { %6938 = vmatmul.mubr.msk.bf16.gmra.mrb[20].mxu1 %vm415_vm1, %v7725_v34  ;;  %7107 = vmatprep.mubr.msk.bf16.mxu0 %vm415_vm1, %v3185_v40  ;;  %v919_v34 = vsel %vm891_vm4, %v914_v22, %v918_v23  ;;  %v926_v40 = vrot.slane %v924_v27, 1  ;;  %v8377_v22 = vld [vmem:[#allocation6 + $0x6] sm:$0x3]  ;;  %v976_v27 = vshrl.u32 %v7759_v14, 16 }
  0x8a   : > { %6941 = vmatprep.mubr.msk.bf16.mxu1 %vm415_vm1, %v7729_v37  ;;  %v3199_v37 = vsel %vm3182_vm3, %v3196_v9, %v3198_v25  ;;  %v968_v25 = vshrl.u32 %v7758_v63, 16  ;;  %v7775_v14 = vld [vmem:[%s8210_s9 + $0x88] sm:$0xff]  }
  0x8b   : > { %v927_v49 = vsel %vm891_vm4, %v922_v42, %v926_v40 }
  0x90   : > { %7108 = vmatmul.mubr.msk.bf16.vlgmr.msra.gmra.mrb[0].mxu0 %vm415_vm1, %v3187_v47  ;;  %v3204_v47 = vrot.slane %v7748_v38, 2 }
  0x91   : > { %6942 = vmatmul.mubr.msk.bf16.gmra.mrb[24].mxu1 %vm415_vm1, %v7730_v43  ;;  %7144 = vmatpush3.bf16.msra.mxu0 %v3786_v48  ;;  %v930_v43 = vor.u32 %v928_v35, %v926_v40  ;;  %v940_v48 = vshll.u32 %v7751_v41, 16  ;;  %v7763_v35 = vld [vmem:[%s8210_s9 + $0x60] sm:$0xff]   ;;  %v3214_v40 = vrot.slane %v7757_v24, 2  ;;  %v3216_v41 = vrot.slane %v7760_v30, 2 }
  0x92   : > { %6945 = vmatprep.mubr.msk.bf16.mxu1 %vm415_vm1, %v7733_v45  ;;  %7111 = vmatprep.mubr.msk.bf16.mxu0 %vm415_vm1, %v3189_v51  ;;  %v7754_v45 = vld [vmem:[%s8210_s9 + $0x38] sm:$0xff]   ;;  %v3205_v57 = vsel %vm3182_vm3, %v3202_v46, %v3204_v47  ;;  %v988_v42 = vshll.u32 %v7763_v35, 16  ;;  %v1028_v24 = vshll.u32 %v7775_v14, 16  ;;  %v7776_v30 = vld [vmem:[%s8210_s9 + $0x90] ss:$0 sps:$4 sm:$0x11]  }
  0x93   : > { %7555 = vmatprep.subr.msk.bf16.mxu0 %vm470_vm0, %v8339_v32  ;;  %v935_v51 = vsel %vm891_vm4, %v930_v43, %v934_v44  ;;  %v948_v53 = vshll.u32 %v7754_v45, 16  ;;  %v952_v4 = vshrl.u32 %v7754_v45, 16  ;;  %v7761_v44 = vld [vmem:[%s8210_s9 + $0x98] ss:$0 sps:$4 sm:$0x33]   ;;  %v984_v45 = vshrl.u32 %v7762_v18, 16 }
  0x94   : > { %v7765_v46 = vld [vmem:[%s8210_s9 + $0x18] sm:$0xff]   ;;  %v3215_v50 = vsel %vm3182_vm3, %v3212_v20, %v3214_v40  ;;  %v3218_v59 = vrot.slane %v7761_v44, 2 }
  0x98   : > { %7112 = vmatmul.mubr.msk.bf16.gmra.mrb[4].mxu0 %vm415_vm1, %v3191_v62  ;;  %v950_v62 = vrot.slane %v948_v53, 1  ;;  %v990_v53 = vrot.slane %v988_v42, 1  ;;  %v7779_v42 = vld [vmem:[%s8210_s9] sm:$0xfe]  }
  0x99   : > { %6946 = vmatmul.mubr.msk.bf16.gmra.mrb[28].mxu1 %vm415_vm1, %v7734_v56  ;;  %7115 = vmatprep.mubr.msk.bf16.mxu0 %vm415_vm1, %v3193_v0  ;;  %v7752_v56 = vld [vmem:[%s8210_s9 + $0x70] sm:$0xff]   ;;  %v3206_v0 = vrot.slane %v7749_v55, 2 }
  0x9a   : > { %6949 = vmatprep.mubr.msk.bf16.mxu1 %vm415_vm1, %v7737_v58  ;;  %v942_v58 = vrot.slane %v940_v48, 1  ;;  %v3208_v1 = vrot.slane %v7752_v56, 2  ;;  %v992_v48 = vshrl.u32 %v7763_v35, 16 }
  0x9b   : > { %v3207_v9 = vsel %vm3182_vm3, %v3204_v47, %v3206_v0 }
  0x9c   : > { %v946_v61 = vor.u32 %v944_v52, %v942_v58  ;;  %v943_v3 = vsel %vm891_vm4, %v938_v60, %v942_v58  ;;  %v3211_v29 = vsel %vm3182_vm3, %v3208_v1, %v3210_v19  ;;  %v3217_v52 = vsel %vm3182_vm3, %v3214_v40, %v3216_v41  ;;  %v7771_v58 = vld [vmem:[%s8210_s9 + $0x78] sm:$0xff]  }
  0x9d   : > { %v994_v56 = vor.u32 %v992_v48, %v990_v53  ;;  %v3695_v60 = vrot.slane %v7765_v46, 2  ;;  %v1036_v40 = vshll.u32 %v7776_v30, 16  ;;  %v7793_v30 = vld [vmem:[%s8210_s9 + $0x40] sm:$0xff]  }
  0x9e   : > { %v951_v6 = vsel %vm891_vm4, %v946_v61, %v950_v62 }
  0xa0   : > { %7116 = vmatmul.mubr.msk.bf16.gmra.mrb[8].mxu0 %vm415_vm1, %v3195_v15  ;;  %v954_v15 = vor.u32 %v952_v4, %v950_v62  ;;  %v3219_v4 = vsel %vm3182_vm3, %v3216_v41, %v3218_v59  ;;  %v7778_v59 = vld [vmem:[%s8210_s9 + $0x50] sm:$0xff]  }
  0xa1   : > { %6950 = vmatmul.mubr.msk.bf16.gmra.mrb[32].mxu1 %vm415_vm1, %v7738_v8  ;;  %7119 = vmatprep.mubr.msk.bf16.mxu0 %vm415_vm1, %v3197_v17  ;;  %v964_v8 = vshll.u32 %v7758_v63, 16 }
  0xa2   : > { %6955 = vmatprep.mubr.msk.bf16.mxu1 %vm415_vm1, %v903_v12  ;;  %v3209_v12 = vsel %vm3182_vm3, %v3206_v0, %v3208_v1  ;;  %v959_v23 = vsel %vm891_vm4, %v954_v15, %v958_v13 }
  0xa3   : > { %v966_v17 = vrot.slane %v964_v8, 1 }
  0xa5   : > { %v967_v26 = vsel %vm891_vm4, %v962_v16, %v966_v17  ;;  %v970_v36 = vor.u32 %v968_v25, %v966_v17  ;;  %v1020_v17 = vshll.u32 %v7772_v10, 16 }
  0xa8   : > { %7120 = vmatmul.mubr.msk.bf16.gmra.mrb[12].mxu0 %vm415_vm1, %v3199_v37 }
  0xa9   : > { %6956 = vmatmul.mubr.msk.bf16.vlgmr.msra.gmra.mrb[0].mxu1 %vm415_vm1, %v911_v28  ;;  %7123 = vmatprep.mubr.msk.bf16.mxu0 %vm415_vm1, %v3201_v39  ;;  %v980_v28 = vshll.u32 %v7762_v18, 16  ;;  %v7767_v39 = vld [vmem:[%s8210_s9 + $0x68] sm:$0xff]  }
  0xaa   : > { %6959 = vmatprep.mubr.msk.bf16.mxu1 %vm415_vm1, %v919_v34  ;;  %6992 = vmatpush3.bf16.msra.mxu1 %v1607_v31  ;;  %v3213_v31 = vsel %vm3182_vm3, %v3210_v19, %v3212_v20  ;;  %v974_v34 = vrot.slane %v972_v21, 1  ;;  %v1000_v0 = vshrl.u32 %v7767_v39, 16  ;;  %v7770_v19 = vld [vmem:[%s8210_s9 + $0x30] sm:$0xff]   ;;  %v1016_v20 = vshrl.u32 %v7771_v58, 16 }
  0xab   : > { %7550 = vmatprep.subr.msk.bf16.mxu1 %vm470_vm0, %v8377_v22  ;;  %v982_v38 = vrot.slane %v980_v28, 1 }
  0xac   : > { %v978_v37 = vor.u32 %v976_v27, %v974_v34  ;;  %v975_v43 = vsel %vm891_vm4, %v970_v36, %v974_v34  ;;  %v7773_v27 = vld [vmem:[%s8210_s9 + $0x38] sm:$0xff]   ;;  %v1030_v36 = vrot.slane %v1028_v24, 1 }
  0xad   : > { %v986_v55 = vor.u32 %v984_v45, %v982_v38  ;;  %v8429_v34 = vld [vmem:[#allocation6 + $0x10] sm:$0x3]  ;;  %v7774_v45 = vld [vmem:[%s8210_s9 + $0x40] sm:$0xff]  }
  0xae   : > { %v983_v47 = vsel %vm891_vm4, %v978_v37, %v982_v38  ;;  %v3703_v37 = vrot.slane %v7773_v27, 2  ;;  %v7790_v24 = vld [vmem:[%s8210_s9 + $0x78] sm:$0xff]  }
  0xaf   : > { %v991_v63 = vsel %vm891_vm4, %v986_v55, %v990_v53  ;;  %v7781_v55 = vld [vmem:[%s8210_s9 + $0x10] sm:$0xff]  }
  0xb0   : > { %7124 = vmatmul.mubr.msk.bf16.gmra.mrb[16].mxu0 %vm415_vm1, %v3203_v54  ;;  %v7768_v54 = vld [vmem:[%s8210_s9 + $0x70] sm:$0xff]  }
  0xb1   : > { %6960 = vmatmul.mubr.msk.bf16.gmra.mrb[4].mxu1 %vm415_vm1, %v927_v49  ;;  %7127 = vmatprep.mubr.msk.bf16.mxu0 %vm415_vm1, %v3205_v57  ;;  %v996_v49 = vshll.u32 %v7767_v39, 16  ;;  %v1004_v62 = vshll.u32 %v7768_v54, 16  ;;  %v1008_v2 = vshrl.u32 %v7768_v54, 16  ;;  %v1032_v39 = vshrl.u32 %v7775_v14, 16 }
  0xb2   : > { %6963 = vmatprep.mubr.msk.bf16.mxu1 %vm415_vm1, %v935_v51  ;;  %v7764_v51 = vld [vmem:[%s8210_s9 + $0x10] sm:$0xfc]  }
  0xb3   : > { %v998_v57 = vrot.slane %v996_v49, 1  ;;  %v3694_v61 = vrot.slane %v7764_v51, 2  ;;  %v1006_v8 = vrot.slane %v1004_v62, 1  ;;  %v1034_v48 = vor.u32 %v1032_v39, %v1030_v36 }
  0xb4   : > { %v1038_v49 = vrot.slane %v1036_v40, 1  ;;  %v1518_v62 = vrot.slane %v7781_v55, 1  ;;  %v1530_v39 = vrot.slane %v7793_v30, 1 }
  0xb5   : > { %v999_v1 = vsel %vm891_vm4, %v994_v56, %v998_v57  ;;  %v3696_v7 = vsel %vm3182_vm3, %v3694_v61, %v3695_v60  ;;  %v1002_v11 = vor.u32 %v1000_v0, %v998_v57  ;;  %v7784_v57 = vld [vmem:[%s8210_s9 + $0x18] sm:$0xff]   ;;  %v3709_v0 = vrot.slane %v7778_v59, 2 }
  0xb6   : > { %v1039_v54 = vsel %vm891_vm4, %v1034_v48, %v1038_v49  ;;  %v7803_v49 = vld [vmem:[%s8210_s9 + $0x18] sm:$0xff]  }
  0xb7   : > { %v1007_v18 = vsel %vm891_vm4, %v1002_v11, %v1006_v8  ;;  %v7786_v11 = vld [vmem:[%s8210_s9 + $0x68] sm:$0xff]   ;;  %v4215_v55 = vshrl.u32 %v7803_v49, 16 }
  0xb8   : > { %7128 = vmatmul.mubr.msk.bf16.gmra.mrb[20].mxu0 %vm415_vm1, %v3207_v9  ;;  %v7769_v9 = vld [vmem:[%s8210_s9 + $0x28] sm:$0xff]  }
  0xb9   : > { %6964 = vmatmul.mubr.msk.bf16.gmra.mrb[8].mxu1 %vm415_vm1, %v943_v3  ;;  %7131 = vmatprep.mubr.msk.bf16.mxu0 %vm415_vm1, %v3209_v12  ;;  %v1012_v3 = vshll.u32 %v7771_v58, 16  ;;  %v1010_v12 = vor.u32 %v1008_v2, %v1006_v8  ;;  %v3699_v16 = vrot.slane %v7769_v9, 2  ;;  %v7783_v9 = vld [vmem:[%s8210_s9 + $0x60] sm:$0xff]  }
  0xba   : > { %6967 = vmatprep.mubr.msk.bf16.mxu1 %vm415_vm1, %v951_v6  ;;  %v7766_v6 = vld [vmem:[%s8210_s9 + $0x20] sm:$0xff]   ;;  %v3713_v14 = vrot.slane %v7783_v9, 2 }
  0xbb   : > { %v1014_v13 = vrot.slane %v1012_v3, 1  ;;  %v3697_v15 = vrot.slane %v7766_v6, 2  ;;  %v7785_v3 = vld [vmem:[%s8210_s9 + $0x20] sm:$0xff]   ;;  %v2118_v6 = vsel %vm470_vm0, %v8377_v22, 0 }
  0xbd   : > { %v1015_v21 = vsel %vm891_vm4, %v1010_v12, %v1014_v13  ;;  %v3698_v25 = vsel %vm3182_vm3, %v3695_v60, %v3697_v15  ;;  %v3700_v28 = vsel %vm3182_vm3, %v3697_v15, %v3699_v16  ;;  %v7782_v60 = vld [vmem:[%s8210_s9 + $0x58] sm:$0xff]   ;;  %v1522_v12 = vrot.slane %v7785_v3, 1  ;;  %v7805_v3 = vld [vmem:[%s8210_s9 + $0x68] sm:$0xff]  }
  0xbe   : > { %v3715_v15 = vrot.slane %v7786_v11, 2 }
  0xc0   : > { %7132 = vmatmul.mubr.msk.bf16.gmra.mrb[24].mxu0 %vm415_vm1, %v3211_v29  ;;  %v1022_v29 = vrot.slane %v1020_v17, 1  ;;  %v7789_v17 = vld [vmem:[%s8210_s9 + $0x30] sm:$0xff]  }
  0xc1   : > { %6968 = vmatmul.mubr.msk.bf16.gmra.mrb[12].mxu1 %vm415_vm1, %v959_v23  ;;  %7135 = vmatprep.mubr.msk.bf16.mxu0 %vm415_vm1, %v3213_v31  ;;  %v1024_v23 = vshrl.u32 %v7772_v10, 16  ;;  %v1018_v31 = vor.u32 %v1016_v20, %v1014_v13  ;;  %v7873_v13 = vld [vmem:[#allocation6 + $0x8] sm:$0x3] }
  0xc2   : > { %6971 = vmatprep.mubr.msk.bf16.mxu1 %vm415_vm1, %v967_v26  ;;  %v4431_v26 = vsel %vm470_vm0, %v8339_v32, 0  ;;  %v3701_v32 = vrot.slane %v7770_v19, 2  ;;  %v7792_v19 = vld [vmem:[%s8210_s9 + $0x38] sm:$0xff]  }
  0xc3   : > { %v1026_v35 = vor.u32 %v1024_v23, %v1022_v29  ;;  %v1023_v38 = vsel %vm891_vm4, %v1018_v31, %v1022_v29  ;;  %v3716_v23 = vsel %vm3182_vm3, %v3713_v14, %v3715_v15 }
  0xc4   : > { %v3702_v44 = vsel %vm3182_vm3, %v3699_v16, %v3701_v32  ;;  %v3704_v46 = vsel %vm3182_vm3, %v3701_v32, %v3703_v37  ;;  %v7791_v32 = vld [vmem:[%s8210_s9 + $0x80] sm:$0xff]  }
  0xc5   : > { %v1031_v41 = vsel %vm891_vm4, %v1026_v35, %v1030_v36  ;;  %v7796_v35 = vld [vmem:[%s8210_s9 + $0x48] sm:$0xff]  }
  0xc6   : > { %v1532_v40 = vrot.slane %v7796_v35, 1 }
  0xc8   : > { %7136 = vmatmul.mubr.msk.bf16.gmra.mrb[28].mxu0 %vm415_vm1, %v3215_v50  ;;  %v1515_v50 = vrot.slane %v7779_v42, 1  ;;  %v1533_v48 = vsel %vm1514_vm5, %v1530_v39, %v1532_v40 }
  0xc9   : > { %6972 = vmatmul.mubr.msk.bf16.gmra.mrb[16].mxu1 %vm415_vm1, %v975_v43  ;;  %7139 = vmatprep.mubr.msk.bf16.mxu0 %vm415_vm1, %v3217_v52  ;;  %v7780_v43 = vld [vmem:[%s8210_s9 + $0x8] sm:$0xff]   ;;  %v3705_v52 = vrot.slane %v7774_v45, 2  ;;  %v7795_v45 = vld [vmem:[%s8210_s9 + $0x90] sm:$0xff]  }
  0xca   : > { %6975 = vmatprep.mubr.msk.bf16.mxu1 %vm415_vm1, %v983_v47  ;;  %v7777_v47 = vld [vmem:[%s8210_s9 + $0x48] sm:$0xff]   ;;  %v1516_v51 = vrot.slane %v7780_v43, 1  ;;  %v7797_v43 = vld [vmem:[%s8210_s9 + $0x50] sm:$0xff]  }
  0xcb   : > { %v3707_v53 = vrot.slane %v7777_v47, 2  ;;  %v3706_v58 = vsel %vm3182_vm3, %v3703_v37, %v3705_v52  ;;  %v7794_v37 = vld [vmem:[%s8210_s9 + $0x88] sm:$0xff]   ;;  %v7800_v47 = vld [vmem:[%s8210_s9 + $0x58] sm:$0xff]  }
  0xcc   : > { %v1517_v56 = vsel %vm1514_vm5, %v1515_v50, %v1516_v51  ;;  %v1519_v2 = vsel %vm1514_vm5, %v1516_v51, %v1518_v62  ;;  %v3723_v42 = vrot.slane %v7794_v37, 2  ;;  %v7802_v51 = vld [vmem:[%s8210_s9 + $0x10] sm:$0xfc]  }
  0xcd   : > { %v3708_v61 = vsel %vm3182_vm3, %v3705_v52, %v3707_v53  ;;  %v3710_v8 = vsel %vm3182_vm3, %v3707_v53, %v3709_v0  ;;  %v1534_v53 = vrot.slane %v7797_v43, 1  ;;  %v4207_v59 = vshrl.u32 %v7802_v51, 16  ;;  %v7810_v43 = vld [vmem:[%s8210_s9 + $0x80] sm:$0xff]  }
  0xd0   : > { %7140 = vmatmul.mubr.msk.bf16.gmra.mrb[32].mxu0 %vm415_vm1, %v3219_v4 }
  0xd1   : > { %6976 = vmatmul.mubr.msk.bf16.gmra.mrb[20].mxu1 %vm415_vm1, %v991_v63  ;;  %7145 = vmatprep.mubr.msk.bf16.mxu0 %vm415_vm1, %v3696_v7  ;;  %v1520_v63 = vrot.slane %v7784_v57, 1  ;;  %v7788_v7 = vld [vmem:[%s8210_s9 + $0x28] sm:$0xff]  }
  0xd2   : > { %6979 = vmatprep.mubr.msk.bf16.mxu1 %vm415_vm1, %v999_v1  ;;  %v3711_v1 = vrot.slane %v7782_v60, 2  ;;  %v1524_v22 = vrot.slane %v7788_v7, 1  ;;  %v4218_v60 = vshll.u32 %v7803_v49, 16 }
  0xd3   : > { %v1521_v4 = vsel %vm1514_vm5, %v1518_v62, %v1520_v63  ;;  %v1523_v16 = vsel %vm1514_vm5, %v1520_v63, %v1522_v12  ;;  %v4210_v62 = vshll.u32 %v7802_v51, 16  ;;  %v1535_v63 = vsel %vm1514_vm5, %v1532_v40, %v1534_v53  ;;  %v7815_v51 = vld [vmem:[%s8210_s9 + $0x48] sm:$0xff]  }
  0xd4   : > { %v3712_v10 = vsel %vm3182_vm3, %v3709_v0, %v3711_v1  ;;  %v3714_v20 = vsel %vm3182_vm3, %v3711_v1, %v3713_v14  ;;  %v7804_v0 = vld [vmem:[%s8210_s9 + $0x20] sm:$0xff]   ;;  %v4220_v7 = vrot.slane %v4218_v60, 3  ;;  %v4269_v60 = vshrl.u32 %v7815_v51, 16 }
  0xd5   : > { %v4212_v9 = vrot.slane %v4210_v62, 3  ;;  %v4227_v14 = vshll.u32 %v7804_v0, 16 }
  0xd8   : > { %7146 = vmatmul.mubr.msk.bf16.vlgmr.msra.gmra.mrb[0].mxu0 %vm415_vm1, %v3698_v25  ;;  %v1526_v25 = vrot.slane %v7789_v17, 1 }
  0xd9   : > { %6980 = vmatmul.mubr.msk.bf16.gmra.mrb[24].mxu1 %vm415_vm1, %v1007_v18  ;;  %7182 = vmatpush3.bf16.msra.mxu0 %v4431_v26  ;;  %v1525_v18 = vsel %vm1514_vm5, %v1522_v12, %v1524_v22  ;;  %v1528_v26 = vrot.slane %v7792_v19, 1 }
  0xda   : > { %6983 = vmatprep.mubr.msk.bf16.mxu1 %vm415_vm1, %v1015_v21  ;;  %7149 = vmatprep.mubr.msk.bf16.mxu0 %vm415_vm1, %v3700_v28  ;;  %v7787_v21 = vld [vmem:[%s8210_s9 + $0x70] sm:$0xff]   ;;  %v3719_v28 = vrot.slane %v7790_v24, 2  ;;  %v1527_v29 = vsel %vm1514_vm5, %v1524_v22, %v1526_v25  ;;  %v4224_v22 = vshrl.u32 %v7804_v0, 16 }
  0xdb   : > { %7556 = vmatprep.subr.msk.bf16.mxu0 %vm470_vm0, %v8429_v34  ;;  %v3717_v27 = vrot.slane %v7787_v21, 2  ;;  %v1529_v31 = vsel %vm1514_vm5, %v1526_v25, %v1528_v26  ;;  %v7809_v21 = vld [vmem:[%s8210_s9 + $0x78] sm:$0xff]  }
  0xdd   : > { %v3718_v36 = vsel %vm3182_vm3, %v3715_v15, %v3717_v27  ;;  %v7806_v15 = vld [vmem:[%s8210_s9 + $0x70] sm:$0xff]  }
  0xde   : > { %v1542_v35 = vrot.slane %v7806_v15, 1 }
  0xe0   : > { %7150 = vmatmul.mubr.msk.bf16.gmra.mrb[4].mxu0 %vm415_vm1, %v3702_v44  ;;  %v1531_v44 = vsel %vm1514_vm5, %v1528_v26, %v1530_v39  ;;  %v4229_v26 = vrot.slane %v4227_v14, 3 }
  0xe1   : > { %6984 = vmatmul.mubr.msk.bf16.gmra.mrb[28].mxu1 %vm415_vm1, %v1023_v38  ;;  %7153 = vmatprep.mubr.msk.bf16.mxu0 %vm415_vm1, %v3704_v46  ;;  %v3720_v38 = vsel %vm3182_vm3, %v3717_v27, %v3719_v28  ;;  %v7798_v46 = vld [vmem:[%s8210_s9 + $0x98] sm:$0xff]   ;;  %v7808_v27 = vld [vmem:[%s8210_s9 + $0x30] sm:$0xff]  }
  0xe2   : > { %6987 = vmatprep.mubr.msk.bf16.mxu1 %vm415_vm1, %v1031_v41  ;;  %v3721_v41 = vrot.slane %v7791_v32, 2  ;;  %v3727_v57 = vrot.slane %v7798_v46, 2  ;;  %v4242_v37 = vshrl.u32 %v7808_v27, 16 }
  0xe4   : > { %v3722_v50 = vsel %vm3182_vm3, %v3719_v28, %v3721_v41  ;;  %v3724_v52 = vsel %vm3182_vm3, %v3721_v41, %v3723_v42 }
  0xe8   : > { %7154 = vmatmul.mubr.msk.bf16.gmra.mrb[8].mxu0 %vm415_vm1, %v3706_v58  ;;  %v7799_v58 = vld [vmem:[%s8210_s9 + $0xa0] ss:$0 sps:$4 sm:$0x33]  }
  0xe9   : > { %6988 = vmatmul.mubr.msk.bf16.gmra.mrb[32].mxu1 %vm415_vm1, %v1039_v54  ;;  %7157 = vmatprep.mubr.msk.bf16.mxu0 %vm415_vm1, %v3708_v61  ;;  %v1536_v54 = vrot.slane %v7800_v47, 1  ;;  %v7801_v61 = vld [vmem:[%s8210_s9 + $0x60] sm:$0xff]   ;;  %v3729_v11 = vrot.slane %v7799_v58, 2  ;;  %v4943_v47 = vsel %vm470_vm0, %v8429_v34, 0 }
  0xea   : > { %6993 = vmatprep.mubr.msk.bf16.mxu1 %vm415_vm1, %v1517_v56  ;;  %v3725_v56 = vrot.slane %v7795_v45, 2  ;;  %v1538_v12 = vrot.slane %v7801_v61, 1  ;;  %v7813_v45 = vld [vmem:[%s8210_s9 + $0x88] sm:$0xff]   ;;  %v4272_v61 = vshll.u32 %v7815_v51, 16 }
  0xeb   : > { %v1537_v1 = vsel %vm1514_vm5, %v1534_v53, %v1536_v54  ;;  %v3730_v25 = vsel %vm3182_vm3, %v3727_v57, %v3729_v11  ;;  %v7820_v11 = vld [vmem:[%s8210_s9 + $0x58] sm:$0xff]  }
  0xf0   : > { %7158 = vmatmul.mubr.msk.bf16.gmra.mrb[12].mxu0 %vm415_vm1, %v3710_v8  ;;  %v3728_v8 = vsel %vm3182_vm3, %v3725_v56, %v3727_v57 }
  0xf1   : > { %6994 = vmatmul.mubr.msk.bf16.vlgmr.msra.gmra.mrb[0].mxu1 %vm415_vm1, %v1519_v2  ;;  %7161 = vmatprep.mubr.msk.bf16.mxu0 %vm415_vm1, %v3712_v10  ;;  %v4217_v2 = vrot.slane %v4215_v55, 2  ;;  %v7807_v10 = vld [vmem:[%s8210_s9 + $0x28] sm:$0xff]   ;;  %v1546_v55 = vrot.slane %v7810_v43, 1 }
  0xf2   : > { %6997 = vmatprep.mubr.msk.bf16.mxu1 %vm415_vm1, %v1521_v4  ;;  %7030 = vmatpush3.bf16.msra.mxu1 %v2118_v6  ;;  %v3726_v4 = vsel %vm3182_vm3, %v3723_v42, %v3725_v56  ;;  %v4209_v6 = vrot.slane %v4207_v59, 2  ;;  %v4236_v19 = vshll.u32 %v7807_v10, 16  ;;  %v1548_v56 = vrot.slane %v7813_v45, 1 }
  0xf3   : > { %7552 = vmatprep.subr.msk.bf16.mxu1 %vm470_vm0, %v7873_v13  ;;  %v1540_v13 = vrot.slane %v7805_v3, 1  ;;  %v4221_v17 = vor.u32 %v4220_v7, %v4217_v2  ;;  %v7818_v2 = vld [vmem:[%s8210_s9 + $0x10] sm:$0xff]  }
  0xf4   : > { %v4238_v30 = vrot.slane %v4236_v19, 3  ;;  %v1549_v0 = vsel %vm1514_vm5, %v1546_v55, %v1548_v56  ;;  %v7816_v7 = vld [vmem:[%s8210_s9 + $0x50] sm:$0xff]   ;;  %v4290_v19 = vshll.u32 %v7820_v11, 16 }
  0xf5   : > { %v1541_v24 = vsel %vm1514_vm5, %v1538_v12, %v1540_v13  ;;  %v1543_v42 = vsel %vm1514_vm5, %v1540_v13, %v1542_v35  ;;  %v2027_v13 = vrot.slane %v7818_v2, 1  ;;  %v4278_v15 = vshrl.u32 %v7816_v7, 16 }
  0xf8   : > { %7162 = vmatmul.mubr.msk.bf16.gmra.mrb[16].mxu0 %vm415_vm1, %v3714_v20  ;;  %v1539_v20 = vsel %vm1514_vm5, %v1536_v54, %v1538_v12 }
  0xf9   : > { %6998 = vmatmul.mubr.msk.bf16.gmra.mrb[4].mxu1 %vm415_vm1, %v1523_v16  ;;  %7165 = vmatprep.mubr.msk.bf16.mxu0 %vm415_vm1, %v3716_v23  ;;  %v4213_v16 = vor.u32 %v4212_v9, %v4209_v6  ;;  %v4226_v23 = vrot.slane %v4224_v22, 2  ;;  %v4271_v9 = vrot.slane %v4269_v60, 2 }
  0xfa   : > { %7001 = vmatprep.mubr.msk.bf16.mxu1 %vm415_vm1, %v1525_v18  ;;  %v4233_v18 = vshrl.u32 %v7807_v10, 16  ;;  %v4274_v10 = vrot.slane %v4272_v61, 3 }
  0xfb   : > { %v4222_v28 = vsel %vm4205_vm6, %v4213_v16, %v4221_v17  ;;  %v4230_v32 = vor.u32 %v4229_v26, %v4226_v23  ;;  %v4281_v16 = vshll.u32 %v7816_v7, 16  ;;  %v4280_v26 = vrot.slane %v4278_v15, 2 }
  0xfd   : > { %v4231_v46 = vsel %vm4205_vm6, %v4221_v17, %v4230_v32  ;;  %v4275_v17 = vor.u32 %v4274_v10, %v4271_v9  ;;  %v7832_v9 = vld [vmem:[%s8210_s9 + $0x88] sm:$0xff]  }
  0xfe   : > { %v4341_v15 = vshrl.u32 %v7832_v9, 16 }
 0x100   : > { %7166 = vmatmul.mubr.msk.bf16.gmra.mrb[20].mxu0 %vm415_vm1, %v3718_v36  ;;  %v1544_v36 = vrot.slane %v7809_v21, 1  ;;  %v7819_v21 = vld [vmem:[%s8210_s9 + $0x18] sm:$0xff]  }
 0x101   : > { %7002 = vmatmul.mubr.msk.bf16.gmra.mrb[8].mxu1 %vm415_vm1, %v1527_v29  ;;  %7169 = vmatprep.mubr.msk.bf16.mxu0 %vm415_vm1, %v3720_v38  ;;  %v4235_v29 = vrot.slane %v4233_v18, 2  ;;  %v4245_v38 = vshll.u32 %v7808_v27, 16  ;;  %v4287_v18 = vshrl.u32 %v7820_v11, 16  ;;  %v4283_v27 = vrot.slane %v4281_v16, 3 }
 0x102   : > { %7005 = vmatprep.mubr.msk.bf16.mxu1 %vm415_vm1, %v1529_v31  ;;  %v7811_v31 = vld [vmem:[%s8210_s9 + $0x38] sm:$0xff]   ;;  %v1547_v62 = vsel %vm1514_vm5, %v1544_v36, %v1546_v55  ;;  %v4344_v16 = vshll.u32 %v7832_v9, 16 }
 0x103   : > { %v4239_v39 = vor.u32 %v4238_v30, %v4235_v29  ;;  %v4251_v40 = vshrl.u32 %v7811_v31, 16  ;;  %v4254_v41 = vshll.u32 %v7811_v31, 16  ;;  %v4247_v49 = vrot.slane %v4245_v38, 3 }
 0x104   : > { %v4289_v30 = vrot.slane %v4287_v18, 2  ;;  %v4292_v31 = vrot.slane %v4290_v19, 3  ;;  %v7831_v18 = vld [vmem:[%s8210_s9 + $0x48] sm:$0xff]  }
 0x105   : > { %v4253_v53 = vrot.slane %v4251_v40, 2  ;;  %v4256_v54 = vrot.slane %v4254_v41, 3 }
 0x106   : > { %v4293_v40 = vor.u32 %v4292_v31, %v4289_v30  ;;  %v2041_v30 = vrot.slane %v7831_v18, 1 }
 0x107   : > { %v4257_v59 = vor.u32 %v4256_v54, %v4253_v53  ;;  %v7828_v54 = vld [vmem:[%s8210_s9 + $0x78] sm:$0xff]  }
 0x108   : > { %7170 = vmatmul.mubr.msk.bf16.gmra.mrb[24].mxu0 %vm415_vm1, %v3722_v50  ;;  %v7812_v50 = vld [vmem:[%s8210_s9 + $0x40] sm:$0xff]   ;;  %v4323_v60 = vshrl.u32 %v7828_v54, 16  ;;  %v4326_v61 = vshll.u32 %v7828_v54, 16 }
 0x109   : > { %7006 = vmatmul.mubr.msk.bf16.gmra.mrb[12].mxu1 %vm415_vm1, %v1531_v44  ;;  %7173 = vmatprep.mubr.msk.bf16.mxu0 %vm415_vm1, %v3724_v52  ;;  %v1545_v44 = vsel %vm1514_vm5, %v1542_v35, %v1544_v36  ;;  %v4240_v52 = vsel %vm4205_vm6, %v4230_v32, %v4239_v39  ;;  %v4260_v57 = vshrl.u32 %v7812_v50, 16  ;;  %v4263_v58 = vshll.u32 %v7812_v50, 16  ;;  %v7824_v35 = vld [vmem:[%s8210_s9 + $0x68] sm:$0xff]   ;;  %v7825_v50 = vld [vmem:[%s8210_s9 + $0x70] sm:$0xff]  }
 0x10a   : > { %7009 = vmatprep.mubr.msk.bf16.mxu1 %vm415_vm1, %v1533_v48  ;;  %v4244_v48 = vrot.slane %v4242_v37, 2  ;;  %v2029_v36 = vrot.slane %v7819_v21, 1  ;;  %v4284_v37 = vor.u32 %v4283_v27, %v4280_v26  ;;  %v4305_v41 = vshrl.u32 %v7824_v35, 16 }
 0x10b   : > { %v4265_v6 = vrot.slane %v4263_v58, 3  ;;  %v4317_v58 = vshll.u32 %v7825_v50, 16  ;;  %v4325_v7 = vrot.slane %v4323_v60, 2  ;;  %v4343_v27 = vrot.slane %v4341_v15, 2 }
 0x10c   : > { %v4248_v34 = vor.u32 %v4247_v49, %v4244_v48  ;;  %v2030_v43 = vsel %vm1514_vm5, %v2027_v13, %v2029_v36  ;;  %v4294_v51 = vsel %vm4205_vm6, %v4284_v37, %v4293_v40 }
 0x10e   : > { %v4249_v3 = vsel %vm4205_vm6, %v4239_v39, %v4248_v34 }
 0x110   : > { %7174 = vmatmul.mubr.msk.bf16.gmra.mrb[28].mxu0 %vm415_vm1, %v3726_v4  ;;  %v4262_v4 = vrot.slane %v4260_v57, 2  ;;  %v4314_v57 = vshrl.u32 %v7825_v50, 16 }
 0x111   : > { %7010 = vmatmul.mubr.msk.bf16.gmra.mrb[16].mxu1 %vm415_vm1, %v1535_v63  ;;  %7177 = vmatprep.mubr.msk.bf16.mxu0 %vm415_vm1, %v3728_v8  ;;  %v7814_v63 = vld [vmem:[%s8210_s9 + $0x90] ss:$0 sps:$4 sm:$0x11]   ;;  %v4258_v8 = vsel %vm4205_vm6, %v4248_v34, %v4257_v59 }
 0x112   : > { %7013 = vmatprep.mubr.msk.bf16.mxu1 %vm415_vm1, %v1537_v1  ;;  %v7817_v1 = vld [vmem:[%s8210_s9 + $0x8] sm:$0xfe]   ;;  %v1550_v12 = vrot.slane %v7814_v63, 1  ;;  %v4266_v14 = vor.u32 %v4265_v6, %v4262_v4  ;;  %v7827_v63 = vld [vmem:[%s8210_s9 + $0x38] sm:$0xff]   ;;  %v4316_v2 = vrot.slane %v4314_v57, 2  ;;  %v7829_v4 = vld [vmem:[%s8210_s9 + $0x80] sm:$0xff]  }
 0x113   : > { %v2026_v22 = vrot.slane %v7817_v1, 1  ;;  %v7830_v1 = vld [vmem:[%s8210_s9 + $0x40] sm:$0xff]   ;;  %v2037_v10 = vrot.slane %v7827_v63, 1  ;;  %v7839_v57 = vld [vmem:[%s8210_s9 + $0x68] sm:$0xff]  }
 0x114   : > { %v4276_v29 = vsel %vm4205_vm6, %v4266_v14, %v4275_v17  ;;  %v2039_v11 = vrot.slane %v7830_v1, 1  ;;  %v7841_v1 = vld [vmem:[%s8210_s9 + $0x18] sm:$0xff]  }
 0x115   : > { %v2028_v23 = vsel %vm1514_vm5, %v2026_v22, %v2027_v13  ;;  %v4332_v22 = vshrl.u32 %v7829_v4, 16  ;;  %v4335_v13 = vshll.u32 %v7829_v4, 16 }
 0x116   : > { %v2040_v19 = vsel %vm1514_vm5, %v2037_v10, %v2039_v11 }
 0x118   : > { %7178 = vmatmul.mubr.msk.bf16.gmra.mrb[32].mxu0 %vm415_vm1, %v3730_v25  ;;  %v4267_v25 = vsel %vm4205_vm6, %v4257_v59, %v4266_v14 }
 0x119   : > { %7014 = vmatmul.mubr.msk.bf16.gmra.mrb[20].mxu1 %vm415_vm1, %v1539_v20  ;;  %7183 = vmatprep.mubr.msk.bf16.mxu0 %vm415_vm1, %v4222_v28  ;;  %v1551_v20 = vsel %vm1514_vm5, %v1548_v56, %v1550_v12  ;;  %v7821_v28 = vld [vmem:[%s8210_s9 + $0x60] sm:$0xff]  }
 0x11a   : > { %7017 = vmatprep.mubr.msk.bf16.mxu1 %vm415_vm1, %v1541_v24  ;;  %v7822_v24 = vld [vmem:[%s8210_s9 + $0x20] sm:$0xff]   ;;  %v4296_v38 = vshrl.u32 %v7821_v28, 16  ;;  %v4299_v39 = vshll.u32 %v7821_v28, 16  ;;  %v4346_v28 = vrot.slane %v4344_v16, 3 }
 0x11b   : > { %v2031_v32 = vrot.slane %v7822_v24, 1  ;;  %v4337_v24 = vrot.slane %v4335_v13, 3  ;;  %v7845_v13 = vld [vmem:[%s8210_s9 + $0x28] sm:$0xff]  }
 0x11c   : > { %v4298_v48 = vrot.slane %v4296_v38, 2  ;;  %v4301_v49 = vrot.slane %v4299_v39, 3 }
 0x11d   : > { %v2032_v45 = vsel %vm1514_vm5, %v2029_v36, %v2031_v32 }
 0x11e   : > { %v4302_v34 = vor.u32 %v4301_v49, %v4298_v48 }
 0x120   : > { %7184 = vmatmul.mubr.msk.bf16.vlgmr.msra.gmra.mrb[0].mxu0 %vm415_vm1, %v4231_v46  ;;  %v7826_v46 = vld [vmem:[%s8210_s9 + $0x30] sm:$0xff]  }
 0x121   : > { %7018 = vmatmul.mubr.msk.bf16.gmra.mrb[24].mxu1 %vm415_vm1, %v1543_v42  ;;  %7220 = vmatpush3.bf16.msra.mxu0 %v4943_v47  ;;  %v4308_v42 = vshll.u32 %v7824_v35, 16  ;;  %v4285_v47 = vsel %vm4205_vm6, %v4275_v17, %v4284_v37  ;;  %v2035_v56 = vrot.slane %v7826_v46, 1  ;;  %v4347_v37 = vor.u32 %v4346_v28, %v4343_v27  ;;  %v7849_v27 = vld [vmem:[%s8210_s9 + $0x38] sm:$0xff]  }
 0x122   : > { %7021 = vmatprep.mubr.msk.bf16.mxu1 %vm415_vm1, %v1545_v44  ;;  %7187 = vmatprep.mubr.msk.bf16.mxu0 %vm415_vm1, %v4240_v52  ;;  %v7823_v44 = vld [vmem:[%s8210_s9 + $0x28] sm:$0xff]   ;;  %v4307_v52 = vrot.slane %v4305_v41, 2  ;;  %v7835_v41 = vld [vmem:[%s8210_s9 + $0x58] sm:$0xff]  }
 0x123   : > { %v4310_v53 = vrot.slane %v4308_v42, 3  ;;  %v2033_v55 = vrot.slane %v7823_v44, 1  ;;  %v2038_v17 = vsel %vm1514_vm5, %v2035_v56, %v2037_v10  ;;  %v7847_v10 = vld [vmem:[%s8210_s9 + $0x80] sm:$0xff]  }
 0x124   : > { %v2055_v15 = vrot.slane %v7847_v10, 1 }
 0x125   : > { %v4311_v59 = vor.u32 %v4310_v53, %v4307_v52 }
 0x127   : > { %v4312_v6 = vsel %vm4205_vm6, %v4302_v34, %v4311_v59 }
 0x128   : > { %7188 = vmatmul.mubr.msk.bf16.gmra.mrb[4].mxu0 %vm415_vm1, %v4249_v3  ;;  %v4319_v3 = vrot.slane %v4317_v58, 3 }
 0x129   : > { %7022 = vmatmul.mubr.msk.bf16.gmra.mrb[28].mxu1 %vm415_vm1, %v1547_v62  ;;  %7191 = vmatprep.mubr.msk.bf16.mxu0 %vm415_vm1, %v4258_v8  ;;  %v2034_v62 = vsel %vm1514_vm5, %v2031_v32, %v2033_v55  ;;  %v4328_v8 = vrot.slane %v4326_v61, 3 }
 0x12a   : > { %7025 = vmatprep.mubr.msk.bf16.mxu1 %vm415_vm1, %v1549_v0  ;;  %v2036_v0 = vsel %vm1514_vm5, %v2033_v55, %v2035_v56  ;;  %v4320_v12 = vor.u32 %v4319_v3, %v4316_v2 }
 0x12b   : > { %v4329_v14 = vor.u32 %v4328_v8, %v4325_v7  ;;  %v7844_v8 = vld [vmem:[%s8210_s9 + $0x78] sm:$0xff]  }
 0x12c   : > { %v4321_v21 = vsel %vm4205_vm6, %v4311_v59, %v4320_v12  ;;  %v7843_v59 = vld [vmem:[%s8210_s9 + $0x70] sm:$0xff]  }
 0x12d   : > { %v4330_v26 = vsel %vm4205_vm6, %v4320_v12, %v4329_v14  ;;  %v2051_v2 = vrot.slane %v7843_v59, 1  ;;  %v7842_v12 = vld [vmem:[%s8210_s9 + $0x20] sm:$0xff]  }
 0x12e   : > { %v4854_v16 = vrot.slane %v7842_v12, 3  ;;  %v7864_v12 = vld [vmem:[%s8210_s9 + $0x88] sm:$0xff]  }
 0x130   : > { %7192 = vmatmul.mubr.msk.bf16.gmra.mrb[8].mxu0 %vm415_vm1, %v4267_v25  ;;  %v7833_v25 = vld [vmem:[%s8210_s9 + $0x90] sm:$0xff]  }
 0x131   : > { %7026 = vmatmul.mubr.msk.bf16.gmra.mrb[32].mxu1 %vm415_vm1, %v1551_v20  ;;  %7195 = vmatprep.mubr.msk.bf16.mxu0 %vm415_vm1, %v4276_v29  ;;  %v7834_v20 = vld [vmem:[%s8210_s9 + $0x50] sm:$0xff]   ;;  %v7836_v29 = vld [vmem:[%s8210_s9 + $0x98] sm:$0xff]   ;;  %v4350_v36 = vshrl.u32 %v7833_v25, 16  ;;  %v4353_v32 = vshll.u32 %v7833_v25, 16 }
 0x132   : > { %7031 = vmatprep.mubr.msk.bf16.mxu1 %vm415_vm1, %v2028_v23  ;;  %v4334_v23 = vrot.slane %v4332_v22, 2  ;;  %v2043_v31 = vrot.slane %v7834_v20, 1  ;;  %v4359_v38 = vshrl.u32 %v7836_v29, 16  ;;  %v4362_v39 = vshll.u32 %v7836_v29, 16  ;;  %v7846_v25 = vld [vmem:[%s8210_s9 + $0x30] sm:$0xff]  }
 0x133   : > { %v4355_v46 = vrot.slane %v4353_v32, 3 }
 0x134   : > { %v4338_v35 = vor.u32 %v4337_v24, %v4334_v23  ;;  %v2044_v42 = vsel %vm1514_vm5, %v2041_v30, %v2043_v31  ;;  %v4361_v49 = vrot.slane %v4359_v38, 2  ;;  %v4364_v50 = vrot.slane %v4362_v39, 3  ;;  %v7855_v23 = vld [vmem:[%s8210_s9 + $0x60] sm:$0xff]   ;;  %v7856_v38 = vld [vmem:[%s8210_s9 + $0x68] sm:$0xff]  }
 0x136   : > { %v4339_v44 = vsel %vm4205_vm6, %v4329_v14, %v4338_v35  ;;  %v4348_v48 = vsel %vm4205_vm6, %v4338_v35, %v4347_v37  ;;  %v4365_v56 = vor.u32 %v4364_v50, %v4361_v49  ;;  %v2053_v14 = vrot.slane %v7844_v8, 1 }
 0x137   : > { %v4858_v35 = vrot.slane %v7846_v25, 3  ;;  %v2649_v49 = vshll.u32 %v7856_v38, 16 }
 0x138   : > { %7196 = vmatmul.mubr.msk.bf16.gmra.mrb[12].mxu0 %vm415_vm1, %v4285_v47  ;;  %v7837_v47 = vld [vmem:[%s8210_s9 + $0xa0] ss:$0 sps:$4 sm:$0x77]   ;;  %v2054_v18 = vsel %vm1514_vm5, %v2051_v2, %v2053_v14  ;;  %v2056_v20 = vsel %vm1514_vm5, %v2053_v14, %v2055_v15 }
 0x139   : > { %7032 = vmatmul.mubr.msk.bf16.vlgmr.msra.gmra.mrb[0].mxu1 %vm415_vm1, %v2030_v43  ;;  %7199 = vmatprep.mubr.msk.bf16.mxu0 %vm415_vm1, %v4294_v51  ;;  %v7838_v43 = vld [vmem:[%s8210_s9 + $0x60] sm:$0xff]   ;;  %v2045_v51 = vrot.slane %v7835_v41, 1  ;;  %v4368_v54 = vshrl.u32 %v7837_v47, 16  ;;  %v4371_v55 = vshll.u32 %v7837_v47, 16 }
 0x13a   : > { %7035 = vmatprep.mubr.msk.bf16.mxu1 %vm415_vm1, %v2032_v45  ;;  %7258 = vmatpush3.bf16.msra.mxu1 %v8227_v5  ;;  %v4303_v5 = vsel %vm4205_vm6, %v4293_v40, %v4302_v34  ;;  %v2042_v40 = vsel %vm1514_vm5, %v2039_v11, %v2041_v30  ;;  %v4352_v45 = vrot.slane %v4350_v36, 2  ;;  %v2047_v52 = vrot.slane %v7838_v43, 1 }
 0x13b   : > { %v2046_v34 = vsel %vm1514_vm5, %v2043_v31, %v2045_v51  ;;  %v4370_v61 = vrot.slane %v4368_v54, 2  ;;  %v2637_v30 = vshrl.u32 %v7855_v23, 16  ;;  %v2640_v31 = vshll.u32 %v7855_v23, 16 }
 0x13c   : > { %v4356_v53 = vor.u32 %v4355_v46, %v4352_v45  ;;  %v2048_v58 = vsel %vm1514_vm5, %v2045_v51, %v2047_v52  ;;  %v4860_v36 = vrot.slane %v7849_v27, 3  ;;  %v7853_v46 = vld [vmem:[%s8210_s9 + $0x48] sm:$0xff]   ;;  %v2685_v23 = vshll.u32 %v7864_v12, 16 }
 0x13d   : > { %v2642_v41 = vrot.slane %v2640_v31, 2  ;;  %v4864_v54 = vrot.slane %v7853_v46, 3 }
 0x13e   : > { %v4357_v60 = vsel %vm4205_vm6, %v4347_v37, %v4356_v53  ;;  %v4366_v63 = vsel %vm4205_vm6, %v4356_v53, %v4365_v56  ;;  %v7852_v37 = vld [vmem:[%s8210_s9 + $0x98] ss:$0 sps:$4 sm:$0x11]   ;;  %v4861_v45 = vsel %vm4850_vm7, %v4858_v35, %v4860_v36  ;;  %v2687_v31 = vrot.slane %v2685_v23, 2 }
 0x13f   : > { %v2061_v47 = vrot.slane %v7852_v37, 1 }
 0x140   : > { %7200 = vmatmul.mubr.msk.bf16.gmra.mrb[16].mxu0 %vm415_vm1, %v4303_v5  ;;  %v2049_v5 = vrot.slane %v7839_v57, 1  ;;  %v7860_v57 = vld [vmem:[%s8210_s9 + $0x78] sm:$0xff]  }
 0x141   : > { %7036 = vmatmul.mubr.msk.bf16.gmra.mrb[4].mxu1 %vm415_vm1, %v2034_v62  ;;  %7203 = vmatprep.mubr.msk.bf16.mxu0 %vm415_vm1, %v4312_v6  ;;  %v4373_v62 = vrot.slane %v4371_v55, 3  ;;  %v4852_v6 = vrot.slane %v7841_v1, 3  ;;  %v7857_v1 = vld [vmem:[%s8210_s9 + $0x58] sm:$0xff]  }
 0x142   : > { %7039 = vmatprep.mubr.msk.bf16.mxu1 %vm415_vm1, %v2036_v0  ;;  %v7840_v0 = vld [vmem:[%s8210_s9 + $0x10] sm:$0xf8]   ;;  %v2050_v7 = vsel %vm1514_vm5, %v2047_v52, %v2049_v5  ;;  %v2052_v9 = vsel %vm1514_vm5, %v2049_v5, %v2051_v2  ;;  %v2664_v2 = vshrl.u32 %v7860_v57, 16  ;;  %v4868_v8 = vrot.slane %v7857_v1, 3 }
 0x143   : > { %v4374_v3 = vor.u32 %v4373_v62, %v4370_v61  ;;  %v4851_v4 = vrot.slane %v7840_v0, 3  ;;  %v4855_v24 = vsel %vm4850_vm7, %v4852_v6, %v4854_v16  ;;  %v7863_v61 = vld [vmem:[%s8210_s9 + $0x80] sm:$0xff]  }
 0x144   : > { %v2666_v10 = vrot.slane %v2664_v2, 1 }
 0x145   : > { %v4375_v11 = vsel %vm4205_vm6, %v4365_v56, %v4374_v3  ;;  %v4853_v22 = vsel %vm4850_vm7, %v4851_v4, %v4852_v6  ;;  %v2667_v3 = vshll.u32 %v7860_v57, 16  ;;  %v2673_v4 = vshrl.u32 %v7863_v61, 16 }
 0x146   : > { %v2676_v6 = vshll.u32 %v7863_v61, 16 }
 0x148   : > { %7204 = vmatmul.mubr.msk.bf16.gmra.mrb[20].mxu0 %vm415_vm1, %v4321_v21  ;;  %v7851_v21 = vld [vmem:[%s8210_s9 + $0x90] sm:$0xff]   ;;  %v2678_v14 = vrot.slane %v2676_v6, 2 }
 0x149   : > { %7040 = vmatmul.mubr.msk.bf16.gmra.mrb[8].mxu1 %vm415_vm1, %v2038_v17  ;;  %7207 = vmatprep.mubr.msk.bf16.mxu0 %vm415_vm1, %v4330_v26  ;;  %v4856_v17 = vrot.slane %v7845_v13, 3  ;;  %v2059_v29 = vrot.slane %v7851_v21, 1  ;;  %v2675_v13 = vrot.slane %v2673_v4, 1  ;;  %v2682_v21 = vshrl.u32 %v7864_v12, 16 }
 0x14a   : > { %7043 = vmatprep.mubr.msk.bf16.mxu1 %vm415_vm1, %v2040_v19  ;;  %v7848_v19 = vld [vmem:[%s8210_s9 + $0x88] sm:$0xff]   ;;  %v5266_v4 = vlaneseq }
 0x14b   : > { %v4857_v26 = vsel %vm4850_vm7, %v4854_v16, %v4856_v17  ;;  %v2057_v28 = vrot.slane %v7848_v19, 1  ;;  %v4859_v43 = vsel %vm4850_vm7, %v4856_v17, %v4858_v35  ;;  %v2062_v55 = vsel %vm1514_vm5, %v2059_v29, %v2061_v47  ;;  %v7858_v17 = vld [vmem:[%s8210_s9 + $0x60] sm:$0xff]   ;;  %v7861_v19 = vld [vmem:[%s8210_s9 + $0x68] sm:$0xff]   ;;  %v7868_v35 = vld [vmem:[%s8210_s9 + $0x98] ss:$0 sps:$4 sm:$0x33]  }
 0x14c   : > { %v4870_v27 = vrot.slane %v7858_v17, 3  ;;  %v8735_v6 = vshrl.u32 %v5266_v4, 7 }
 0x14d   : > { %v2058_v32 = vsel %vm1514_vm5, %v2055_v15, %v2057_v28  ;;  %v2060_v39 = vsel %vm1514_vm5, %v2057_v28, %v2059_v29  ;;  %v7867_v15 = vld [vmem:[%s8210_s9 + $0x90] sm:$0xff]   ;;  %v4872_v28 = vrot.slane %v7861_v19, 3 }
 0x14e   : > { %v2691_v25 = vshrl.u32 %v7867_v15, 16  ;;  %v5270_v12 = vadd.s32 24, %v8735_v6 }
 0x150   : > { %7208 = vmatmul.mubr.msk.bf16.gmra.mrb[24].mxu0 %vm415_vm1, %v4339_v44  ;;  %v7850_v44 = vld [vmem:[%s8210_s9 + $0x40] sm:$0xff]  }
 0x151   : > { %7044 = vmatmul.mubr.msk.bf16.gmra.mrb[12].mxu1 %vm415_vm1, %v2042_v40  ;;  %7211 = vmatprep.mubr.msk.bf16.mxu0 %vm415_vm1, %v4348_v48  ;;  %v2639_v40 = vrot.slane %v2637_v30, 1  ;;  %v2646_v48 = vshrl.u32 %v7856_v38, 16  ;;  %v4862_v53 = vrot.slane %v7850_v44, 3  ;;  %v2684_v30 = vrot.slane %v2682_v21, 1 }
 0x152   : > { %7047 = vmatprep.mubr.msk.bf16.mxu1 %vm415_vm1, %v2044_v42  ;;  %v7859_v42 = vld [vmem:[%s8210_s9 + $0x70] sm:$0xff]   ;;  %v4871_v38 = vsel %vm4850_vm7, %v4868_v8, %v4870_v27  ;;  %v2703_v44 = vshll.u32 %v7868_v35, 16 }
 0x153   : > { %v2643_v50 = vor.u32 %v2642_v41, %v2639_v40  ;;  %v2655_v51 = vshrl.u32 %v7859_v42, 16  ;;  %v2658_v52 = vshll.u32 %v7859_v42, 16  ;;  %v2648_v56 = vrot.slane %v2646_v48, 1  ;;  %v7865_v41 = vld [vmem:[%s8210_s9 + $0x78] sm:$0xff]  }
 0x154   : > { %v4863_v62 = vsel %vm4850_vm7, %v4860_v36, %v4862_v53  ;;  %v4865_v0 = vsel %vm4850_vm7, %v4862_v53, %v4864_v54  ;;  %v4873_v40 = vsel %vm4850_vm7, %v4870_v27, %v4872_v28  ;;  %v2688_v42 = vor.u32 %v2687_v31, %v2684_v30  ;;  %v7866_v53 = vld [vmem:[%s8210_s9 + $0x80] sm:$0xff]  }
 0x155   : > { %v2657_v59 = vrot.slane %v2655_v51, 1  ;;  %v4876_v47 = vrot.slane %v7865_v41, 3  ;;  %v8784_v41 = vadd.s32 64, %v8735_v6 }
 0x158   : > { %7212 = vmatmul.mubr.msk.bf16.gmra.mrb[28].mxu0 %vm415_vm1, %v4357_v60  ;;  %v2660_v60 = vrot.slane %v2658_v52, 2 }
 0x159   : > { %7048 = vmatmul.mubr.msk.bf16.gmra.mrb[16].mxu1 %vm415_vm1, %v2046_v34  ;;  %7215 = vmatprep.mubr.msk.bf16.mxu0 %vm415_vm1, %v4366_v63  ;;  %v2651_v34 = vrot.slane %v2649_v49, 2  ;;  %v7854_v63 = vld [vmem:[%s8210_s9 + $0x50] sm:$0xff]  }
 0x15a   : > { %7051 = vmatprep.mubr.msk.bf16.mxu1 %vm415_vm1, %v2048_v58  ;;  %v2644_v58 = vsel %vm2537_vm2, %v8285_v33, %v2643_v50  ;;  %v2661_v33 = vor.u32 %v2660_v60, %v2657_v59  ;;  %v7870_v60 = vld [vmem:[%s8210_s9 + $0x90] sm:$0xff]  }
 0x15b   : > { %v2652_v5 = vor.u32 %v2651_v34, %v2648_v56  ;;  %v4878_v34 = vrot.slane %v7866_v53, 3 }
 0x15d   : > { %v4879_v59 = vsel %vm4850_vm7, %v4876_v47, %v4878_v34 }
 0x160   : > { %7216 = vmatmul.mubr.msk.bf16.gmra.mrb[32].mxu0 %vm415_vm1, %v4375_v11  ;;  %v2669_v11 = vrot.slane %v2667_v3, 2 }
 0x161   : > { %7052 = vmatmul.mubr.msk.bf16.gmra.mrb[20].mxu1 %vm415_vm1, %v2050_v7  ;;  %7221 = vmatprep.mubr.msk.bf16.mxu0 %vm415_vm1, %v4853_v22  ;;  %v4866_v7 = vrot.slane %v7854_v63, 3  ;;  %v2662_v22 = vsel %vm2537_vm2, %v2652_v5, %v2661_v33  ;;  %v4882_v63 = vrot.slane %v7870_v60, 3 }
 0x162   : > { %7055 = vmatprep.mubr.msk.bf16.mxu1 %vm415_vm1, %v2052_v9  ;;  %v2653_v9 = vsel %vm2537_vm2, %v2643_v50, %v2652_v5  ;;  %v2705_v50 = vrot.slane %v2703_v44, 2  ;;  %v7872_v5 = vld [vmem:[%s8210_s9 + $0xa0] ss:$0 sps:$4 sm:$0x77]  }
 0x163   : > { %v4867_v16 = vsel %vm4850_vm7, %v4864_v54, %v4866_v7  ;;  %v4886_v3 = vrot.slane %v7872_v5, 3 }
 0x168   : > { %7222 = vmatmul.mubr.msk.bf16.vlgmr.msra.gmra.mrb[0].mxu0 %vm415_vm1, %v4855_v24  ;;  %v2679_v24 = vor.u32 %v2678_v14, %v2675_v13  ;;  %v8747_v13 = vmul.u32.u64.low 3817748708, %v5270_v12  ;;  %v8748_v14 = vmul.u32.u64.high 3817748708, %v5270_v12, %v8747_v13 }
 0x169   : > { %7056 = vmatmul.mubr.msk.bf16.gmra.mrb[24].mxu1 %vm415_vm1, %v2054_v18  ;;  %7225 = vmatprep.mubr.msk.bf16.mxu0 %vm415_vm1, %v4857_v26  ;;  %v4869_v18 = vsel %vm4850_vm7, %v4866_v7, %v4868_v8  ;;  %v2694_v26 = vshll.u32 %v7867_v15, 16  ;;  %v5269_v7 = vadd.s32 16, %v8735_v6 }
 0x16a   : > { %7059 = vmatprep.mubr.msk.bf16.mxu1 %vm415_vm1, %v2056_v20  ;;  %v2670_v20 = vor.u32 %v2669_v11, %v2666_v10  ;;  %v2689_v48 = vsel %vm2537_vm2, %v2679_v24, %v2688_v42  ;;  %v8742_v10 = vmul.u32.u64.low 3817748708, %v8735_v6  ;;  %v8743_v11 = vmul.u32.u64.high 3817748708, %v8735_v6, %v8742_v10 }
 0x16b   : > { %v2696_v37 = vrot.slane %v2694_v26, 2  ;;  %v8763_v26 = vadd.s32 56, %v8735_v6  ;;  %v5342_v27 = vshrl.u32 %v8748_v14, 4 }
 0x16c   : > { %v2671_v29 = vsel %vm2537_vm2, %v2661_v33, %v2670_v20  ;;  %v2680_v36 = vsel %vm2537_vm2, %v2670_v20, %v2679_v24  ;;  %v5309_v19 = vshrl.u32 %v8743_v11, 4  ;;  %v8760_v24 = vadd.s32 32, %v8735_v6 }
 0x16e   : > { %v8768_v30 = vmul.u32.u64.low 3817748708, %v8760_v24  ;;  %v8769_v31 = vmul.u32.u64.high 3817748708, %v8760_v24, %v8768_v30 }
 0x170   : > { %7226 = vmatmul.mubr.msk.bf16.gmra.mrb[4].mxu0 %vm415_vm1, %v4859_v43  ;;  %v2700_v43 = vshrl.u32 %v7868_v35, 16  ;;  %v8772_v35 = vadd.s32 40, %v8735_v6 }
 0x171   : > { %7060 = vmatmul.mubr.msk.bf16.gmra.mrb[28].mxu1 %vm415_vm1, %v2058_v32  ;;  %7229 = vmatprep.mubr.msk.bf16.mxu0 %vm415_vm1, %v4861_v45  ;;  %v2693_v32 = vrot.slane %v2691_v25, 1  ;;  %v5310_v25 = vmul.u32 18, %v5309_v19  ;;  %v10442_v19 = vmov 0.0  }
 0x172   : > { %7063 = vmatprep.mubr.msk.bf16.mxu1 %vm415_vm1, %v2060_v39  ;;  %v7862_v39 = vld [vmem:[%s8210_s9 + $0x70] sm:$0xff]   ;;  %v2702_v49 = vrot.slane %v2700_v43, 1 }
 0x173   : > { %v2697_v45 = vor.u32 %v2696_v37, %v2693_v32  ;;  %v4874_v46 = vrot.slane %v7862_v39, 3  ;;  %v8776_v32 = vmul.u32.u64.low 3817748708, %v8763_v26  ;;  %v8777_v37 = vmul.u32.u64.high 3817748708, %v8763_v26, %v8776_v32 }
 0x174   : > { %v2706_v56 = vor.u32 %v2705_v50, %v2702_v49  ;;  %v5343_v39 = vmul.u32 18, %v5342_v27  ;;  %v8912_v32 = vadd.s32 96, %v8735_v6 }
 0x175   : > { %v2698_v51 = vsel %vm2537_vm2, %v2688_v42, %v2697_v45  ;;  %v4875_v52 = vsel %vm4850_vm7, %v4872_v28, %v4874_v46  ;;  %v4877_v54 = vsel %vm4850_vm7, %v4874_v46, %v4876_v47 }
 0x176   : > { %v5344_v49 = vsub.s32 %v5270_v12, %v5343_v39 }
 0x178   : > { %7230 = vmatmul.mubr.msk.bf16.gmra.mrb[8].mxu0 %vm415_vm1, %v4863_v62  ;;  %v7871_v62 = vld [vmem:[%s8210_s9 + $0x98] sm:$0xff]   ;;  %vm5702_vm14 = vcmp.ne.s32.totalorder %v5344_v49, 0  ;;  %vm5738_vm15 = vcmp.lt.s32.totalorder %v5344_v49, 0 }
 0x179   : > { %7064 = vmatmul.mubr.msk.bf16.gmra.mrb[32].mxu1 %vm415_vm1, %v2062_v55  ;;  %7233 = vmatprep.mubr.msk.bf16.mxu0 %vm415_vm1, %v4865_v0  ;;  %v7869_v55 = vld [vmem:[%s8210_s9 + $0x88] sm:$0xff]   ;;  %v4884_v0 = vrot.slane %v7871_v62, 3  ;;  %v5810_v62 = vadd.s32 18, %v5344_v49 }
 0x17a   : > { %7089 = vmatprep.mubr.msk.bf16.mxu1 %vm415_vm1, %v2644_v58  ;;  %v4880_v57 = vrot.slane %v7869_v55, 3  ;;  %v2707_v58 = vsel %vm2537_vm2, %v2697_v45, %v2706_v56  ;;  %v8787_v44 = vmul.u32.u64.low 3817748708, %v8772_v35  ;;  %v8788_v45 = vmul.u32.u64.high 3817748708, %v8772_v35, %v8787_v44 }
 0x17b   : > { %v4885_v2 = vsel %vm4850_vm7, %v4882_v63, %v4884_v0  ;;  %v4887_v33 = vsel %vm4850_vm7, %v4884_v0, %v4886_v3  ;;  %v5353_v55 = vshrl.u32 %v8769_v31, 4 }
 0x17c   : > { %v4881_v61 = vsel %vm4850_vm7, %v4878_v34, %v4880_v57  ;;  %v4883_v1 = vsel %vm4850_vm7, %v4880_v57, %v4882_v63  ;;  %v5386_v57 = vshrl.u32 %v8777_v37, 4  ;;  %v5364_v0 = vshrl.u32 %v8788_v45, 4 }
 0x17d   : > { %v5354_v63 = vmul.u32 18, %v5353_v55  ;;  %v8963_v55 = vadd.s32 144, %v8735_v6 }
 0x17e   : > { %v5387_v5 = vmul.u32 18, %v5386_v57  ;;  %v5365_v14 = vmul.u32 18, %v5364_v0 }
 0x17f   : > { %v8858_v13 = vsub.s32 %v8760_v24, %v5354_v63  ;;  %v8883_v24 = vadd.s32 72, %v8735_v6  ;;  %v8993_v63 = vadd.s32 128, %v8735_v6 }
 0x180   : > { %7234 = vmatmul.mubr.msk.bf16.gmra.mrb[12].mxu0 %vm415_vm1, %v4867_v16  ;;  %v5273_v16 = vadd.s32 48, %v8735_v6  ;;  %v8902_v30 = vsub.s32 %v8772_v35, %v5365_v14 }
 0x181   : > { %7090 = vmatmul.mubr.msk.bf16.vlgmr.msra.gmra.mrb[20].mxu1 %vm415_vm1, %v2653_v9  ;;  %7237 = vmatprep.mubr.msk.bf16.mxu0 %vm415_vm1, %v4869_v18  ;;  %v8738_v8 = vmul.u32.u64.low 3817748708, %v5269_v7  ;;  %v8739_v9 = vmul.u32.u64.high 3817748708, %v5269_v7, %v8738_v8 }
 0x182   : > { %7093 = vmatprep.mubr.msk.bf16.mxu1 %vm415_vm1, %v2662_v22  ;;  %v5268_v22 = vadd.s32 8, %v8735_v6  ;;  %v8756_v21 = vmul.u32.u64.low 3817748708, %v5273_v16  ;;  %v8757_v23 = vmul.u32.u64.high 3817748708, %v5273_v16, %v8756_v21 }
 0x183   : > { %v5331_v15 = vshrl.u32 %v8739_v9, 4 }
 0x184   : > { %v8752_v17 = vmul.u32.u64.low 3817748708, %v5268_v22  ;;  %v8753_v18 = vmul.u32.u64.high 3817748708, %v5268_v22, %v8752_v17 }
 0x185   : > { %v5332_v20 = vmul.u32 18, %v5331_v15  ;;  %v8864_v17 = vsub.s32 %v8763_v26, %v5387_v5 }
 0x187   : > { %v5333_v28 = vsub.s32 %v5269_v7, %v5332_v20 }
 0x188   : > { %7238 = vmatmul.mubr.msk.bf16.gmra.mrb[16].mxu0 %vm415_vm1, %v4871_v38  ;;  %v8780_v38 = vadd.s32 80, %v8735_v6 }
 0x189   : > { %7094 = vmatmul.mubr.msk.bf16.gmra.mrb[24].mxu1 %vm415_vm1, %v2671_v29  ;;  %7241 = vmatprep.mubr.msk.bf16.mxu0 %vm415_vm1, %v4873_v40  ;;  %v5320_v29 = vshrl.u32 %v8753_v18, 4  ;;  %vm5701_vm8 = vcmp.ne.s32.totalorder %v5333_v28, 0  ;;  %vm5737_vm9 = vcmp.lt.s32.totalorder %v5333_v28, 0  ;;  %v5375_v40 = vshrl.u32 %v8757_v23, 4 }
 0x18a   : > { %7097 = vmatprep.mubr.msk.bf16.mxu1 %vm415_vm1, %v2680_v36  ;;  %v5311_v36 = vsub.s32 %v8735_v6, %v5310_v25  ;;  %v5809_v42 = vadd.s32 18, %v5333_v28  ;;  %v8791_v46 = vmul.u32.u64.low 3817748708, %v8780_v38  ;;  %v8792_v47 = vmul.u32.u64.high 3817748708, %v8780_v38, %v8791_v46  ;;  %vm8794_vm12 = vmand %vm5737_vm9, %vm5701_vm8 }
 0x18b   : > { %v5321_v43 = vmul.u32 18, %v5320_v29  ;;  %v8899_v29 = vadd.s32 18, %v8858_v13  ;;  %v8934_v46 = vadd.s32 104, %v8735_v6  ;;  %v9044_v23 = vadd.s32 136, %v8735_v6 }
 0x18c   : > { %vm5699_vm10 = vcmp.ne.s32.totalorder %v5311_v36, 0  ;;  %vm5735_vm11 = vcmp.lt.s32.totalorder %v5311_v36, 0  ;;  %v5807_v50 = vadd.s32 18, %v5311_v36  ;;  %v5845_v56 = vsel %vm8794_vm12, %v5809_v42, %v5333_v28 }
 0x18d   : > { %vm8802_vm13 = vmand %vm5735_vm11, %vm5699_vm10  ;;  %v8809_v34 = vsub.s32 %v5268_v22, %v5321_v43  ;;  %vm8819_vm0 = vcmp.lt.s32.totalorder %v5845_v56, 16  ;;  %v8894_v28 = vadd.s32 112, %v8735_v6  ;;  %vm5703_vm10 = vcmp.ne.s32.totalorder %v8858_v13, 0 }
 0x18e   : > { %v8869_v20 = vsel %vm8819_vm0, 1.0, %v10442_v19  ;;  %vm5739_vm11 = vcmp.lt.s32.totalorder %v8858_v13, 0  ;;  %vm5706_vm12 = vcmp.ne.s32.totalorder %v8864_v17, 0  ;;  %v8922_v42 = vadd.s32 120, %v8735_v6 }
 0x18f   : > { %vm5700_vm2 = vcmp.ne.s32.totalorder %v8809_v34, 0  ;;  %vm5736_vm3 = vcmp.lt.s32.totalorder %v8809_v34, 0  ;;  %v8844_v9 = vadd.s32 18, %v8809_v34  ;;  %10493 = vst [vmem:[#allocation15_spill] sm:$0xff] %v8869_v20 }
 0x190   : > { %7242 = vmatmul.mubr.msk.bf16.gmra.mrb[20].mxu0 %vm415_vm1, %v4875_v52  ;;  %v8799_v52 = vmul.u32.u64.low 3817748708, %v8784_v41  ;;  %v8800_v53 = vmul.u32.u64.high 3817748708, %v8784_v41, %v8799_v52  ;;  %vm8853_vm7 = vmand %vm5736_vm3, %vm5700_vm2 }
 0x191   : > { %7098 = vmatmul.mubr.msk.bf16.gmra.mrb[28].mxu1 %vm415_vm1, %v2689_v48  ;;  %7245 = vmatprep.mubr.msk.bf16.mxu0 %vm415_vm1, %v4877_v54  ;;  %v5844_v26 = vsel %vm8853_vm7, %v8844_v9, %v8809_v34  ;;  %v5814_v48 = vadd.s32 18, %v8864_v17  ;;  %vm8954_vm2 = vmand %vm5739_vm11, %vm5703_vm10  ;;  %v8974_v34 = vmul.u32.u64.low 3817748708, %v8934_v46  ;;  %v8975_v57 = vmul.u32.u64.high 3817748708, %v8934_v46, %v8974_v34 }
 0x192   : > { %7101 = vmatprep.mubr.msk.bf16.mxu1 %vm415_vm1, %v2698_v51  ;;  %v5376_v51 = vmul.u32 18, %v5375_v40  ;;  %v5397_v10 = vshrl.u32 %v8800_v53, 4  ;;  %v8918_v40 = vmul.u32.u64.low 3817748708, %v8883_v24  ;;  %v8919_v35 = vmul.u32.u64.high 3817748708, %v8883_v24, %v8918_v40 }
 0x193   : > { %v8959_v53 = vmul.u32.u64.low 3817748708, %v8922_v42  ;;  %v8960_v54 = vmul.u32.u64.high 3817748708, %v8922_v42, %v8959_v53  ;;  %vm8995_vm7 = vcmp.lt.s32.totalorder %v5844_v26, 16 }
 0x194   : > { %v8817_v60 = vsub.s32 %v5273_v16, %v5376_v51  ;;  %v5398_v27 = vmul.u32 18, %v5397_v10  ;;  %v5408_v10 = vshrl.u32 %v8919_v35, 4 }
 0x196   : > { %vm5705_vm5 = vcmp.ne.s32.totalorder %v8817_v60, 0  ;;  %vm5741_vm6 = vcmp.lt.s32.totalorder %v8817_v60, 0  ;;  %v5813_v16 = vadd.s32 18, %v8817_v60  ;;  %v8927_v44 = vsub.s32 %v8784_v41, %v5398_v27 }
 0x197   : > { %vm8878_vm8 = vmand %vm5741_vm6, %vm5705_vm5 }
 0x198   : > { %7246 = vmatmul.mubr.msk.bf16.gmra.mrb[24].mxu0 %vm415_vm1, %v4879_v59  ;;  %v5843_v59 = vsel %vm8802_vm13, %v5807_v50, %v5311_v36  ;;  %v5849_v31 = vsel %vm8878_vm8, %v5813_v16, %v8817_v60  ;;  %vm5742_vm13 = vcmp.lt.s32.totalorder %v8864_v17, 0  ;;  %vm5743_vm5 = vcmp.lt.s32.totalorder %v8927_v44, 0 }
 0x199   : > { %7102 = vmatmul.mubr.msk.bf16.gmra.mrb[32].mxu1 %vm415_vm1, %v2707_v58  ;;  %7249 = vmatprep.mubr.msk.bf16.mxu0 %vm415_vm1, %v4881_v61  ;;  %v8813_v58 = vadd.s32 88, %v8735_v6  ;;  %vm8833_vm4 = vcmp.lt.s32.totalorder %v5843_v59, 16  ;;  %v8947_v41 = vmul.u32.u64.low 3817748708, %v8912_v32  ;;  %v8948_v50 = vmul.u32.u64.high 3817748708, %v8912_v32, %v8947_v41  ;;  %vm8967_vm3 = vmand %vm5742_vm13, %vm5706_vm12 }
 0x19a   : > { %v8874_v21 = vsel %vm8833_vm4, 1.0, %v10442_v19  ;;  %vm5707_vm4 = vcmp.ne.s32.totalorder %v8927_v44, 0  ;;  %v5812_v61 = vadd.s32 18, %v8902_v30  ;;  %vm8999_vm8 = vcmp.lt.s32.totalorder %v5849_v31, 16 }
 0x19b   : > { %v8838_v4 = vmul.u32.u64.low 3817748708, %v8813_v58  ;;  %v8839_v7 = vmul.u32.u64.high 3817748708, %v8813_v58, %v8838_v4  ;;  %10494 = vst [vmem:[#allocation16_spill] sm:$0xff] %v8874_v21  ;;  %vm9021_vm10 = vmand %vm5743_vm5, %vm5707_vm4  ;;  %v5847_v16 = vsel %vm8954_vm2, %v8899_v29, %v8858_v13 }
 0x19c   : > { %v9055_v13 = vmul.u32.u64.low 3817748708, %v8993_v63  ;;  %v9056_v29 = vmul.u32.u64.high 3817748708, %v8993_v63, %v9055_v13  ;;  %vm5883_vm13 = vcmp.lt.s32.totalorder %v5847_v16, 16  ;;  %v9140_v16 = vadd.s32 176, %v8735_v6 }
 0x19d   : > { %v5430_v39 = vshrl.u32 %v8839_v7, 4 }
 0x19f   : > { %v5431_v52 = vmul.u32 18, %v5430_v39  ;;  %v5441_v39 = vshrl.u32 %v8948_v50, 4  ;;  %v9084_v50 = vsel %vm8999_vm8, 1.0, %v10442_v19 }
 0x1a0   : > { %7250 = vmatmul.mubr.msk.bf16.gmra.mrb[28].mxu0 %vm415_vm1, %v4883_v1  ;;  %10514 = vst [vmem:[#allocation18_spill] sm:$0xff] %v9084_v50  ;;  %v9118_v1 = vsel %vm5883_vm13, 1.0, %v10442_v19 }
 0x1a1   : > { %7253 = vmatprep.mubr.msk.bf16.mxu0 %vm415_vm1, %v4885_v2  ;;  %v5419_v2 = vshrl.u32 %v8792_v47, 4  ;;  %v9026_v9 = vsub.s32 %v8813_v58, %v5431_v52  ;;  %v9201_v52 = vadd.s32 168, %v8735_v6 }
 0x1a3   : > { %v5420_v18 = vmul.u32 18, %v5419_v2  ;;  %v5815_v2 = vadd.s32 18, %v8927_v44  ;;  %vm5710_vm11 = vcmp.ne.s32.totalorder %v9026_v9, 0  ;;  %vm5746_vm12 = vcmp.lt.s32.totalorder %v9026_v9, 0 }
 0x1a4   : > { %v9095_v53 = vadd.s32 18, %v9026_v9  ;;  %vm9107_vm2 = vmand %vm5746_vm12, %vm5710_vm11 }
 0x1a5   : > { %v8909_v36 = vsub.s32 %v8780_v38, %v5420_v18  ;;  %v8930_v38 = vmul.u32.u64.low 3817748708, %v8894_v28  ;;  %v8931_v45 = vmul.u32.u64.high 3817748708, %v8894_v28, %v8930_v38  ;;  %v5850_v18 = vsel %vm8967_vm3, %v5814_v48, %v8864_v17 }
 0x1a6   : > { %v5851_v31 = vsel %vm9021_vm10, %v5815_v2, %v8927_v44  ;;  %v9073_v48 = vmul.u32.u64.low 3817748708, %v9044_v23  ;;  %v9074_v41 = vmul.u32.u64.high 3817748708, %v9044_v23, %v9073_v48  ;;  %v9079_v44 = vsel %vm8995_vm7, 1.0, %v10442_v19 }
 0x1a7   : > { %vm5709_vm0 = vcmp.ne.s32.totalorder %v8909_v36, 0  ;;  %v5463_v58 = vshrl.u32 %v8931_v45, 4  ;;  %v5452_v45 = vshrl.u32 %v8975_v57, 4  ;;  %10513 = vst [vmem:[#allocation17_spill] sm:$0xff] %v9079_v44 }
 0x1a8   : > { %7254 = vmatmul.mubr.msk.bf16.gmra.mrb[32].mxu0 %vm415_vm1, %v4887_v33  ;;  %vm8824_vm1 = vmand %vm5738_vm15, %vm5702_vm14  ;;  %vm5704_vm14 = vcmp.ne.s32.totalorder %v8902_v30, 0  ;;  %vm5740_vm15 = vcmp.lt.s32.totalorder %v8902_v30, 0  ;;  %v9013_v33 = vadd.s32 152, %v8735_v6 }
 0x1a9   : > { %v5846_v12 = vsel %vm8824_vm1, %v5810_v62, %v5344_v49  ;;  %vm5745_vm1 = vcmp.lt.s32.totalorder %v8909_v36, 0  ;;  %vm8986_vm6 = vmand %vm5740_vm15, %vm5704_vm14  ;;  %v5817_v62 = vadd.s32 18, %v8909_v36  ;;  %v5464_v38 = vmul.u32 18, %v5463_v58 }
 0x1aa   : > { %vm8885_vm9 = vcmp.lt.s32.totalorder %v5846_v12, 16  ;;  %v9030_v12 = vmul.u32.u64.low 3817748708, %v8963_v55  ;;  %v9031_v22 = vmul.u32.u64.high 3817748708, %v8963_v55, %v9030_v12  ;;  %v5848_v26 = vsel %vm8986_vm6, %v5812_v61, %v8902_v30 }
 0x1ab   : > { %v8980_v59 = vsel %vm8885_vm9, 1.0, %v10442_v19  ;;  %vm9007_vm9 = vmand %vm5745_vm1, %vm5709_vm0  ;;  %v9065_v40 = vmul.u32.u64.low 3817748708, %v9013_v33  ;;  %v9066_v35 = vmul.u32.u64.high 3817748708, %v9013_v33, %v9065_v40  ;;  %v5409_v30 = vmul.u32 18, %v5408_v10 }
 0x1ac   : > { %v5853_v27 = vsel %vm9007_vm9, %v5817_v62, %v8909_v36  ;;  %v5474_v36 = vshrl.u32 %v8960_v54, 4  ;;  %vm5886_vm14 = vcmp.lt.s32.totalorder %v5850_v18, 16  ;;  %vm9086_vm15 = vcmp.lt.s32.totalorder %v5848_v26, 16 }
 0x1ad   : > { %vm9090_vm0 = vcmp.lt.s32.totalorder %v5853_v27, 16  ;;  %v5442_v54 = vmul.u32 18, %v5441_v39  ;;  %vm9099_vm1 = vcmp.lt.s32.totalorder %v5851_v31, 16  ;;  %v9112_v60 = vsub.s32 %v8883_v24, %v5409_v30 }
 0x1ae   : > { %v5475_v61 = vmul.u32 18, %v5474_v36  ;;  %v5507_v62 = vshrl.u32 %v9031_v22, 4  ;;  %v9121_v5 = vsel %vm5886_vm14, 1.0, %v10442_v19  ;;  %v9124_v2 = vsub.s32 %v8894_v28, %v5464_v38 }
 0x1af   : > { %10523 = vst [vmem:[#allocation19_spill] sm:$0xff] %v9121_v5  ;;  %v5453_v7 = vmul.u32 18, %v5452_v45  ;;  %v9131_v24 = vsel %vm9086_vm15, 1.0, %v10442_v19  ;;  %v9136_v12 = vsel %vm9090_vm0, 1.0, %v10442_v19  ;;  %v5485_v22 = vshrl.u32 %v9056_v29, 4 }
 0x1b0   : > { %10524 = vst [vmem:[#allocation20_spill] sm:$0xff] %v9131_v24  ;;  %10525 = vst [vmem:[#allocation21_spill] sm:$0xff] %v9136_v12  ;;  %v9147_v18 = vsel %vm9099_vm1, 1.0, %v10442_v19  ;;  %v5854_v58 = vsel %vm9107_vm2, %v9095_v53, %v9026_v9  ;;  %v9154_v26 = vsub.s32 %v8912_v32, %v5442_v54  ;;  %v5518_v27 = vshrl.u32 %v9066_v35, 4 }
 0x1b1   : > { %10526 = vst [vmem:[#allocation22_spill] sm:$0xff] %v9147_v18  ;;  %vm5708_vm3 = vcmp.ne.s32.totalorder %v9112_v60, 0  ;;  %vm5744_vm4 = vcmp.lt.s32.totalorder %v9112_v60, 0  ;;  %v9160_v13 = vsub.s32 %v8922_v42, %v5475_v61  ;;  %v5508_v29 = vmul.u32 18, %v5507_v62 }
 0x1b2   : > { %v5816_v31 = vadd.s32 18, %v9112_v60  ;;  %vm5713_vm5 = vcmp.ne.s32.totalorder %v9124_v2, 0  ;;  %v9165_v39 = vsub.s32 %v8934_v46, %v5453_v7  ;;  %v5496_v32 = vshrl.u32 %v9074_v41, 4  ;;  %vm9186_vm7 = vmand %vm5744_vm4, %vm5708_vm3 }
 0x1b3   : > { %v5486_v9 = vmul.u32 18, %v5485_v22  ;;  %v9169_v40 = vmul.u32.u64.low 3817748708, %v9140_v16  ;;  %v9170_v35 = vmul.u32.u64.high 3817748708, %v9140_v16, %v9169_v40  ;;  %v9173_v30 = vadd.s32 160, %v8735_v6 }
 0x1b4   : > { %vm5749_vm6 = vcmp.lt.s32.totalorder %v9124_v2, 0  ;;  %v5821_v42 = vadd.s32 18, %v9124_v2  ;;  %v5519_v36 = vmul.u32 18, %v5518_v27  ;;  %v9178_v38 = vadd.s32 184, %v8735_v6 }
 0x1b5   : > { %vm5711_vm8 = vcmp.ne.s32.totalorder %v9154_v26, 0  ;;  %vm5747_vm9 = vcmp.lt.s32.totalorder %v9154_v26, 0  ;;  %vm5714_vm10 = vcmp.ne.s32.totalorder %v9160_v13, 0  ;;  %v9194_v48 = vsub.s32 %v8963_v55, %v5508_v29  ;;  %vm9209_vm13 = vmand %vm5749_vm6, %vm5713_vm5 }
 0x1b6   : > { %vm5750_vm11 = vcmp.lt.s32.totalorder %v9160_v13, 0  ;;  %vm5712_vm12 = vcmp.ne.s32.totalorder %v9165_v39, 0  ;;  %v5497_v51 = vmul.u32 18, %v5496_v32  ;;  %vm5748_vm14 = vcmp.lt.s32.totalorder %v9165_v39, 0  ;;  %vm9230_vm15 = vmand %vm5747_vm9, %vm5711_vm8 }
 0x1b7   : > { %v9215_v55 = vsub.s32 %v8993_v63, %v5486_v9  ;;  %v9218_v34 = vmul.u32.u64.low 3817748708, %v9173_v30  ;;  %v9219_v57 = vmul.u32.u64.high 3817748708, %v9173_v30, %v9218_v34  ;;  %v5852_v62 = vsel %vm9186_vm7, %v5816_v31, %v9112_v60  ;;  %vm9244_vm0 = vmand %vm5750_vm11, %vm5714_vm10 }
 0x1b8   : > { %v5520_v63 = vsub.s32 %v9013_v33, %v5519_v36  ;;  %v9236_v22 = vmul.u32.u64.low 3817748708, %v9178_v38  ;;  %v9237_v27 = vmul.u32.u64.high 3817748708, %v9178_v38, %v9236_v22  ;;  %v5819_v29 = vadd.s32 18, %v9154_v26  ;;  %vm9253_vm2 = vmand %vm5748_vm14, %vm5712_vm12 }
 0x1b9   : > { %v5822_v31 = vadd.s32 18, %v9160_v13  ;;  %v5820_v32 = vadd.s32 18, %v9165_v39  ;;  %vm5717_vm1 = vcmp.ne.s32.totalorder %v9194_v48, 0  ;;  %vm5753_vm3 = vcmp.lt.s32.totalorder %v9194_v48, 0 }
 0x1ba   : > { %v5498_v9 = vsub.s32 %v9044_v23, %v5497_v51  ;;  %v9260_v40 = vmul.u32.u64.low 3817748708, %v9201_v52  ;;  %v9261_v36 = vmul.u32.u64.high 3817748708, %v9201_v52, %v9260_v40  ;;  %vm9263_vm4 = vcmp.lt.s32.totalorder %v5854_v58, 16  ;;  %vm9290_vm10 = vmand %vm5753_vm3, %vm5717_vm1 }
 0x1bb   : > { %vm5715_vm5 = vcmp.ne.s32.totalorder %v9215_v55, 0  ;;  %vm5751_vm6 = vcmp.lt.s32.totalorder %v9215_v55, 0  ;;  %v5551_v34 = vshrl.u32 %v9170_v35, 4  ;;  %vm9270_vm7 = vcmp.lt.s32.totalorder %v5852_v62, 16 }
 0x1bc   : > { %v5857_v23 = vsel %vm9209_vm13, %v5821_v42, %v9124_v2  ;;  %vm5718_vm8 = vcmp.ne.s32.totalorder %v5520_v63, 0  ;;  %vm5754_vm9 = vcmp.lt.s32.totalorder %v5520_v63, 0  ;;  %v5855_v58 = vsel %vm9230_vm15, %v5819_v29, %v9154_v26  ;;  %vm9295_vm11 = vmand %vm5751_vm6, %vm5715_vm5 }
 0x1bd   : > { %v5858_v51 = vsel %vm9244_vm0, %v5822_v31, %v9160_v13  ;;  %v5856_v35 = vsel %vm9253_vm2, %v5820_v32, %v9165_v39  ;;  %v5825_v42 = vadd.s32 18, %v9194_v48  ;;  %v5823_v13 = vadd.s32 18, %v9215_v55  ;;  %vm9306_vm14 = vmand %vm5754_vm9, %vm5718_vm8 }
 0x1be   : > { %v5826_v54 = vadd.s32 18, %v5520_v63  ;;  %vm5716_vm12 = vcmp.ne.s32.totalorder %v5498_v9, 0  ;;  %vm5752_vm13 = vcmp.lt.s32.totalorder %v5498_v9, 0  ;;  %v9303_v39 = vsel %vm9263_vm4, 1.0, %v10442_v19 }
 0x1bf   : > { %10545 = vst [vmem:[#allocation23_spill] sm:$0xff] %v9303_v39  ;;  %v5552_v7 = vmul.u32 18, %v5551_v34  ;;  %v5529_v29 = vshrl.u32 %v9219_v57, 4  ;;  %v9312_v60 = vadd.s32 208, %v8735_v6  ;;  %v9317_v31 = vsel %vm9270_vm7, 1.0, %v10442_v19  ;;  %vm9337_vm3 = vmand %vm5752_vm13, %vm5716_vm12 }
 0x1c0   : > { %10548 = vst [vmem:[#allocation24_spill] sm:$0xff] %v9317_v31  ;;  %vm9319_vm15 = vcmp.lt.s32.totalorder %v5857_v23, 16  ;;  %v5824_v33 = vadd.s32 18, %v5498_v9  ;;  %v5562_v40 = vshrl.u32 %v9237_v27, 4  ;;  %vm5891_vm0 = vcmp.lt.s32.totalorder %v5855_v58, 16 }
 0x1c1   : > { %vm9324_vm1 = vcmp.lt.s32.totalorder %v5858_v51, 16  ;;  %vm9328_vm2 = vcmp.lt.s32.totalorder %v5856_v35, 16  ;;  %v5861_v34 = vsel %vm9290_vm10, %v5825_v42, %v9194_v48  ;;  %v5859_v27 = vsel %vm9295_vm11, %v5823_v13, %v9215_v55 }
 0x1c2   : > { %v5862_v23 = vsel %vm9306_vm14, %v5826_v54, %v5520_v63  ;;  %v5540_v58 = vshrl.u32 %v9261_v36, 4  ;;  %v9348_v51 = vadd.s32 192, %v8735_v6  ;;  %v9352_v48 = vsub.s32 %v9140_v16, %v5552_v7 }
 0x1c3   : > { %v5530_v35 = vmul.u32 18, %v5529_v29  ;;  %v9355_v2 = vmul.u32.u64.low 3817748708, %v9312_v60  ;;  %v9356_v42 = vmul.u32.u64.high 3817748708, %v9312_v60, %v9355_v2  ;;  %v9361_v55 = vsel %vm9319_vm15, 1.0, %v10442_v19 }
 0x1c4   : > { %10557 = vst [vmem:[#allocation25_spill] sm:$0xff] %v9361_v55  ;;  %v9364_v63 = vsel %vm5891_vm0, 1.0, %v10442_v19  ;;  %v5860_v36 = vsel %vm9337_vm3, %v5824_v33, %v5498_v9  ;;  %v5563_v26 = vmul.u32 18, %v5562_v40  ;;  %v9371_v16 = vsel %vm9324_vm1, 1.0, %v10442_v19 }
 0x1c5   : > { %10558 = vst [vmem:[#allocation26_spill] sm:$0xff] %v9364_v63  ;;  %10559 = vst [vmem:[#allocation27_spill] sm:$0xff] %v9371_v16  ;;  %v9376_v13 = vsel %vm9328_vm2, 1.0, %v10442_v19  ;;  %vm5897_vm4 = vcmp.lt.s32.totalorder %v5861_v34, 16  ;;  %vm9378_vm5 = vcmp.lt.s32.totalorder %v5859_v27, 16  ;;  %vm9382_vm6 = vcmp.lt.s32.totalorder %v5862_v23, 16 }
 0x1c6   : > { %10560 = vst [vmem:[#allocation28_spill] sm:$0xff] %v9376_v13  ;;  %v5541_v9 = vmul.u32 18, %v5540_v58  ;;  %v9387_v7 = vmul.u32.u64.low 3817748708, %v9348_v51  ;;  %v9388_v29 = vmul.u32.u64.high 3817748708, %v9348_v51, %v9387_v7  ;;  %vm9390_vm7 = vcmp.lt.s32.totalorder %v5860_v36, 16 }
 0x1c7   : > { %vm5721_vm8 = vcmp.ne.s32.totalorder %v9352_v48, 0  ;;  %vm5757_vm9 = vcmp.lt.s32.totalorder %v9352_v48, 0  ;;  %v9397_v40 = vsub.s32 %v9173_v30, %v5530_v35  ;;  %v9403_v34 = vsel %vm5897_vm4, 1.0, %v10442_v19 }
 0x1c8   : > { %10568 = vst [vmem:[#allocation30_spill] sm:$0xff] %v9403_v34  ;;  %v9406_v22 = vsub.s32 %v9178_v38, %v5563_v26  ;;  %v9409_v27 = vadd.s32 216, %v8735_v6  ;;  %v9417_v30 = vsel %vm9378_vm5, 1.0, %v10442_v19  ;;  %v5829_v38 = vadd.s32 18, %v9352_v48  ;;  %vm9443_vm10 = vmand %vm5757_vm9, %vm5721_vm8 }
 0x1c9   : > { %10569 = vst [vmem:[#allocation31_spill] sm:$0xff] %v9417_v30  ;;  %v9437_v2 = vsel %vm9390_vm7, 1.0, %v10442_v19  ;;  %v9448_v26 = vsub.s32 %v9201_v52, %v5541_v9  ;;  %vm5719_vm11 = vcmp.ne.s32.totalorder %v9397_v40, 0  ;;  %vm5755_vm12 = vcmp.lt.s32.totalorder %v9397_v40, 0 }
 0x1ca   : > { %10571 = vst [vmem:[#allocation33_spill] sm:$0xff] %v9437_v2  ;;  %v5595_v62 = vshrl.u32 %v9356_v42, 4  ;;  %vm5722_vm13 = vcmp.ne.s32.totalorder %v9406_v22, 0  ;;  %vm5758_vm14 = vcmp.lt.s32.totalorder %v9406_v22, 0  ;;  %v5865_v42 = vsel %vm9443_vm10, %v5829_v38, %v9352_v48  ;;  %vm9479_vm15 = vmand %vm5755_vm12, %vm5719_vm11 }
 0x1cb   : > { %v9466_v52 = vmul.u32.u64.low 3817748708, %v9409_v27  ;;  %v9467_v9 = vmul.u32.u64.high 3817748708, %v9409_v27, %v9466_v52  ;;  %vm5720_vm0 = vcmp.ne.s32.totalorder %v9448_v26, 0  ;;  %vm5756_vm1 = vcmp.lt.s32.totalorder %v9448_v26, 0  ;;  %vm9493_vm2 = vmand %vm5758_vm14, %vm5722_vm13 }
 0x1cc   : > { %v5596_v52 = vmul.u32 18, %v5595_v62  ;;  %vm5901_vm3 = vcmp.lt.s32.totalorder %v5865_v42, 16  ;;  %vm9517_vm4 = vmand %vm5756_vm1, %vm5720_vm0 }
 0x1cd   : > { %v5606_v33 = vshrl.u32 %v9467_v9, 4 }
 0x20c   : > { %v8831_v3 = vpop.f32.mrb[0].mxu1 }
 0x20d   : > { %v8841_v8 = vpop.f32.mrb[1].mxu1 }
 0x20e   : > { %v8849_v11 = vpop.f32.mrb[2].mxu1 }
 0x20f   : > { %v8860_v15 = vpop.f32.mrb[3].mxu1 }
 0x214   : > { %v8914_v37 = vpop.f32.mrb[4].mxu1 }
 0x215   : > { %v8924_v43 = vpop.f32.mrb[5].mxu1 }
 0x216   : > { %v8936_v47 = vpop.f32.mrb[6].mxu1 }
 0x217   : > { %v8942_v49 = vpop.f32.mrb[7].mxu1 }
 0x21c   : > { %v9015_v4 = vpop.f32.mrb[8].mxu1 }
 0x21d   : > { %v9033_v14 = vpop.f32.mrb[9].mxu1 }
 0x21e   : > { %v9046_v25 = vpop.f32.mrb[10].mxu1 }
 0x21f   : > { %v9058_v17 = vpop.f32.mrb[11].mxu1 }
 0x224   : > { %v9097_v56 = vpop.f32.mrb[12].mxu1 }
 0x225   : > { %v9115_v0 = vpop.f32.mrb[13].mxu1 }
 0x226   : > { %v9126_v10 = vpop.f32.mrb[14].mxu1 }
 0x227   : > { %v9142_v28 = vpop.f32.mrb[15].mxu1 }
 0x22c   : > { %v9180_v46 = vpop.f32.mrb[16].mxu1 }
 0x22d   : > { %v9196_v41 = vpop.f32.mrb[17].mxu1 }
 0x22e   : > { %v9203_v53 = vpop.f32.mrb[18].mxu1 }
 0x22f   : > { %v9221_v61 = vpop.f32.mrb[19].mxu1 }
 0x23b   : > { %v7223_v32 = vpop.f32.mrb[0].mxu0 }
 0x23c   : > { %v9400_v45 = vadd.f32 %v7223_v32, %v8831_v3  ;;  %v4979_v57 = vpop.f32.mrb[1].mxu0  ;;  %v9422_v3 = vsel %vm9382_vm6, 1.0, %v10442_v19  ;;  %v5827_v32 = vadd.s32 18, %v9397_v40  ;;  %v9498_v19 = vadd.s32 240, %v8735_v6 }
 0x23d   : > { %v9412_v23 = vadd.f32 %v4979_v57, %v8841_v8  ;;  %v7224_v58 = vpop.f32.mrb[2].mxu0  ;;  %10570 = vst [vmem:[#allocation32_spill] sm:$0xff] %v9422_v3  ;;  %v5830_v57 = vadd.s32 18, %v9406_v22 }
 0x23e   : > { %10567 = vst [vmem:[#allocation29_spill] sm:$0xff] %v9400_v45  ;;  %5232 = vst [vmem:[%s9427_s20 + $0x10] sm:$0xff] %v9400_v45  ;;  %v9432_v8 = vadd.f32 %v7224_v58, %v8849_v11  ;;  %v4982_v35 = vpop.f32.mrb[3].mxu0  ;;  %v9451_v11 = vadd.s32 200, %v8735_v6  ;;  %v5573_v58 = vshrl.u32 %v9388_v29, 4 }
 0x23f   : > { %5230 = vst [vmem:[%s9427_s20] sm:$0xff] %v9412_v23  ;;  %v9456_v54 = vadd.f32 %v4982_v35, %v8860_v15  ;;  %v5987_v15 = vmul.f32 %v9412_v23, %v8874_v21  ;;  %v5989_v35 = vmul.f32 %v9400_v45, %v8869_v20 }
 0x240   : > { %5233 = vst [vmem:[%s9427_s20 + $0x18] sm:$0xff] %v9432_v8  ;;  %v5990_v21 = vmul.f32 %v9432_v8, %v8980_v59  ;;  %v5574_v42 = vmul.u32 18, %v5573_v58  ;;  %v9573_v58 = vmul.u32.u64.low 3817748708, %v9498_v19  ;;  %v9574_v38 = vmul.u32.u64.high 3817748708, %v9498_v19, %v9573_v58 }
 0x241   : > { %10574 = vst [vmem:[#allocation34_spill] sm:$0xff] %v9456_v54  ;;  %5231 = vst [vmem:[%s9427_s20 + $0x8] sm:$0xff] %v9456_v54  ;;  %v5988_v7 = vmul.f32 %v9456_v54, %v9079_v44 }
 0x242   : > { %v9570_v9 = vsub.s32 %v9348_v51, %v5574_v42  ;;  %v5607_v42 = vmul.u32 18, %v5606_v33 }
 0x243   : > { %v6023_v36 = vadd.f32 %v5988_v7, %v5987_v15  ;;  %v7227_v48 = vpop.f32.mrb[4].mxu0  ;;  %v5828_v15 = vadd.s32 18, %v9448_v26  ;;  %v9505_v7 = vmul.u32.u64.low 3817748708, %v9451_v11  ;;  %v9506_v44 = vmul.u32.u64.high 3817748708, %v9451_v11, %v9505_v7 }
 0x244   : > { %v9501_v29 = vadd.f32 %v7227_v48, %v8914_v37  ;;  %v4995_v20 = vpop.f32.mrb[5].mxu0  ;;  %vm5723_vm10 = vcmp.ne.s32.totalorder %v9570_v9, 0  ;;  %vm5759_vm12 = vcmp.lt.s32.totalorder %v9570_v9, 0 }
 0x245   : > { %v6024_v45 = vadd.f32 %v6023_v36, %v5989_v35  ;;  %v9511_v62 = vadd.f32 %v4995_v20, %v8924_v43  ;;  %v7228_v54 = vpop.f32.mrb[6].mxu0  ;;  %v5863_v20 = vsel %vm9479_vm15, %v5827_v32, %v9397_v40  ;;  %v5866_v43 = vsel %vm9493_vm2, %v5830_v57, %v9406_v22  ;;  %vm9659_vm13 = vmand %vm5759_vm12, %vm5723_vm10 }
 0x246   : > { %5236 = vst [vmem:[%s9427_s20 + $0x30] sm:$0xff] %v9501_v29  ;;  %v9524_v48 = vadd.f32 %v7228_v54, %v8936_v47  ;;  %v4998_v35 = vpop.f32.mrb[7].mxu0  ;;  %v9540_v54 = vsub.s32 %v9312_v60, %v5596_v52  ;;  %v10581_v40 = vmov 0.0   ;;  %v5864_v22 = vsel %vm9517_vm4, %v5828_v15, %v9448_v26 }
 0x247   : > { %5234 = vst [vmem:[%s9427_s20 + $0x20] sm:$0xff] %v9511_v62  ;;  %v5991_v36 = vmul.f32 %v9511_v62, %v9118_v1  ;;  %v6025_v7 = vadd.f32 %v6024_v45, %v5990_v21  ;;  %v9537_v47 = vadd.f32 %v4998_v35, %v8942_v49  ;;  %v9545_v32 = vsel %vm5901_vm3, 1.0, %v10581_v40 }
 0x248   : > { %5237 = vst [vmem:[%s9427_s20 + $0x38] sm:$0xff] %v9524_v48  ;;  %v9552_v57 = vadd.s32 224, %v8735_v6  ;;  %vm9558_vm5 = vcmp.lt.s32.totalorder %v5863_v20, 16  ;;  %v9563_v45 = vadd.s32 248, %v8735_v6  ;;  %vm9565_vm6 = vcmp.lt.s32.totalorder %v5866_v43, 16 }
 0x249   : > { %v6026_v21 = vadd.f32 %v6025_v7, %v5991_v36  ;;  %5235 = vst [vmem:[%s9427_s20 + $0x28] sm:$0xff] %v9537_v47  ;;  %v5992_v49 = vmul.f32 %v9537_v47, %v9131_v24  ;;  %v5993_v52 = vmul.f32 %v9501_v29, %v9084_v50  ;;  %vm9578_vm7 = vcmp.lt.s32.totalorder %v5864_v22, 16 }
 0x24a   : > { %vm5725_vm8 = vcmp.ne.s32.totalorder %v9540_v54, 0  ;;  %vm5761_vm9 = vcmp.lt.s32.totalorder %v9540_v54, 0  ;;  %v5833_v43 = vadd.s32 18, %v9540_v54  ;;  %v5994_v36 = vmul.f32 %v9524_v48, %v9121_v5 }
 0x24b   : > { %v6027_v15 = vadd.f32 %v6026_v21, %v5992_v49  ;;  %v7231_v37 = vpop.f32.mrb[8].mxu0  ;;  %v5584_v49 = vshrl.u32 %v9506_v44, 4  ;;  %vm9615_vm11 = vmand %vm5761_vm9, %vm5725_vm8  ;;  %v9647_v26 = vsel %vm9578_vm7, 1.0, %v10581_v40  ;;  %v9664_v35 = vsub.s32 %v9409_v27, %v5607_v42 }
 0x24c   : > { %v9584_v51 = vadd.f32 %v7231_v37, %v9015_v4  ;;  %v5011_v20 = vpop.f32.mrb[9].mxu0  ;;  %v9601_v33 = vmul.u32.u64.low 3817748708, %v9552_v57  ;;  %v9602_v37 = vmul.u32.u64.high 3817748708, %v9552_v57, %v9601_v33 }
 0x24d   : > { %v6028_v7 = vadd.f32 %v6027_v15, %v5993_v52  ;;  %v9591_v22 = vadd.f32 %v5011_v20, %v9033_v14  ;;  %v7232_v21 = vpop.f32.mrb[10].mxu0  ;;  %v9625_v15 = vsel %vm9558_vm5, 1.0, %v10581_v40  ;;  %v9633_v20 = vadd.s32 232, %v8735_v6 }
 0x24e   : > { %10588 = vst [vmem:[#allocation35_spill] sm:$0xff] %v9584_v51  ;;  %5240 = vst [vmem:[%s9427_s20 + $0x50] sm:$0xff] %v9584_v51  ;;  %v9597_v4 = vadd.f32 %v7232_v21, %v9046_v25  ;;  %v5014_v58 = vpop.f32.mrb[11].mxu0  ;;  %v5997_v25 = vmul.f32 %v9584_v51, %v9136_v12  ;;  %vm5726_vm0 = vcmp.ne.s32.totalorder %v9664_v35, 0  ;;  %vm5762_vm1 = vcmp.lt.s32.totalorder %v9664_v35, 0 }
 0x24f   : > { %10589 = vst [vmem:[#allocation36_spill] sm:$0xff] %v9591_v22  ;;  %5238 = vst [vmem:[%s9427_s20 + $0x40] sm:$0xff] %v9591_v22  ;;  %v5995_v14 = vmul.f32 %v9591_v22, %v9147_v18  ;;  %v6029_v52 = vadd.f32 %v6028_v7, %v5994_v36  ;;  %v9609_v44 = vadd.f32 %v5014_v58, %v9058_v17  ;;  %v9630_v17 = vsel %vm9565_vm6, 1.0, %v10581_v40 }
 0x250   : > { %5241 = vst [vmem:[%s9427_s20 + $0x58] sm:$0xff] %v9597_v4  ;;  %v9636_v36 = vadd.s32 272, %v8735_v6  ;;  %v5831_v58 = vadd.s32 18, %v9570_v9  ;;  %v9667_v18 = vadd.s32 256, %v8735_v6  ;;  %vm9772_vm4 = vmand %vm5762_vm1, %vm5726_vm0 }
 0x251   : > { %10590 = vst [vmem:[#allocation37_spill] sm:$0xff] %v9609_v44  ;;  %v6030_v7 = vadd.f32 %v6029_v52, %v5995_v14  ;;  %5239 = vst [vmem:[%s9427_s20 + $0x48] sm:$0xff] %v9609_v44  ;;  %v5996_v21 = vmul.f32 %v9609_v44, %v9317_v31  ;;  %v5869_v14 = vsel %vm9615_vm11, %v5833_v43, %v9540_v54  ;;  %v5585_v31 = vmul.u32 18, %v5584_v49 }
 0x252   : > { %v9674_v44 = vmul.u32.u64.low 3817748708, %v9563_v45  ;;  %v9675_v50 = vmul.u32.u64.high 3817748708, %v9563_v45, %v9674_v44  ;;  %v5639_v49 = vshrl.u32 %v9574_v38, 4  ;;  %vm9700_vm14 = vcmp.lt.s32.totalorder %v5869_v14, 16 }
 0x253   : > { %v6031_v54 = vadd.f32 %v6030_v7, %v5996_v21  ;;  %v7235_v43 = vpop.f32.mrb[12].mxu0  ;;  %v9684_v24 = vmul.u32.u64.low 3817748708, %v9633_v20  ;;  %v9685_v12 = vmul.u32.u64.high 3817748708, %v9633_v20, %v9684_v24  ;;  %v5998_v7 = vmul.f32 %v9597_v4, %v9303_v39 }
 0x254   : > { %v9642_v60 = vpop.f32.mrb[20].mxu1  ;;  %v9678_v22 = vadd.f32 %v7235_v43, %v9097_v56  ;;  %v5027_v27 = vpop.f32.mrb[13].mxu0  ;;  %v5867_v43 = vsel %vm9659_vm13, %v5831_v58, %v9570_v9  ;;  %v9716_v52 = vadd.s32 280, %v8735_v6 }
 0x255   : > { %v9650_v33 = vpop.f32.mrb[21].mxu1  ;;  %v6032_v21 = vadd.f32 %v6031_v54, %v5997_v25  ;;  %v9690_v44 = vadd.f32 %v5027_v27, %v9115_v0  ;;  %v7236_v56 = vpop.f32.mrb[14].mxu0  ;;  %v9705_v25 = vsub.s32 %v9451_v11, %v5585_v31  ;;  %v5617_v0 = vshrl.u32 %v9602_v37, 4 }
 0x256   : > { %v9671_v5 = vpop.f32.mrb[22].mxu1  ;;  %10595 = vst [vmem:[#allocation38_spill] sm:$0xff] %v9678_v22  ;;  %5244 = vst [vmem:[%s9427_s20 + $0x70] sm:$0xff] %v9678_v22  ;;  %v9698_v38 = vadd.f32 %v7236_v56, %v9126_v10  ;;  %v5030_v24 = vpop.f32.mrb[15].mxu0  ;;  %vm9720_vm15 = vcmp.lt.s32.totalorder %v5867_v43, 16  ;;  %v9727_v31 = vadd.s32 18, %v9664_v35  ;;  %v6001_v43 = vmul.f32 %v9678_v22, %v9361_v55 }
 0x257   : > { %v9680_v42 = vpop.f32.mrb[23].mxu1  ;;  %5242 = vst [vmem:[%s9427_s20 + $0x60] sm:$0xff] %v9690_v44  ;;  %v5999_v9 = vmul.f32 %v9690_v44, %v9364_v63  ;;  %v6033_v58 = vadd.f32 %v6032_v21, %v5998_v7  ;;  %v9713_v10 = vadd.f32 %v5030_v24, %v9142_v28  ;;  %v5640_v54 = vmul.u32 18, %v5639_v49 }
 0x258   : > { %10596 = vst [vmem:[#allocation39_spill] sm:$0xff] %v9698_v38  ;;  %5245 = vst [vmem:[%s9427_s20 + $0x78] sm:$0xff] %v9698_v38  ;;  %v9736_v27 = vadd.s32 264, %v8735_v6  ;;  %vm5724_vm2 = vcmp.ne.s32.totalorder %v9705_v25, 0  ;;  %vm5760_vm3 = vcmp.lt.s32.totalorder %v9705_v25, 0  ;;  %v9743_v21 = vadd.s32 18, %v9705_v25 }
 0x259   : > { %10599 = vst [vmem:[#allocation40_spill] sm:$0xff] %v9713_v10  ;;  %v6034_v11 = vadd.f32 %v6033_v58, %v5999_v9  ;;  %5243 = vst [vmem:[%s9427_s20 + $0x68] sm:$0xff] %v9713_v10  ;;  %v6000_v28 = vmul.f32 %v9713_v10, %v9376_v13  ;;  %v5618_v56 = vmul.u32 18, %v5617_v0  ;;  %v5628_v0 = vshrl.u32 %v9685_v12, 4 }
 0x25a   : > { %v9750_v6 = vmul.u32.u64.low 3817748708, %v9636_v36  ;;  %v9751_v58 = vmul.u32.u64.high 3817748708, %v9636_v36, %v9750_v6  ;;  %v9760_v55 = vmul.u32.u64.low 3817748708, %v9667_v18  ;;  %v9761_v22 = vmul.u32.u64.high 3817748708, %v9667_v18, %v9760_v55  ;;  %vm9786_vm5 = vmand %vm5760_vm3, %vm5724_vm2 }
 0x25b   : > { %v6035_v24 = vadd.f32 %v6034_v11, %v6000_v28  ;;  %v7239_v9 = vpop.f32.mrb[16].mxu0  ;;  %v6002_v11 = vmul.f32 %v9698_v38, %v9371_v16  ;;  %v5650_v12 = vshrl.u32 %v9675_v50, 4  ;;  %v9805_v38 = vsub.s32 %v9498_v19, %v5640_v54 }
 0x25c   : > { %v9733_v37 = vpop.f32.mrb[24].mxu1  ;;  %v9754_v13 = vadd.f32 %v7239_v9, %v9180_v46  ;;  %v5043_v63 = vpop.f32.mrb[17].mxu0  ;;  %v5868_v14 = vsel %vm9786_vm5, %v9743_v21, %v9705_v25 }
 0x25d   : > { %v9738_v7 = vpop.f32.mrb[25].mxu1  ;;  %v6036_v28 = vadd.f32 %v6035_v24, %v6001_v43  ;;  %v9766_v6 = vadd.f32 %v5043_v63, %v9196_v41  ;;  %v7240_v46 = vpop.f32.mrb[18].mxu0  ;;  %v9791_v63 = vsub.s32 %v9552_v57, %v5618_v56  ;;  %v9812_v57 = vsel %vm9700_vm14, 1.0, %v10581_v40 }
 0x25e   : > { %v9747_v49 = vpop.f32.mrb[26].mxu1  ;;  %5248 = vst [vmem:[%s9427_s20 + $0x90] sm:$0xff] %v9754_v13  ;;  %v9780_v55 = vadd.f32 %v7240_v46, %v9203_v53  ;;  %v5046_v43 = vpop.f32.mrb[19].mxu0  ;;  %v9794_v50 = vmul.u32.u64.low 3817748708, %v9736_v27  ;;  %v9795_v24 = vmul.u32.u64.high 3817748708, %v9736_v27, %v9794_v50  ;;  %v9817_v56 = vsel %vm9720_vm15, 1.0, %v10581_v40 }
 0x25f   : > { %v9756_v39 = vpop.f32.mrb[27].mxu1  ;;  %5246 = vst [vmem:[%s9427_s20 + $0x80] sm:$0xff] %v9766_v6  ;;  %v6003_v53 = vmul.f32 %v9766_v6, %v9417_v30  ;;  %v6037_v46 = vadd.f32 %v6036_v28, %v6002_v11  ;;  %v9802_v16 = vadd.f32 %v5046_v43, %v9221_v61  ;;  %v5870_v61 = vsel %vm9772_vm4, %v9727_v31, %v9664_v35 }
 0x260   : > { %5249 = vst [vmem:[%s9427_s20 + $0x98] sm:$0xff] %v9780_v55  ;;  %v5629_v11 = vmul.u32 18, %v5628_v0  ;;  %v5651_v28 = vmul.u32 18, %v5650_v12  ;;  %vm5727_vm6 = vcmp.ne.s32.totalorder %v9791_v63, 0  ;;  %vm5763_vm7 = vcmp.lt.s32.totalorder %v9791_v63, 0 }
 0x261   : > { %v6038_v19 = vadd.f32 %v6037_v46, %v6003_v53  ;;  %5247 = vst [vmem:[%s9427_s20 + $0x88] sm:$0xff] %v9802_v16  ;;  %v6004_v54 = vmul.f32 %v9802_v16, %v9437_v2  ;;  %v9838_v35 = vmul.u32.u64.low 3817748708, %v9716_v52  ;;  %v9839_v31 = vmul.u32.u64.high 3817748708, %v9716_v52, %v9838_v35  ;;  %vm9870_vm11 = vmand %vm5763_vm7, %vm5727_vm6 }
 0x262   : > { %v6005_v0 = vmul.f32 %v9754_v13, %v9403_v34  ;;  %vm5729_vm8 = vcmp.ne.s32.totalorder %v9805_v38, 0  ;;  %vm5765_vm9 = vcmp.lt.s32.totalorder %v9805_v38, 0  ;;  %v5835_v41 = vadd.s32 18, %v9791_v63 }
 0x263   : > { %v6039_v9 = vadd.f32 %v6038_v19, %v6004_v54  ;;  %v7243_v50 = vpop.f32.mrb[20].mxu0  ;;  %v9854_v46 = vsub.s32 %v9633_v20, %v5629_v11  ;;  %v5661_v19 = vshrl.u32 %v9761_v22, 4  ;;  %v6006_v54 = vmul.f32 %v9780_v55, %v9422_v3  ;;  %vm9895_vm12 = vmand %vm5765_vm9, %vm5729_vm8 }
 0x264   : > { %v9827_v51 = vpop.f32.mrb[28].mxu1  ;;  %v9848_v25 = vadd.f32 %v7243_v50, %v9642_v60  ;;  %v5059_v21 = vpop.f32.mrb[21].mxu0  ;;  %vm9862_vm10 = vcmp.lt.s32.totalorder %v5868_v14, 16  ;;  %v5837_v11 = vadd.s32 18, %v9805_v38  ;;  %v9881_v14 = vsub.s32 %v9563_v45, %v5651_v28 }
 0x265   : > { %v9833_v43 = vpop.f32.mrb[29].mxu1  ;;  %v6040_v35 = vadd.f32 %v6039_v9, %v6005_v0  ;;  %v9860_v34 = vadd.f32 %v5059_v21, %v9650_v33  ;;  %v7244_v60 = vpop.f32.mrb[22].mxu0  ;;  %v5672_v0 = vshrl.u32 %v9795_v24, 4  ;;  %v5683_v45 = vshrl.u32 %v9751_v58, 4 }
 0x266   : > { %v9843_v53 = vpop.f32.mrb[30].mxu1  ;;  %5252 = vst [vmem:[%s9427_s20 + $0xb0] sm:$0xff] %v9848_v25  ;;  %v9877_v22 = vadd.f32 %v7244_v60, %v9671_v5  ;;  %v5062_v33 = vpop.f32.mrb[23].mxu0  ;;  %v5871_v24 = vsel %vm9870_vm11, %v5835_v41, %v9791_v63  ;;  %vm5728_vm13 = vcmp.ne.s32.totalorder %v9854_v46, 0  ;;  %vm5764_vm14 = vcmp.lt.s32.totalorder %v9854_v46, 0 }
 0x267   : > { %v9850_v12 = vpop.f32.mrb[31].mxu1  ;;  %5250 = vst [vmem:[%s9427_s20 + $0xa0] sm:$0xff] %v9860_v34  ;;  %v6007_v9 = vmul.f32 %v9860_v34, %v9625_v15  ;;  %v6041_v21 = vadd.f32 %v6040_v35, %v6006_v54  ;;  %v9889_v3 = vadd.f32 %v5062_v33, %v9680_v42  ;;  %v5662_v42 = vmul.u32 18, %v5661_v19  ;;  %vm9941_vm1 = vmand %vm5764_vm14, %vm5728_vm13 }
 0x268   : > { %5253 = vst [vmem:[%s9427_s20 + $0xb8] sm:$0xff] %v9877_v22  ;;  %vm9913_vm15 = vcmp.lt.s32.totalorder %v5870_v61, 16  ;;  %v9920_v63 = vsel %vm9862_vm10, 1.0, %v10581_v40  ;;  %v5873_v19 = vsel %vm9895_vm12, %v5837_v11, %v9805_v38  ;;  %v5836_v60 = vadd.s32 18, %v9854_v46 }
 0x269   : > { %v6042_v28 = vadd.f32 %v6041_v21, %v6007_v9  ;;  %5251 = vst [vmem:[%s9427_s20 + $0xa8] sm:$0xff] %v9889_v3  ;;  %v6008_v54 = vmul.f32 %v9889_v3, %v9647_v26  ;;  %v5694_v20 = vshrl.u32 %v9839_v31, 4  ;;  %v5673_v33 = vmul.u32 18, %v5672_v0 }
 0x26a   : > { %v6009_v61 = vmul.f32 %v9848_v25, %v9545_v32  ;;  %vm9933_vm0 = vcmp.lt.s32.totalorder %v5871_v24, 16  ;;  %v5684_v31 = vmul.u32 18, %v5683_v45  ;;  %vm5730_vm2 = vcmp.ne.s32.totalorder %v9881_v14, 0 }
 0x26b   : > { %v6043_v9 = vadd.f32 %v6042_v28, %v6008_v54  ;;  %v7247_v21 = vpop.f32.mrb[24].mxu0  ;;  %vm5766_vm3 = vcmp.lt.s32.totalorder %v9881_v14, 0  ;;  %v9953_v24 = vsub.s32 %v9667_v18, %v5662_v42  ;;  %v6010_v28 = vmul.f32 %v9877_v22, %v9630_v17 }
 0x26c   : > { %v9911_v35 = vpop.f32.mrb[32].mxu1  ;;  %v9946_v11 = vadd.f32 %v7247_v21, %v9733_v37  ;;  %v5075_v0 = vpop.f32.mrb[25].mxu0  ;;  %v5838_v21 = vadd.s32 18, %v9881_v14  ;;  %v5872_v18 = vsel %vm9941_vm1, %v5836_v60, %v9854_v46  ;;  %v5695_v42 = vmul.u32 18, %v5694_v20  ;;  %vm9997_vm5 = vmand %vm5766_vm3, %vm5730_vm2 }
 0x26d   : > { %v9922_v41 = vpop.f32.mrb[33].mxu1  ;;  %v6044_v54 = vadd.f32 %v6043_v9, %v6009_v61  ;;  %v9958_v45 = vadd.f32 %v5075_v0, %v9738_v7  ;;  %v7248_v37 = vpop.f32.mrb[26].mxu0  ;;  %v9970_v61 = vsub.s32 %v9736_v27, %v5673_v33  ;;  %v9987_v46 = vsel %vm9913_vm15, 1.0, %v10581_v40 }
 0x26e   : > { %v9931_v50 = vpop.f32.mrb[34].mxu1  ;;  %5256 = vst [vmem:[%s9427_s20 + $0xd0] sm:$0xff] %v9946_v11  ;;  %v9964_v30 = vadd.f32 %v7248_v37, %v9747_v49  ;;  %v5078_v10 = vpop.f32.mrb[27].mxu0  ;;  %v9980_v49 = vsub.s32 %v9636_v36, %v5684_v31  ;;  %vm9989_vm4 = vcmp.lt.s32.totalorder %v5873_v19, 16  ;;  %vm5731_vm6 = vcmp.ne.s32.totalorder %v9953_v24, 0 }
 0x26f   : > { %v9948_v5 = vpop.f32.mrb[35].mxu1  ;;  %5254 = vst [vmem:[%s9427_s20 + $0xc0] sm:$0xff] %v9958_v45  ;;  %v6011_v7 = vmul.f32 %v9958_v45, %v9817_v56  ;;  %v6045_v9 = vadd.f32 %v6044_v54, %v6010_v28  ;;  %v9977_v0 = vadd.f32 %v5078_v10, %v9756_v39  ;;  %vm5767_vm7 = vcmp.lt.s32.totalorder %v9953_v24, 0 }
 0x270   : > { %5257 = vst [vmem:[%s9427_s20 + $0xd8] sm:$0xff] %v9964_v30  ;;  %v10010_v58 = vsel %vm9933_vm0, 1.0, %v10581_v40  ;;  %vm10012_vm8 = vcmp.lt.s32.totalorder %v5872_v18, 16  ;;  %v5839_v60 = vadd.s32 18, %v9953_v24  ;;  %v10018_v20 = vsub.s32 %v9716_v52, %v5695_v42  ;;  %vm10032_vm12 = vmand %vm5767_vm7, %vm5731_vm6 }
 0x271   : > { %v6046_v36 = vadd.f32 %v6045_v9, %v6011_v7  ;;  %5255 = vst [vmem:[%s9427_s20 + $0xc8] sm:$0xff] %v9977_v0  ;;  %v6012_v10 = vmul.f32 %v9977_v0, %v9920_v63  ;;  %vm5732_vm9 = vcmp.ne.s32.totalorder %v9970_v61, 0  ;;  %vm5768_vm10 = vcmp.lt.s32.totalorder %v9970_v61, 0 }
 0x272   : > { %v6013_v33 = vmul.f32 %v9946_v11, %v9812_v57  ;;  %v5874_v31 = vsel %vm9997_vm5, %v5838_v21, %v9881_v14  ;;  %vm5733_vm11 = vcmp.ne.s32.totalorder %v9980_v49, 0  ;;  %vm5769_vm13 = vcmp.lt.s32.totalorder %v9980_v49, 0  ;;  %vm10056_vm14 = vmand %vm5768_vm10, %vm5732_vm9 }
 0x273   : > { %v6047_v38 = vadd.f32 %v6046_v36, %v6012_v10  ;;  %v7251_v2 = vpop.f32.mrb[28].mxu0  ;;  %v5841_v37 = vadd.s32 18, %v9980_v49  ;;  %v5840_v14 = vadd.s32 18, %v9970_v61  ;;  %v6014_v21 = vmul.f32 %v9964_v30, %v9987_v46  ;;  %vm10081_vm2 = vmand %vm5769_vm13, %vm5733_vm11 }
 0x274   : > { %v10037_v28 = vadd.f32 %v7251_v2, %v9827_v51  ;;  %v5091_v54 = vpop.f32.mrb[29].mxu0  ;;  %v10050_v51 = vsel %vm10012_vm8, 1.0, %v10581_v40  ;;  %v5875_v36 = vsel %vm10032_vm12, %v5839_v60, %v9953_v24  ;;  %vm5734_vm15 = vcmp.ne.s32.totalorder %v10018_v20, 0 }
 0x275   : > { %v6048_v18 = vadd.f32 %v6047_v38, %v6013_v33  ;;  %v10045_v42 = vadd.f32 %v5091_v54, %v9833_v43  ;;  %v7252_v7 = vpop.f32.mrb[30].mxu0  ;;  %vm5770_vm0 = vcmp.lt.s32.totalorder %v10018_v20, 0  ;;  %vm5910_vm1 = vcmp.lt.s32.totalorder %v5874_v31, 16 }
 0x276   : > { %5260 = vst [vmem:[%s9427_s20 + $0xf0] sm:$0xff] %v10037_v28  ;;  %v10063_v43 = vadd.f32 %v7252_v7, %v9843_v53  ;;  %v5094_v39 = vpop.f32.mrb[31].mxu0  ;;  %v10088_v60 = vsel %vm9989_vm4, 1.0, %v10581_v40  ;;  %v5842_v33 = vadd.s32 18, %v10018_v20  ;;  %vm5911_vm3 = vcmp.lt.s32.totalorder %v5875_v36, 16  ;;  %vm10104_vm4 = vmand %vm5770_vm0, %vm5734_vm15 }
 0x277   : > { %5258 = vst [vmem:[%s9427_s20 + $0xe0] sm:$0xff] %v10045_v42  ;;  %v6015_v10 = vmul.f32 %v10045_v42, %v10010_v58  ;;  %v6049_v19 = vadd.f32 %v6048_v18, %v6014_v21  ;;  %v10075_v53 = vadd.f32 %v5094_v39, %v9850_v12  ;;  %v5876_v12 = vsel %vm10056_vm14, %v5840_v14, %v9970_v61 }
 0x278   : > { %5261 = vst [vmem:[%s9427_s20 + $0xf8] sm:$0xff] %v10063_v43  ;;  %v10109_v31 = vsel %vm5910_vm1, 1.0, %v10581_v40  ;;  %v5877_v61 = vsel %vm10081_vm2, %v5841_v37, %v9980_v49  ;;  %v6017_v52 = vmul.f32 %v10037_v28, %v10088_v60  ;;  %vm5912_vm5 = vcmp.lt.s32.totalorder %v5876_v12, 16 }
 0x279   : > { %v6050_v38 = vadd.f32 %v6049_v19, %v6015_v10  ;;  %5259 = vst [vmem:[%s9427_s20 + $0xe8] sm:$0xff] %v10075_v53  ;;  %v6016_v2 = vmul.f32 %v10075_v53, %v10050_v51  ;;  %v10121_v7 = vsel %vm5911_vm3, 1.0, %v10581_v40  ;;  %v5878_v49 = vsel %vm10104_vm4, %v5842_v33, %v10018_v20 }
 0x27a   : > { %v6018_v37 = vmul.f32 %v10063_v43, %v10109_v31  ;;  %vm5913_vm6 = vcmp.lt.s32.totalorder %v5877_v61, 16  ;;  %v10138_v20 = vsel %vm5912_vm5, 1.0, %v10581_v40  ;;  %vm5914_vm7 = vcmp.lt.s32.totalorder %v5878_v49, 16 }
 0x27b   : > { %v6051_v54 = vadd.f32 %v6050_v38, %v6016_v2  ;;  %v7255_v14 = vpop.f32.mrb[32].mxu0  ;;  %v10155_v24 = vsel %vm5913_vm6, 1.0, %v10581_v40  ;;  %v10164_v38 = vsel %vm5914_vm7, 1.0, %v10581_v40 }
 0x27c   : > { %v10118_v21 = vadd.f32 %v7255_v14, %v9911_v35  ;;  %v5107_v18 = vpop.f32.mrb[33].mxu0 }
 0x27d   : > { %v6052_v9 = vadd.f32 %v6051_v54, %v6017_v52  ;;  %v10130_v39 = vadd.f32 %v5107_v18, %v9922_v41  ;;  %v7256_v35 = vpop.f32.mrb[34].mxu0 }
 0x27e   : > { %5264 = vst [vmem:[%s9427_s20 + $0x110] sm:$0xff] %v10118_v21  ;;  %v10135_v36 = vadd.f32 %v7256_v35, %v9931_v50  ;;  %v5110_v10 = vpop.f32.mrb[35].mxu0 }
 0x27f   : > { %5262 = vst [vmem:[%s9427_s20 + $0x100] sm:$0xff] %v10130_v39  ;;  %v6019_v41 = vmul.f32 %v10130_v39, %v10121_v7  ;;  %v6053_v19 = vadd.f32 %v6052_v9, %v6018_v37  ;;  %v10150_v50 = vadd.f32 %v5110_v10, %v9948_v5 }
 0x280   : > { %5265 = vst [vmem:[%s9427_s20 + $0x118] sm:$0xff] %v10135_v36 }
 0x281   : > { %v6054_v33 = vadd.f32 %v6053_v19, %v6019_v41  ;;  %5263 = vst [vmem:[%s9427_s20 + $0x108] sm:$0xff] %v10150_v50  ;;  %v6020_v12 = vmul.f32 %v10150_v50, %v10138_v20 }
 0x282   : > { %7945 = shalt.err (!%p7942_p7)
}
 0x283   : > { %s7946_s30 = scalar_lea.hbm %s10143_s10, 4608  ;;  %s7950_s8 = scalar_lea.hbm %s10437_s2, 9216 }
 0x284   : > { %p7947_p9 = scmp.ne.s32.totalorder %s10143_s10, %s7946_s30  ;;  %p7951_p5 = scmp.lt.u32.totalorder %s10143_s10, %s10437_s2 }
 0x285   : > { %p7952_p11 = scmp.lt.u32.totalorder %s7950_s8, %s7946_s30  ;;  %p7954_p4 = scmp.lt.u32.totalorder %s7946_s30, %s10143_s10 }
 0x286   : > { %p7948_p2 = pnand %p7947_p9, %p8158_p12 }
 0x287   : > { %p7953_p1 = por %p7952_p11, %p7951_p5 }
 0x288   : > { %p7949_p0 = pneg %p7948_p2 }
 0x289   : > { %p7955_p6 = por %p7954_p4, %p7953_p1 }
 0x28b   : > { %p7956_p8 = pnand %p7955_p6, %p7949_p0 }
 0x28d   : > { %7959 = shalt.err (!%p7956_p8)
}
 0x28e   : > { %s8044_s20 = smov 128   ;;  %s8045_s4 = smov 8   ;;  %v6021_v40 = vmul.f32 %v10118_v21, %v10155_v24  ;;  %v6055_v5 = vadd.f32 %v6054_v33, %v6020_v12  ;;  %v6022_v2 = vmul.f32 %v10135_v36, %v10164_v38 }
 0x28f   : > { %7640 = dma.vmem_to_hbm [thread:$0]  (%p8158_p12), %s10152_s22, 4608, %s10143_s10, %s6217_s11, %s8044_s20, %s8044_s20, %s8045_s4  }
 0x290   : > { %v6056_v27 = vadd.f32 %v6055_v5, %v6021_v40  ;;  %s6370_s26 = sshll.u32 %s8206_s6, 1  ;;  %s6741_s22 = sshll.u32 %s8088_s16, 5 }
 0x291   : > { %s10197_s5 = scalar_lea.vmem [#allocation9], %s6370_s26  ;;  %s10390_s28 = scalar_lea.hbm %s10438_s3, %s6741_s22 }
 0x292   : > { %v6057_v61 = vadd.f32 %v6056_v27, %v6022_v2  ;;  %s6251_s10 = sshll.u32 %s10197_s5, 4  ;;  %s6222_s29 = scalar_lea.sflag [#allocation10], %s8206_s6  ;;  %s10392_s10 = int_to_ptr.vmem [resolvable:$true] %s6251_s10 }
 0x293   : > { %s7960_s23 = scalar_lea.vmem %s10392_s10, 32  ;;  %s8046_s16 = smov [#allocation9]  }
 0x294   : > { %v6058_v52 = vrot.slane %v6057_v61, 4  ;;  %p7961_p10 = scmp.ne.s32.totalorder %s10392_s10, %s7960_s23  ;;  %s7964_s30 = sshll.u32 %s8046_s16, 4  ;;  %s7965_s30 = int_to_ptr.vmem [resolvable:$false] %s7964_s30 }
 0x295   : > { %s7966_s25 = scalar_lea.vmem %s7965_s30, 64  ;;  %p7967_p7 = scmp.lt.s32.totalorder %s10392_s10, %s7965_s30 }
 0x296   : > { %v6059_v54 = vadd.f32 %v6058_v52, %v6057_v61  ;;  %p7962_p13 = pnand %p7961_p10, %p8158_p12  ;;  %p7968_p9 = scmp.lt.s32.totalorder %s7966_s25, %s7960_s23 }
 0x298   : > { %v6060_v14 = vrot.slane %v6059_v54, 2  ;;  %p7963_p3 = pneg %p7962_p13  ;;  %p7969_p2 = por %p7968_p9, %p7967_p7 }
 0x29a   : > { %v6061_v18 = vadd.f32 %v6060_v14, %v6059_v54  ;;  %p7970_p0 = pnand %p7969_p2, %p7963_p3 }
 0x29c   : > { %v6062_v49 = vrot.slane %v6061_v18, 1 }
 0x29e   : > { %v6063_v37 = vadd.f32 %v6062_v49, %v6061_v18  ;;  %v10635_v49 = vld [vmem:[#allocation17_spill] sm:$0xff] }
 0x2a0   : > { %v10195_v9 = vmul.f32 0.00390625, %v6063_v37  ;;  %v10636_v37 = vld [vmem:[#allocation15_spill] sm:$0xff] }
 0x2a2   : > { %6214 = vst [vmem:[%s10197_s5] sm:$0x1] %v10195_v9  ;;  %v6081_v35 = vsub.f32 %v9766_v6, %v10195_v9  ;;  %v6082_v10 = vsub.f32 %v9802_v16, %v10195_v9  ;;  %v6083_v41 = vsub.f32 %v9754_v13, %v10195_v9  ;;  %v6084_v19 = vsub.f32 %v9780_v55, %v10195_v9  ;;  %v10657_v6 = vld [vmem:[#allocation32_spill] sm:$0xff] }
 0x2a3   : > { %v6085_v33 = vsub.f32 %v9860_v34, %v10195_v9  ;;  %v6086_v12 = vsub.f32 %v9889_v3, %v10195_v9  ;;  %v6087_v40 = vsub.f32 %v9848_v25, %v10195_v9  ;;  %v6088_v5 = vsub.f32 %v9877_v22, %v10195_v9 }
 0x2a4   : > { %v6089_v2 = vsub.f32 %v9958_v45, %v10195_v9  ;;  %v6090_v27 = vsub.f32 %v9977_v0, %v10195_v9  ;;  %v6091_v61 = vsub.f32 %v9946_v11, %v10195_v9  ;;  %v6092_v34 = vsub.f32 %v9964_v30, %v10195_v9 }
 0x2a5   : > { %v6093_v3 = vsub.f32 %v10045_v42, %v10195_v9  ;;  %v6094_v25 = vsub.f32 %v10075_v53, %v10195_v9  ;;  %v6095_v22 = vsub.f32 %v10037_v28, %v10195_v9  ;;  %v6096_v45 = vsub.f32 %v10063_v43, %v10195_v9  ;;  %v10632_v28 = vld [vmem:[#allocation34_spill] sm:$0xff] }
 0x2a6   : > { %v6097_v0 = vsub.f32 %v10130_v39, %v10195_v9  ;;  %v6098_v11 = vsub.f32 %v10150_v50, %v10195_v9  ;;  %v6099_v30 = vsub.f32 %v10118_v21, %v10195_v9  ;;  %v6100_v42 = vsub.f32 %v10135_v36, %v10195_v9 }
 0x2a7   : > { %v6065_v53 = vsub.f32 %v9412_v23, %v10195_v9  ;;  %v6066_v52 = vsub.f32 %v10632_v28, %v10195_v9  ;;  %v10246_v43 = vmul.f32 %v9625_v15, %v6085_v33  ;;  %v10249_v39 = vmul.f32 %v9647_v26, %v6086_v12 }
 0x2a8   : > { %v10252_v50 = vmul.f32 %v9545_v32, %v6087_v40  ;;  %v10255_v21 = vmul.f32 %v9630_v17, %v6088_v5  ;;  %v10258_v36 = vmul.f32 %v9817_v56, %v6089_v2  ;;  %v10261_v23 = vmul.f32 %v9920_v63, %v6090_v27 }
 0x2a9   : > { %v10264_v54 = vmul.f32 %v9812_v57, %v6091_v61  ;;  %v10267_v15 = vmul.f32 %v9987_v46, %v6092_v34  ;;  %v10270_v26 = vmul.f32 %v10010_v58, %v6093_v3  ;;  %v10273_v32 = vmul.f32 %v10050_v51, %v6094_v25  ;;  %v10633_v51 = vld [vmem:[#allocation29_spill] sm:$0xff] }
 0x2aa   : > { %v10276_v17 = vmul.f32 %v10088_v60, %v6095_v22  ;;  %v10279_v56 = vmul.f32 %v10109_v31, %v6096_v45  ;;  %v10282_v63 = vmul.f32 %v10121_v7, %v6097_v0  ;;  %v10285_v57 = vmul.f32 %v10138_v20, %v6098_v11  ;;  %v10634_v60 = vld [vmem:[#allocation16_spill] sm:$0xff] }
 0x2ab   : > { %v10288_v46 = vmul.f32 %v10155_v24, %v6099_v30  ;;  %v10291_v58 = vmul.f32 %v10164_v38, %v6100_v42  ;;  %v6067_v14 = vsub.f32 %v10633_v51, %v10195_v9  ;;  %v6101_v18 = vmul.f32 %v10634_v60, %v6065_v53  ;;  %v10638_v22 = vld [vmem:[#allocation36_spill] sm:$0xff]  ;;  %v10643_v51 = vld [vmem:[#allocation22_spill] sm:$0xff] }
 0x2ac   : > { %v6102_v31 = vmul.f32 %v10635_v49, %v6066_v52  ;;  %v6068_v7 = vsub.f32 %v9432_v8, %v10195_v9  ;;  %v6069_v20 = vsub.f32 %v9511_v62, %v10195_v9  ;;  %v6070_v38 = vsub.f32 %v9537_v47, %v10195_v9  ;;  %v10637_v62 = vld [vmem:[#allocation20_spill] sm:$0xff]  ;;  %v10639_v47 = vld [vmem:[#allocation18_spill] sm:$0xff] }
 0x2ad   : > { %v6103_v33 = vmul.f32 %v10636_v37, %v6067_v14  ;;  %v6137_v24 = vmul.f32 %v6101_v18, %v6101_v18  ;;  %v6071_v5 = vsub.f32 %v9501_v29, %v10195_v9  ;;  %v6072_v8 = vsub.f32 %v9524_v48, %v10195_v9  ;;  %v10640_v29 = vld [vmem:[#allocation37_spill] sm:$0xff]  ;;  %v10642_v48 = vld [vmem:[#allocation35_spill] sm:$0xff] }
 0x2ae   : > { %v6138_v12 = vmul.f32 %v6102_v31, %v6102_v31  ;;  %v6104_v40 = vmul.f32 %v8980_v59, %v6068_v7  ;;  %v6105_v2 = vmul.f32 %v9118_v1, %v6069_v20  ;;  %v6106_v34 = vmul.f32 %v10637_v62, %v6070_v38  ;;  %v10641_v1 = vld [vmem:[#allocation19_spill] sm:$0xff]  ;;  %v10644_v31 = vld [vmem:[#allocation24_spill] sm:$0xff] }
 0x2af   : > { %v6139_v27 = vmul.f32 %v6103_v33, %v6103_v33  ;;  %v6073_v45 = vsub.f32 %v10638_v22, %v10195_v9  ;;  %v6107_v0 = vmul.f32 %v10639_v47, %v6071_v5  ;;  %v6074_v30 = vsub.f32 %v10640_v29, %v10195_v9  ;;  %v10646_v5 = vld [vmem:[#allocation40_spill] sm:$0xff] }
 0x2b0   : > { %v6173_v61 = vadd.f32 %v6138_v12, %v6137_v24  ;;  %v6140_v3 = vmul.f32 %v6104_v40, %v6104_v40  ;;  %v6141_v59 = vmul.f32 %v6105_v2, %v6105_v2  ;;  %v6108_v42 = vmul.f32 %v10641_v1, %v6072_v8  ;;  %v10645_v24 = vld [vmem:[#allocation21_spill] sm:$0xff] }
 0x2b1   : > { %v6142_v53 = vmul.f32 %v6106_v34, %v6106_v34  ;;  %v6075_v52 = vsub.f32 %v10642_v48, %v10195_v9  ;;  %v6109_v14 = vmul.f32 %v10643_v51, %v6073_v45  ;;  %v6143_v60 = vmul.f32 %v6107_v0, %v6107_v0  ;;  %v10651_v0 = vld [vmem:[#allocation28_spill] sm:$0xff] }
 0x2b2   : > { %v6174_v25 = vadd.f32 %v6173_v61, %v6139_v27  ;;  %v6076_v49 = vsub.f32 %v9597_v4, %v10195_v9  ;;  %v6110_v7 = vmul.f32 %v10644_v31, %v6074_v30  ;;  %v6144_v20 = vmul.f32 %v6108_v42, %v6108_v42  ;;  %v10647_v27 = vld [vmem:[#allocation23_spill] sm:$0xff]  ;;  %v10648_v4 = vld [vmem:[#allocation38_spill] sm:$0xff]  ;;  %v10652_v30 = vld [vmem:[#allocation25_spill] sm:$0xff] }
 0x2b3   : > { %v6077_v33 = vsub.f32 %v9690_v44, %v10195_v9  ;;  %v6111_v12 = vmul.f32 %v10645_v24, %v6075_v52  ;;  %v6145_v38 = vmul.f32 %v6109_v14, %v6109_v14  ;;  %v6078_v2 = vsub.f32 %v10646_v5, %v10195_v9  ;;  %v10650_v44 = vld [vmem:[#allocation39_spill] sm:$0xff]  ;;  %v10655_v31 = vld [vmem:[#allocation33_spill] sm:$0xff] }
 0x2b4   : > { %v6175_v11 = vadd.f32 %v6174_v25, %v6140_v3  ;;  %v6112_v61 = vmul.f32 %v10647_v27, %v6076_v49  ;;  %v6146_v8 = vmul.f32 %v6110_v7, %v6110_v7  ;;  %v6079_v34 = vsub.f32 %v10648_v4, %v10195_v9  ;;  %v10649_v3 = vld [vmem:[#allocation26_spill] sm:$0xff]  ;;  %v10654_v14 = vld [vmem:[#allocation31_spill] sm:$0xff] }
 0x2b5   : > { %v6113_v25 = vmul.f32 %v10649_v3, %v6077_v33  ;;  %v6147_v22 = vmul.f32 %v6111_v12, %v6111_v12  ;;  %v6080_v47 = vsub.f32 %v10650_v44, %v10195_v9  ;;  %v6118_v7 = vmul.f32 %v10655_v31, %v6082_v10  ;;  %v10656_v33 = vld [vmem:[#allocation30_spill] sm:$0xff] }
 0x2b6   : > { %v6176_v28 = vadd.f32 %v6175_v11, %v6141_v59  ;;  %v6114_v59 = vmul.f32 %v10651_v0, %v6078_v2  ;;  %v6148_v11 = vmul.f32 %v6112_v61, %v6112_v61  ;;  %v6115_v1 = vmul.f32 %v10652_v30, %v6079_v34 }
 0x2b7   : > { %v6149_v42 = vmul.f32 %v6113_v25, %v6113_v25  ;;  %v6119_v24 = vmul.f32 %v10656_v33, %v6083_v41  ;;  %v6157_v61 = vmul.f32 %v10246_v43, %v10246_v43  ;;  %v6158_v13 = vmul.f32 %v10249_v39, %v10249_v39 }
 0x2b8   : > { %v6177_v18 = vadd.f32 %v6176_v28, %v6142_v53  ;;  %v10653_v28 = vld [vmem:[#allocation27_spill] sm:$0xff]  ;;  %v6150_v52 = vmul.f32 %v6114_v59, %v6114_v59  ;;  %v6160_v9 = vmul.f32 %v10255_v21, %v10255_v21  ;;  %v6161_v4 = vmul.f32 %v10258_v36, %v10258_v36 }
 0x2b9   : > { %v6116_v48 = vmul.f32 %v10653_v28, %v6080_v47  ;;  %v6155_v2 = vmul.f32 %v6119_v24, %v6119_v24  ;;  %v6162_v43 = vmul.f32 %v10261_v23, %v10261_v23  ;;  %v6163_v39 = vmul.f32 %v10264_v54, %v10264_v54 }
 0x2ba   : > { %v6178_v37 = vadd.f32 %v6177_v18, %v6143_v60  ;;  %v6117_v60 = vmul.f32 %v10654_v14, %v6081_v35  ;;  %v6151_v18 = vmul.f32 %v6115_v1, %v6115_v1  ;;  %v6120_v35 = vmul.f32 %v10657_v6, %v6084_v19 }
 0x2bb   : > { %v6165_v21 = vmul.f32 %v10270_v26, %v10270_v26  ;;  %v6166_v36 = vmul.f32 %v10273_v32, %v10273_v32  ;;  %v6167_v23 = vmul.f32 %v10276_v17, %v10276_v17  ;;  %v6168_v54 = vmul.f32 %v10279_v56, %v10279_v56 }
 0x2bc   : > { %v6179_v40 = vadd.f32 %v6178_v37, %v6144_v20  ;;  %v6152_v20 = vmul.f32 %v6116_v48, %v6116_v48  ;;  %v6153_v12 = vmul.f32 %v6117_v60, %v6117_v60  ;;  %v6156_v27 = vmul.f32 %v6120_v35, %v6120_v35 }
 0x2bd   : > { %v6170_v26 = vmul.f32 %v10285_v57, %v10285_v57  ;;  %v6171_v32 = vmul.f32 %v10288_v46, %v10288_v46 }
 0x2be   : > { %v6180_v62 = vadd.f32 %v6179_v40, %v6145_v38  ;;  %v6154_v40 = vmul.f32 %v6118_v7, %v6118_v7 }
 0x2c0   : > { %v6181_v45 = vadd.f32 %v6180_v62, %v6146_v8  ;;  %v6159_v62 = vmul.f32 %v10252_v50, %v10252_v50  ;;  %v6164_v50 = vmul.f32 %v10267_v15, %v10267_v15  ;;  %v6169_v15 = vmul.f32 %v10282_v63, %v10282_v63 }
 0x2c2   : > { %v6182_v29 = vadd.f32 %v6181_v45, %v6147_v22 }
 0x2c4   : > { %v6183_v53 = vadd.f32 %v6182_v29, %v6148_v11  ;;  %v6172_v29 = vmul.f32 %v10291_v58, %v10291_v58 }
 0x2c6   : > { %v6184_v51 = vadd.f32 %v6183_v53, %v6149_v42 }
 0x2c8   : > { %v6185_v49 = vadd.f32 %v6184_v51, %v6150_v52 }
 0x2ca   : > { %v6186_v37 = vadd.f32 %v6185_v49, %v6151_v18 }
 0x2cc   : > { %v6187_v38 = vadd.f32 %v6186_v37, %v6152_v20 }
 0x2ce   : > { %v6188_v5 = vadd.f32 %v6187_v38, %v6153_v12 }
 0x2d0   : > { %v6189_v16 = vadd.f32 %v6188_v5, %v6154_v40 }
 0x2d2   : > { %v6190_v10 = vadd.f32 %v6189_v16, %v6155_v2 }
 0x2d4   : > { %v6191_v8 = vadd.f32 %v6190_v10, %v6156_v27 }
 0x2d6   : > { %v6192_v41 = vadd.f32 %v6191_v8, %v6157_v61 }
 0x2d8   : > { %v6193_v55 = vadd.f32 %v6192_v41, %v6158_v13 }
 0x2da   : > { %v6194_v19 = vadd.f32 %v6193_v55, %v6159_v62 }
 0x2dc   : > { %v6195_v34 = vadd.f32 %v6194_v19, %v6160_v9 }
 0x2de   : > { %v6196_v3 = vadd.f32 %v6195_v34, %v6161_v4 }
 0x2e0   : > { %v6197_v25 = vadd.f32 %v6196_v3, %v6162_v43 }
 0x2e2   : > { %v6198_v22 = vadd.f32 %v6197_v25, %v6163_v39 }
 0x2e4   : > { %v6199_v45 = vadd.f32 %v6198_v22, %v6164_v50 }
 0x2e6   : > { %v6200_v44 = vadd.f32 %v6199_v45, %v6165_v21 }
 0x2e8   : > { %v6201_v47 = vadd.f32 %v6200_v44, %v6166_v36 }
 0x2ea   : > { %v6202_v0 = vadd.f32 %v6201_v47, %v6167_v23 }
 0x2ec   : > { %v6203_v59 = vadd.f32 %v6202_v0, %v6168_v54 }
 0x2ee   : > { %v6204_v11 = vadd.f32 %v6203_v59, %v6169_v15 }
 0x2f0   : > { %v6205_v17 = vadd.f32 %v6204_v11, %v6170_v26 }
 0x2f2   : > { %v6206_v56 = vadd.f32 %v6205_v17, %v6171_v32 }
 0x2f4   : > { %v6207_v30 = vadd.f32 %v6206_v56, %v6172_v29 }
 0x2f6   : > { %v6208_v1 = vrot.slane %v6207_v30, 4 }
 0x2f8   : > { %v6209_v42 = vadd.f32 %v6208_v1, %v6207_v30 }
 0x2fa   : > { %v6210_v63 = vrot.slane %v6209_v42, 2 }
 0x2fc   : > { %v6211_v53 = vadd.f32 %v6210_v63, %v6209_v42 }
 0x2fe   : > { %v6212_v57 = vrot.slane %v6211_v53, 1 }
 0x300   : > { %v6213_v28 = vadd.f32 %v6212_v57, %v6211_v53 }
 0x302   : > { %6215 = vst [vmem:[%s10197_s5 + $0x1] sm:$0x1] %v6213_v28 }
 0x303   : > { %7973 = shalt.err (!%p7970_p0)
}
 0x304   : > { %s7974_s6 = scalar_lea.hbm %s10390_s28, 32  ;;  %s7978_s9 = scalar_lea.hbm %s10438_s3, 64 }
 0x305   : > { %p7975_p5 = scmp.ne.s32.totalorder %s10390_s28, %s7974_s6  ;;  %p7979_p4 = scmp.lt.u32.totalorder %s10390_s28, %s10438_s3 }
 0x306   : > { %p7980_p6 = scmp.lt.u32.totalorder %s7978_s9, %s7974_s6  ;;  %p7982_p10 = scmp.lt.u32.totalorder %s7974_s6, %s10390_s28 }
 0x307   : > { %p7976_p11 = pnand %p7975_p5, %p8158_p12 }
 0x308   : > { %p7981_p8 = por %p7980_p6, %p7979_p4 }
 0x309   : > { %p7977_p1 = pneg %p7976_p11 }
 0x30a   : > { %p7983_p13 = por %p7982_p10, %p7981_p8 }
 0x30c   : > { %p7984_p3 = pnand %p7983_p13, %p7977_p1 }
 0x30e   : > { %7987 = shalt.err (!%p7984_p3)
}
 0x30f   : > { %7641 = dma.vmem_to_hbm [thread:$0]  (%p8158_p12), %s10392_s10, 32, %s10390_s28, %s6222_s29  }
 0x310 PF: > { %s6263_s4 = sand.u32 1, %s8022_s12   ;;  %p10658_p7 = scmp.ne.s32.totalorder %s10471_s19, 0 }
 0x311   : > { %p10659_p9 = scmp.ge.s32.totalorder %s8034_s15, 2  ;;  %s6264_s26 = scalar_lea.sflag [#allocation5], %s6263_s4 }
 0x313   : > { %p7653_p2 = pnand %p10659_p9, %p10658_p7 }
 0x315   : > { %8013 = dma.done.wait (!%p7653_p2), %s6264_s26, 4608  }
 0x316   : > { %8015 = vsyncadd (!%p7653_p2), %s6264_s26, 4294962688  ;;  %s6273_s5 = scalar_lea.sflag [#allocation10], %s6263_s4 }
 0x317   : > { %8017 = dma.done.wait (!%p7653_p2), %s6273_s5, 32  }
 0x318   : > { %8019 = vsyncadd (!%p7653_p2), %s6273_s5, 4294967264  ;;  %p21_p12 = scmp.ge.s32.totalorder %s8123_s24, 4   ;;  %s10660_s12 = smov %s8026_s13 }
 0x319   : > { %s10661_s13 = smov %s8030_s14  ;;  %s10662_s14 = smov %s8154_s17 }
 0x31a   : > { %s10663_s15 = smov %s8123_s24  ;;  %23 = sbr.rel (!%p21_p12) target bundleno = 8 (0x8), region = 102 }
 0x321   :  { %6278 = vsyncpa [#allocation4], 1 }
 0x322   :  { %6280 = vsyncpa [#allocation4 + $0x1], 1 }
 0x323   :  { %6281 = vsyncpa [#allocation7], 1 }
 0x324   :  { %6282 = vsyncpa [#allocation5], 1 }
 0x325   :  { %6284 = vsyncpa [#allocation5 + $0x1], 1 }
 0x326   :  { %6285 = vsyncpa [#allocation10], 1 }
 0x327   :  { %6287 = vsyncpa [#allocation10 + $0x1], 1 }

</bundles_post_ra>
